<compile_context>
chip_gen: v6e
topology: v6e:2x2x1
jax: 0.10.0
libtpu: 0.0.40
codegen_flags: <defaults>
</compile_context>

<pallas_src>
import jax
import jax.numpy as jnp
from jax.experimental import pallas as pl
from jax.experimental.pallas import tpu as pltpu

# ----- module hyper-parameters (globals in the original script) --------------
NUM_SB = 1          # >1 makes the reference PyTorch forward ill-shaped
EMBED_DIM = 32
INP_DIM = EMBED_DIM
OUT_DIM = 8
H0, H1, H2 = 450, 400, 300
BN_EPS = 1e-5

# lane-aligned (multiple-of-128) padded feature widths
H0P, H1P, H2P, OUTP = 512, 512, 384, 128


def _round_up(x, m):
    return ((x + m - 1) // m) * m


def _num_tensorcores():
    """2 TensorCores per chip on v7x (grid 'parallel' axis is sharded across
    them); v5e/v6e have a single TC, where extra grid steps are pure serial
    overhead."""
    try:
        kind = (jax.devices()[0].device_kind or "").lower()
    except Exception:  # pragma: no cover - defensive
        return 1
    return 2 if "v7" in kind else 1


# ----- kernel -----------------------------------------------------------------
def flood_kernel(x_ref,
                 w0_ref, b0_ref, w1_ref, b1_ref, w2_ref, b2_ref,
                 w3_ref, b3_ref, w4_ref, b4_ref,
                 o_ref):
    cdt = w0_ref.dtype  # matmul compute dtype (bf16)

    def lin_relu(h, w_ref, b_ref):
        y = jnp.dot(h, w_ref[...], preferred_element_type=jnp.float32) + b_ref[...]
        return jnp.maximum(y, 0.0).astype(cdt)

    x = x_ref[...]
    h = lin_relu(x, w0_ref, b0_ref)        # (tb, 512)  layer0
    h = lin_relu(h, w1_ref, b1_ref)        # (tb, 512)  layer1 (BN1 folded into W2)
    h = lin_relu(h, w2_ref, b2_ref)        # (tb, 384)  layer2 (BN2 folded into W3)
    h = lin_relu(h, w3_ref, b3_ref)        # (tb, 128)  layer3 (BN3 folded into W4)
    # TODO(synk): train-mode Dropout RNG is not reproduced; eval mode => identity.
    y = jnp.dot(h, w4_ref[...], preferred_element_type=jnp.float32) + b4_ref[...]
    o_ref[...] = y.astype(o_ref.dtype)     # (tb, 128) lane-dense store


# ----- parameter prep: BN folding + padding + bf16 cast ------------------------
# NOTE: call this ONCE at model-load time and pass the result to
# flood_fc_with_attn; it is intentionally NOT called inside the forward.
def prepare_params(p, compute_dtype=jnp.bfloat16):
    """Fold eval-mode BN into the *following* linear (in f32), zero-pad feature
    dims to multiples of 128, cast weights to the matmul compute dtype."""
    def bn_scale_shift(g, be, m, v):
        s = g * jax.lax.rsqrt(v + BN_EPS)    # (1, n)
        t = be - m * s                        # (1, n)
        return s, t

    s1, t1 = bn_scale_shift(p["g1"], p["be1"], p["m1"], p["v1"])
    s2, t2 = bn_scale_shift(p["g2"], p["be2"], p["m2"], p["v2"])
    s3, t3 = bn_scale_shift(p["g3"], p["be3"], p["m3"], p["v3"])

    w0, b0 = p["w0"], p["b0"]
    w1, b1 = p["w1"], p["b1"]
    w2 = p["w2"] * s1.T                      # diag(scale1) @ W2
    b2 = p["b2"] + t1 @ p["w2"]
    w3 = p["w3"] * s2.T
    b3 = p["b3"] + t2 @ p["w3"]
    w4 = p["w4"] * s3.T
    b4 = p["b4"] + t3 @ p["w4"]

    def pad2(a, r, c):
        return jnp.pad(a, ((0, r - a.shape[0]), (0, c - a.shape[1])))

    return dict(
        w0=pad2(w0, INP_DIM, H0P).astype(compute_dtype), b0=pad2(b0, 1, H0P),
        w1=pad2(w1, H0P, H1P).astype(compute_dtype),     b1=pad2(b1, 1, H1P),
        w2=pad2(w2, H1P, H2P).astype(compute_dtype),     b2=pad2(b2, 1, H2P),
        w3=pad2(w3, H2P, OUTP).astype(compute_dtype),    b3=pad2(b3, 1, OUTP),
        w4=pad2(w4, OUTP, OUTP).astype(compute_dtype),   b4=pad2(b4, 1, OUTP),
    )


# ----- wrapper ----------------------------------------------------------------
def flood_fc_with_attn(input1, prepared_params, *, tile_b=None, num_cores=None,
                       out_dtype=jnp.float32):
    """input1: (B, EMBED_DIM) float32. prepared_params: output of prepare_params().
    Returns (B, OUT_DIM) in out_dtype."""
    # PyTorch: input1.view(NUM_SB, -1, INP_DIM) -> per-SB Linear -> stack ->
    # view(-1, NUM_SB, 450) -> squeeze.  With NUM_SB == 1 these reshapes are
    # the identity, so the kernel consumes (B, EMBED_DIM) directly.
    x = input1.reshape(NUM_SB, -1, INP_DIM).reshape(-1, INP_DIM)
    B = x.shape[0]

    pp = prepared_params
    cdt = pp["w0"].dtype

    if num_cores is None:
        num_cores = _num_tensorcores()

    # Tile sizing:
    #  * large B: 512 (1024 at B>=4096) rows -> amortizes ~0.35us/step pipeline
    #    overhead and feeds full MXU passes (VMEM footprint ~10 MiB at 1024).
    #  * small B: exactly one tile per TensorCore -- no forced extra serial
    #    steps on single-TC v5e/v6e.
    if tile_b is None:
        if B >= 4096:
            tile_b = 1024
        elif B >= 1024:
            tile_b = 512
        else:
            tile_b = max(8, _round_up(pl.cdiv(B, num_cores), 8))

    steps = pl.cdiv(B, tile_b)
    if num_cores > 1 and steps > 1:
        # balance v7x's two TensorCores: even step count on the parallel axis
        steps = _round_up(steps, num_cores)
    pad_B = steps * tile_b

    xp = jnp.pad(x, ((0, pad_B - B), (0, 0))).astype(cdt)

    flat = [pp["w0"], pp["b0"], pp["w1"], pp["b1"], pp["w2"], pp["b2"],
            pp["w3"], pp["b3"], pp["w4"], pp["b4"]]

    flops = 2 * pad_B * (INP_DIM * H0P + H0P * H1P + H1P * H2P
                         + H2P * OUTP + OUTP * OUTP)
    bytes_accessed = int(xp.size * xp.dtype.itemsize
                         + sum(int(a.size) * a.dtype.itemsize for a in flat)
                         + pad_B * OUTP * jnp.dtype(out_dtype).itemsize)
    cost = pl.CostEstimate(flops=flops, transcendentals=0,
                           bytes_accessed=bytes_accessed)

    compiler_params = pltpu.CompilerParams(
        dimension_semantics=("parallel",),
        # v5e's default scoped VMEM is 16 MiB; raise it for the big tiles.
        vmem_limit_bytes=(32 * 1024 * 1024) if tile_b >= 512 else None,
    )

    def _build_and_call(single_buffer_weights):
        def const_spec(a):
            # whole array resident in VMEM; constant index_map => no per-step
            # re-DMA.  Single-buffer it (the default 2-deep buffer is wasted).
            if single_buffer_weights:
                return pl.BlockSpec(a.shape, lambda i: (0, 0),
                                    pipeline_mode=pl.Buffered(1))
            return pl.BlockSpec(a.shape, lambda i: (0, 0))

        in_specs = [pl.BlockSpec((tile_b, INP_DIM), lambda i: (i, 0))]
        in_specs += [const_spec(a) for a in flat]
        out_spec = pl.BlockSpec((tile_b, OUTP), lambda i: (i, 0))  # lane-dense

        return pl.pallas_call(
            flood_kernel,
            out_shape=jax.ShapeDtypeStruct((pad_B, OUTP), out_dtype),
            grid_spec=pltpu.PrefetchScalarGridSpec(
                num_scalar_prefetch=0,
                grid=(steps,),
                in_specs=in_specs,
                out_specs=out_spec,
            ),
            compiler_params=compiler_params,
            cost_estimate=cost,
        )(xp, *flat)

    try:
        out = _build_and_call(True)
    except Exception:
        # TODO(synk): fall back to default double-buffered constant specs on
        # JAX versions that reject pipeline_mode=pl.Buffered(1).
        out = _build_and_call(False)

    return out[:B, :OUT_DIM]


# ----- deterministic parameter init (PyTorch-style shapes) --------------------
def init_params(key):
    ks = jax.random.split(key, 16)

    def linear(kw, kb, fan_in, fan_out):
        lim = 1.0 / jnp.sqrt(jnp.float32(fan_in))
        w = jax.random.uniform(kw, (fan_in, fan_out), jnp.float32, -lim, lim)
        b = jax.random.uniform(kb, (1, fan_out), jnp.float32, -lim, lim)
        return w, b

    p = {}
    p["w0"], p["b0"] = linear(ks[0], ks[1], EMBED_DIM, H0)     # layer0 fc_0
    p["w1"], p["b1"] = linear(ks[2], ks[3], H0, H1)            # layer1 linear
    p["w2"], p["b2"] = linear(ks[4], ks[5], H1, H2)            # layer2 linear
    p["w3"], p["b3"] = linear(ks[6], ks[7], H2, OUT_DIM)       # layer3 linear
    p["w4"], p["b4"] = linear(ks[8], ks[9], OUT_DIM, OUT_DIM)  # layerOut

    def bn(kg, kb, n):
        g = 1.0 + 0.1 * jax.random.normal(kg, (1, n), jnp.float32)
        b = 0.1 * jax.random.normal(kb, (1, n), jnp.float32)
        m = 0.05 * jax.random.normal(jax.random.fold_in(kg, 1), (1, n), jnp.float32)
        v = 1.0 + 0.1 * jax.random.uniform(jax.random.fold_in(kb, 1), (1, n), jnp.float32)
        return g, b, m, v

    p["g1"], p["be1"], p["m1"], p["v1"] = bn(ks[10], ks[11], H1)
    p["g2"], p["be2"], p["m2"], p["v2"] = bn(ks[12], ks[13], H2)
    p["g3"], p["be3"], p["m3"], p["v3"] = bn(ks[14], ks[15], OUT_DIM)
    return p


# ----- references for correctness checks ---------------------------------------
def reference_forward(x, p):
    """Original eval-mode forward, f32, BN unfolded."""
    def lr(h, w, b):
        return jnp.maximum(h @ w + b, 0.0)

    def bn(h, g, b, m, v):
        return (h - m) / jnp.sqrt(v + BN_EPS) * g + b

    h0 = lr(x, p["w0"], p["b0"])
    h1 = bn(lr(h0, p["w1"], p["b1"]), p["g1"], p["be1"], p["m1"], p["v1"])
    h2 = bn(lr(h1, p["w2"], p["b2"]), p["g2"], p["be2"], p["m2"], p["v2"])
    h3 = bn(lr(h2, p["w3"], p["b3"]), p["g3"], p["be3"], p["m3"], p["v3"])
    return h3 @ p["w4"] + p["b4"]


def folded_reference(x, pp):
    """Same folded/padded/bf16 math as the kernel, in plain JAX."""
    cdt = pp["w0"].dtype

    def lr(h, w, b):
        y = jnp.dot(h, w, preferred_element_type=jnp.float32) + b
        return jnp.maximum(y, 0.0).astype(cdt)

    h = x.astype(cdt)
    h = lr(h, pp["w0"], pp["b0"])
    h = lr(h, pp["w1"], pp["b1"])
    h = lr(h, pp["w2"], pp["b2"])
    h = lr(h, pp["w3"], pp["b3"])
    y = jnp.dot(h, pp["w4"], preferred_element_type=jnp.float32) + pp["b4"]
    return y[:, :OUT_DIM]


if __name__ == "__main__":
    key = jax.random.PRNGKey(0)
    kx, kp = jax.random.split(key)

    params = init_params(kp)
    # Parameter prep (BN fold, pad, bf16 cast) runs ONCE at "load" time.
    pp = prepare_params(params, jnp.bfloat16)

    # --- small batch: single tile per core, no forced extra grid steps -------
    B = 16
    x = jax.random.normal(kx, (B, EMBED_DIM), jnp.float32)
    out = jax.block_until_ready(flood_fc_with_attn(x, pp))
    assert out.shape == (B, OUT_DIM)

    # Tight check: plain-JAX replica of the exact folded/padded/bf16 kernel math.
    ref_folded = folded_reference(x, pp)
    assert jnp.allclose(out, ref_folded, atol=1e-3, rtol=1e-3), "kernel vs folded ref"

    # Semantic check: original f32 eval-mode forward (BN unfolded); looser
    # tolerance accounts only for the bf16 matmul inputs.
    ref = reference_forward(x, params)
    assert jnp.allclose(out, ref, atol=5e-2, rtol=5e-2), "kernel vs f32 ref"

    # --- larger batch: exercises the multi-step tiled (512-row) path ---------
    B2 = 1536
    x2 = jax.random.normal(kx, (B2, EMBED_DIM), jnp.float32)
    out2 = jax.block_until_ready(flood_fc_with_attn(x2, pp))
    assert out2.shape == (B2, OUT_DIM)
    assert jnp.allclose(out2, folded_reference(x2, pp), atol=1e-3, rtol=1e-3), \
        "tiled kernel vs folded ref"

    print("KERNEL_OK")
</pallas_src>

<mosaic_0001>
module attributes {stable_mosaic.version = 11 : i64} {
  func.func @flood_kernel(%arg0: i32, %arg1: memref<16x32xbf16, #tpu.memory_space<vmem>>, %arg2: memref<32x512xbf16, #tpu.memory_space<vmem>>, %arg3: memref<1x512xf32, #tpu.memory_space<vmem>>, %arg4: memref<512x512xbf16, #tpu.memory_space<vmem>>, %arg5: memref<1x512xf32, #tpu.memory_space<vmem>>, %arg6: memref<512x384xbf16, #tpu.memory_space<vmem>>, %arg7: memref<1x384xf32, #tpu.memory_space<vmem>>, %arg8: memref<384x128xbf16, #tpu.memory_space<vmem>>, %arg9: memref<1x128xf32, #tpu.memory_space<vmem>>, %arg10: memref<128x128xbf16, #tpu.memory_space<vmem>>, %arg11: memref<1x128xf32, #tpu.memory_space<vmem>>, %arg12: memref<16x128xf32, #tpu.memory_space<vmem>>) attributes {dimension_semantics = [#tpu.dimension_semantics<parallel>], iteration_bounds = array<i64: 1>, scalar_prefetch = 0 : i64, scratch_operands = 0 : i64, tpu.core_type = #tpu.core_type<tc>, window_params = [{transform_indices = @transform_0, window_bounds = array<i64: 16, 32>}, {pipeline_mode = #tpu.pipeline_mode<synchronous>, transform_indices = @transform_1, window_bounds = array<i64: 32, 512>}, {pipeline_mode = #tpu.pipeline_mode<synchronous>, transform_indices = @transform_2, window_bounds = array<i64: 1, 512>}, {pipeline_mode = #tpu.pipeline_mode<synchronous>, transform_indices = @transform_3, window_bounds = array<i64: 512, 512>}, {pipeline_mode = #tpu.pipeline_mode<synchronous>, transform_indices = @transform_4, window_bounds = array<i64: 1, 512>}, {pipeline_mode = #tpu.pipeline_mode<synchronous>, transform_indices = @transform_5, window_bounds = array<i64: 512, 384>}, {pipeline_mode = #tpu.pipeline_mode<synchronous>, transform_indices = @transform_6, window_bounds = array<i64: 1, 384>}, {pipeline_mode = #tpu.pipeline_mode<synchronous>, transform_indices = @transform_7, window_bounds = array<i64: 384, 128>}, {pipeline_mode = #tpu.pipeline_mode<synchronous>, transform_indices = @transform_8, window_bounds = array<i64: 1, 128>}, {pipeline_mode = #tpu.pipeline_mode<synchronous>, transform_indices = @transform_9, window_bounds = array<i64: 128, 128>}, {pipeline_mode = #tpu.pipeline_mode<synchronous>, transform_indices = @transform_10, window_bounds = array<i64: 1, 128>}, {transform_indices = @transform_11, window_bounds = array<i64: 16, 128>}]} {
    %c0 = arith.constant 0 : index
    %c0_0 = arith.constant 0 : index
    %0 = vector.load %arg1[%c0, %c0_0] : memref<16x32xbf16, #tpu.memory_space<vmem>>, vector<16x32xbf16>
    %c0_1 = arith.constant 0 : index
    %c0_2 = arith.constant 0 : index
    %1 = vector.load %arg2[%c0_1, %c0_2] : memref<32x512xbf16, #tpu.memory_space<vmem>>, vector<32x512xbf16>
    %cst = arith.constant dense<0.000000e+00> : vector<16x512xf32>
    %2 = tpu.matmul %0, %1, %cst {dimension_numbers = #tpu.dot_dimension_numbers<[1], [0], [0], [1], [0, 0, 1, 1], [], []>} : vector<16x32xbf16>, vector<32x512xbf16>, vector<16x512xf32> -> vector<16x512xf32>
    %c0_3 = arith.constant 0 : index
    %c0_4 = arith.constant 0 : index
    %3 = vector.load %arg3[%c0_3, %c0_4] : memref<1x512xf32, #tpu.memory_space<vmem>>, vector<1x512xf32>
    %4 = vector.broadcast %3 : vector<1x512xf32> to vector<16x512xf32>
    %5 = arith.addf %2, %4 : vector<16x512xf32>
    %cst_5 = arith.constant 0.000000e+00 : f32
    %6 = vector.broadcast %cst_5 : f32 to vector<16x512xf32>
    %7 = arith.maximumf %5, %6 : vector<16x512xf32>
    %8 = arith.truncf %7 : vector<16x512xf32> to vector<16x512xbf16>
    %c0_6 = arith.constant 0 : index
    %c0_7 = arith.constant 0 : index
    %9 = vector.load %arg4[%c0_6, %c0_7] : memref<512x512xbf16, #tpu.memory_space<vmem>>, vector<512x512xbf16>
    %cst_8 = arith.constant dense<0.000000e+00> : vector<16x512xf32>
    %10 = tpu.matmul %8, %9, %cst_8 {dimension_numbers = #tpu.dot_dimension_numbers<[1], [0], [0], [1], [0, 0, 1, 1], [], []>} : vector<16x512xbf16>, vector<512x512xbf16>, vector<16x512xf32> -> vector<16x512xf32>
    %c0_9 = arith.constant 0 : index
    %c0_10 = arith.constant 0 : index
    %11 = vector.load %arg5[%c0_9, %c0_10] : memref<1x512xf32, #tpu.memory_space<vmem>>, vector<1x512xf32>
    %12 = vector.broadcast %11 : vector<1x512xf32> to vector<16x512xf32>
    %13 = arith.addf %10, %12 : vector<16x512xf32>
    %cst_11 = arith.constant 0.000000e+00 : f32
    %14 = vector.broadcast %cst_11 : f32 to vector<16x512xf32>
    %15 = arith.maximumf %13, %14 : vector<16x512xf32>
    %16 = arith.truncf %15 : vector<16x512xf32> to vector<16x512xbf16>
    %c0_12 = arith.constant 0 : index
    %c0_13 = arith.constant 0 : index
    %17 = vector.load %arg6[%c0_12, %c0_13] : memref<512x384xbf16, #tpu.memory_space<vmem>>, vector<512x384xbf16>
    %cst_14 = arith.constant dense<0.000000e+00> : vector<16x384xf32>
    %18 = tpu.matmul %16, %17, %cst_14 {dimension_numbers = #tpu.dot_dimension_numbers<[1], [0], [0], [1], [0, 0, 1, 1], [], []>} : vector<16x512xbf16>, vector<512x384xbf16>, vector<16x384xf32> -> vector<16x384xf32>
    %c0_15 = arith.constant 0 : index
    %c0_16 = arith.constant 0 : index
    %19 = vector.load %arg7[%c0_15, %c0_16] : memref<1x384xf32, #tpu.memory_space<vmem>>, vector<1x384xf32>
    %20 = vector.broadcast %19 : vector<1x384xf32> to vector<16x384xf32>
    %21 = arith.addf %18, %20 : vector<16x384xf32>
    %cst_17 = arith.constant 0.000000e+00 : f32
    %22 = vector.broadcast %cst_17 : f32 to vector<16x384xf32>
    %23 = arith.maximumf %21, %22 : vector<16x384xf32>
    %24 = arith.truncf %23 : vector<16x384xf32> to vector<16x384xbf16>
    %c0_18 = arith.constant 0 : index
    %c0_19 = arith.constant 0 : index
    %25 = vector.load %arg8[%c0_18, %c0_19] : memref<384x128xbf16, #tpu.memory_space<vmem>>, vector<384x128xbf16>
    %cst_20 = arith.constant dense<0.000000e+00> : vector<16x128xf32>
    %26 = tpu.matmul %24, %25, %cst_20 {dimension_numbers = #tpu.dot_dimension_numbers<[1], [0], [0], [1], [0, 0, 1, 1], [], []>} : vector<16x384xbf16>, vector<384x128xbf16>, vector<16x128xf32> -> vector<16x128xf32>
    %c0_21 = arith.constant 0 : index
    %c0_22 = arith.constant 0 : index
    %27 = vector.load %arg9[%c0_21, %c0_22] : memref<1x128xf32, #tpu.memory_space<vmem>>, vector<1x128xf32>
    %28 = vector.broadcast %27 : vector<1x128xf32> to vector<16x128xf32>
    %29 = arith.addf %26, %28 : vector<16x128xf32>
    %cst_23 = arith.constant 0.000000e+00 : f32
    %30 = vector.broadcast %cst_23 : f32 to vector<16x128xf32>
    %31 = arith.maximumf %29, %30 : vector<16x128xf32>
    %32 = arith.truncf %31 : vector<16x128xf32> to vector<16x128xbf16>
    %c0_24 = arith.constant 0 : index
    %c0_25 = arith.constant 0 : index
    %33 = vector.load %arg10[%c0_24, %c0_25] : memref<128x128xbf16, #tpu.memory_space<vmem>>, vector<128x128xbf16>
    %cst_26 = arith.constant dense<0.000000e+00> : vector<16x128xf32>
    %34 = tpu.matmul %32, %33, %cst_26 {dimension_numbers = #tpu.dot_dimension_numbers<[1], [0], [0], [1], [0, 0, 1, 1], [], []>} : vector<16x128xbf16>, vector<128x128xbf16>, vector<16x128xf32> -> vector<16x128xf32>
    %c0_27 = arith.constant 0 : index
    %c0_28 = arith.constant 0 : index
    %35 = vector.load %arg11[%c0_27, %c0_28] : memref<1x128xf32, #tpu.memory_space<vmem>>, vector<1x128xf32>
    %36 = vector.broadcast %35 : vector<1x128xf32> to vector<16x128xf32>
    %37 = arith.addf %34, %36 : vector<16x128xf32>
    %c0_29 = arith.constant 0 : index
    %c0_30 = arith.constant 0 : index
    %38 = vector.load %arg12[%c0_29, %c0_30] : memref<16x128xf32, #tpu.memory_space<vmem>>, vector<16x128xf32>
    tpu.vector_store %arg12[%c0_29, %c0_30], %37 {strides = array<i32>} : memref<16x128xf32, #tpu.memory_space<vmem>>, vector<16x128xf32>,
    return
  }
  func.func @transform_0(%arg0: i32) -> (i32, i32) {
    %c0_i32 = arith.constant 0 : i32
    %c0_i32_0 = arith.constant 0 : i32
    return %arg0, %c0_i32 : i32, i32
  }
  func.func @transform_1(%arg0: i32) -> (i32, i32) {
    %c0_i32 = arith.constant 0 : i32
    %c0_i32_0 = arith.constant 0 : i32
    %c0_i32_1 = arith.constant 0 : i32
    return %c0_i32, %c0_i32_0 : i32, i32
  }
  func.func @transform_2(%arg0: i32) -> (i32, i32) {
    %c0_i32 = arith.constant 0 : i32
    %c0_i32_0 = arith.constant 0 : i32
    %c0_i32_1 = arith.constant 0 : i32
    return %c0_i32, %c0_i32_0 : i32, i32
  }
  func.func @transform_3(%arg0: i32) -> (i32, i32) {
    %c0_i32 = arith.constant 0 : i32
    %c0_i32_0 = arith.constant 0 : i32
    %c0_i32_1 = arith.constant 0 : i32
    return %c0_i32, %c0_i32_0 : i32, i32
  }
  func.func @transform_4(%arg0: i32) -> (i32, i32) {
    %c0_i32 = arith.constant 0 : i32
    %c0_i32_0 = arith.constant 0 : i32
    %c0_i32_1 = arith.constant 0 : i32
    return %c0_i32, %c0_i32_0 : i32, i32
  }
  func.func @transform_5(%arg0: i32) -> (i32, i32) {
    %c0_i32 = arith.constant 0 : i32
    %c0_i32_0 = arith.constant 0 : i32
    %c0_i32_1 = arith.constant 0 : i32
    return %c0_i32, %c0_i32_0 : i32, i32
  }
  func.func @transform_6(%arg0: i32) -> (i32, i32) {
    %c0_i32 = arith.constant 0 : i32
    %c0_i32_0 = arith.constant 0 : i32
    %c0_i32_1 = arith.constant 0 : i32
    return %c0_i32, %c0_i32_0 : i32, i32
  }
  func.func @transform_7(%arg0: i32) -> (i32, i32) {
    %c0_i32 = arith.constant 0 : i32
    %c0_i32_0 = arith.constant 0 : i32
    %c0_i32_1 = arith.constant 0 : i32
    return %c0_i32, %c0_i32_0 : i32, i32
  }
  func.func @transform_8(%arg0: i32) -> (i32, i32) {
    %c0_i32 = arith.constant 0 : i32
    %c0_i32_0 = arith.constant 0 : i32
    %c0_i32_1 = arith.constant 0 : i32
    return %c0_i32, %c0_i32_0 : i32, i32
  }
  func.func @transform_9(%arg0: i32) -> (i32, i32) {
    %c0_i32 = arith.constant 0 : i32
    %c0_i32_0 = arith.constant 0 : i32
    %c0_i32_1 = arith.constant 0 : i32
    return %c0_i32, %c0_i32_0 : i32, i32
  }
  func.func @transform_10(%arg0: i32) -> (i32, i32) {
    %c0_i32 = arith.constant 0 : i32
    %c0_i32_0 = arith.constant 0 : i32
    %c0_i32_1 = arith.constant 0 : i32
    return %c0_i32, %c0_i32_0 : i32, i32
  }
  func.func @transform_11(%arg0: i32) -> (i32, i32) {
    %c0_i32 = arith.constant 0 : i32
    %c0_i32_0 = arith.constant 0 : i32
    return %arg0, %c0_i32 : i32, i32
  }
}

module attributes {stable_mosaic.version = 11 : i64} {
  func.func @flood_kernel(%arg0: i32, %arg1: memref<16x32xbf16, #tpu.memory_space<vmem>>, %arg2: memref<32x512xbf16, #tpu.memory_space<vmem>>, %arg3: memref<1x512xf32, #tpu.memory_space<vmem>>, %arg4: memref<512x512xbf16, #tpu.memory_space<vmem>>, %arg5: memref<1x512xf32, #tpu.memory_space<vmem>>, %arg6: memref<512x384xbf16, #tpu.memory_space<vmem>>, %arg7: memref<1x384xf32, #tpu.memory_space<vmem>>, %arg8: memref<384x128xbf16, #tpu.memory_space<vmem>>, %arg9: memref<1x128xf32, #tpu.memory_space<vmem>>, %arg10: memref<128x128xbf16, #tpu.memory_space<vmem>>, %arg11: memref<1x128xf32, #tpu.memory_space<vmem>>, %arg12: memref<16x128xf32, #tpu.memory_space<vmem>>) attributes {dimension_semantics = [#tpu.dimension_semantics<parallel>], iteration_bounds = array<i64: 1>, scalar_prefetch = 0 : i64, scratch_operands = 0 : i64, tpu.core_type = #tpu.core_type<tc>, window_params = [{transform_indices = @transform_0, window_bounds = array<i64: 16, 32>}, {pipeline_mode = #tpu.pipeline_mode<synchronous>, transform_indices = @transform_1, window_bounds = array<i64: 32, 512>}, {pipeline_mode = #tpu.pipeline_mode<synchronous>, transform_indices = @transform_2, window_bounds = array<i64: 1, 512>}, {pipeline_mode = #tpu.pipeline_mode<synchronous>, transform_indices = @transform_3, window_bounds = array<i64: 512, 512>}, {pipeline_mode = #tpu.pipeline_mode<synchronous>, transform_indices = @transform_4, window_bounds = array<i64: 1, 512>}, {pipeline_mode = #tpu.pipeline_mode<synchronous>, transform_indices = @transform_5, window_bounds = array<i64: 512, 384>}, {pipeline_mode = #tpu.pipeline_mode<synchronous>, transform_indices = @transform_6, window_bounds = array<i64: 1, 384>}, {pipeline_mode = #tpu.pipeline_mode<synchronous>, transform_indices = @transform_7, window_bounds = array<i64: 384, 128>}, {pipeline_mode = #tpu.pipeline_mode<synchronous>, transform_indices = @transform_8, window_bounds = array<i64: 1, 128>}, {pipeline_mode = #tpu.pipeline_mode<synchronous>, transform_indices = @transform_9, window_bounds = array<i64: 128, 128>}, {pipeline_mode = #tpu.pipeline_mode<synchronous>, transform_indices = @transform_10, window_bounds = array<i64: 1, 128>}, {transform_indices = @transform_11, window_bounds = array<i64: 16, 128>}]} {
    %c0 = arith.constant 0 : index
    %c0_0 = arith.constant 0 : index
    %0 = vector.load %arg1[%c0, %c0_0] : memref<16x32xbf16, #tpu.memory_space<vmem>>, vector<16x32xbf16>
    %c0_1 = arith.constant 0 : index
    %c0_2 = arith.constant 0 : index
    %1 = vector.load %arg2[%c0_1, %c0_2] : memref<32x512xbf16, #tpu.memory_space<vmem>>, vector<32x512xbf16>
    %cst = arith.constant dense<0.000000e+00> : vector<16x512xf32>
    %2 = tpu.matmul %0, %1, %cst {dimension_numbers = #tpu.dot_dimension_numbers<[1], [0], [0], [1], [0, 0, 1, 1], [], []>} : vector<16x32xbf16>, vector<32x512xbf16>, vector<16x512xf32> -> vector<16x512xf32>
    %c0_3 = arith.constant 0 : index
    %c0_4 = arith.constant 0 : index
    %3 = vector.load %arg3[%c0_3, %c0_4] : memref<1x512xf32, #tpu.memory_space<vmem>>, vector<1x512xf32>
    %4 = vector.broadcast %3 : vector<1x512xf32> to vector<16x512xf32>
    %5 = arith.addf %2, %4 : vector<16x512xf32>
    %cst_5 = arith.constant 0.000000e+00 : f32
    %6 = vector.broadcast %cst_5 : f32 to vector<16x512xf32>
    %7 = arith.maximumf %5, %6 : vector<16x512xf32>
    %8 = arith.truncf %7 : vector<16x512xf32> to vector<16x512xbf16>
    %c0_6 = arith.constant 0 : index
    %c0_7 = arith.constant 0 : index
    %9 = vector.load %arg4[%c0_6, %c0_7] : memref<512x512xbf16, #tpu.memory_space<vmem>>, vector<512x512xbf16>
    %cst_8 = arith.constant dense<0.000000e+00> : vector<16x512xf32>
    %10 = tpu.matmul %8, %9, %cst_8 {dimension_numbers = #tpu.dot_dimension_numbers<[1], [0], [0], [1], [0, 0, 1, 1], [], []>} : vector<16x512xbf16>, vector<512x512xbf16>, vector<16x512xf32> -> vector<16x512xf32>
    %c0_9 = arith.constant 0 : index
    %c0_10 = arith.constant 0 : index
    %11 = vector.load %arg5[%c0_9, %c0_10] : memref<1x512xf32, #tpu.memory_space<vmem>>, vector<1x512xf32>
    %12 = vector.broadcast %11 : vector<1x512xf32> to vector<16x512xf32>
    %13 = arith.addf %10, %12 : vector<16x512xf32>
    %cst_11 = arith.constant 0.000000e+00 : f32
    %14 = vector.broadcast %cst_11 : f32 to vector<16x512xf32>
    %15 = arith.maximumf %13, %14 : vector<16x512xf32>
    %16 = arith.truncf %15 : vector<16x512xf32> to vector<16x512xbf16>
    %c0_12 = arith.constant 0 : index
    %c0_13 = arith.constant 0 : index
    %17 = vector.load %arg6[%c0_12, %c0_13] : memref<512x384xbf16, #tpu.memory_space<vmem>>, vector<512x384xbf16>
    %cst_14 = arith.constant dense<0.000000e+00> : vector<16x384xf32>
    %18 = tpu.matmul %16, %17, %cst_14 {dimension_numbers = #tpu.dot_dimension_numbers<[1], [0], [0], [1], [0, 0, 1, 1], [], []>} : vector<16x512xbf16>, vector<512x384xbf16>, vector<16x384xf32> -> vector<16x384xf32>
    %c0_15 = arith.constant 0 : index
    %c0_16 = arith.constant 0 : index
    %19 = vector.load %arg7[%c0_15, %c0_16] : memref<1x384xf32, #tpu.memory_space<vmem>>, vector<1x384xf32>
    %20 = vector.broadcast %19 : vector<1x384xf32> to vector<16x384xf32>
    %21 = arith.addf %18, %20 : vector<16x384xf32>
    %cst_17 = arith.constant 0.000000e+00 : f32
    %22 = vector.broadcast %cst_17 : f32 to vector<16x384xf32>
    %23 = arith.maximumf %21, %22 : vector<16x384xf32>
    %24 = arith.truncf %23 : vector<16x384xf32> to vector<16x384xbf16>
    %c0_18 = arith.constant 0 : index
    %c0_19 = arith.constant 0 : index
    %25 = vector.load %arg8[%c0_18, %c0_19] : memref<384x128xbf16, #tpu.memory_space<vmem>>, vector<384x128xbf16>
    %cst_20 = arith.constant dense<0.000000e+00> : vector<16x128xf32>
    %26 = tpu.matmul %24, %25, %cst_20 {dimension_numbers = #tpu.dot_dimension_numbers<[1], [0], [0], [1], [0, 0, 1, 1], [], []>} : vector<16x384xbf16>, vector<384x128xbf16>, vector<16x128xf32> -> vector<16x128xf32>
    %c0_21 = arith.constant 0 : index
    %c0_22 = arith.constant 0 : index
    %27 = vector.load %arg9[%c0_21, %c0_22] : memref<1x128xf32, #tpu.memory_space<vmem>>, vector<1x128xf32>
    %28 = vector.broadcast %27 : vector<1x128xf32> to vector<16x128xf32>
    %29 = arith.addf %26, %28 : vector<16x128xf32>
    %cst_23 = arith.constant 0.000000e+00 : f32
    %30 = vector.broadcast %cst_23 : f32 to vector<16x128xf32>
    %31 = arith.maximumf %29, %30 : vector<16x128xf32>
    %32 = arith.truncf %31 : vector<16x128xf32> to vector<16x128xbf16>
    %c0_24 = arith.constant 0 : index
    %c0_25 = arith.constant 0 : index
    %33 = vector.load %arg10[%c0_24, %c0_25] : memref<128x128xbf16, #tpu.memory_space<vmem>>, vector<128x128xbf16>
    %cst_26 = arith.constant dense<0.000000e+00> : vector<16x128xf32>
    %34 = tpu.matmul %32, %33, %cst_26 {dimension_numbers = #tpu.dot_dimension_numbers<[1], [0], [0], [1], [0, 0, 1, 1], [], []>} : vector<16x128xbf16>, vector<128x128xbf16>, vector<16x128xf32> -> vector<16x128xf32>
    %c0_27 = arith.constant 0 : index
    %c0_28 = arith.constant 0 : index
    %35 = vector.load %arg11[%c0_27, %c0_28] : memref<1x128xf32, #tpu.memory_space<vmem>>, vector<1x128xf32>
    %36 = vector.broadcast %35 : vector<1x128xf32> to vector<16x128xf32>
    %37 = arith.addf %34, %36 : vector<16x128xf32>
    %c0_29 = arith.constant 0 : index
    %c0_30 = arith.constant 0 : index
    %38 = vector.load %arg12[%c0_29, %c0_30] : memref<16x128xf32, #tpu.memory_space<vmem>>, vector<16x128xf32>
    tpu.vector_store %arg12[%c0_29, %c0_30], %37 {strides = array<i32>} : memref<16x128xf32, #tpu.memory_space<vmem>>, vector<16x128xf32>,
    return
  }
  func.func @transform_0(%arg0: i32) -> (i32, i32) {
    %c0_i32 = arith.constant 0 : i32
    %c0_i32_0 = arith.constant 0 : i32
    return %arg0, %c0_i32 : i32, i32
  }
  func.func @transform_1(%arg0: i32) -> (i32, i32) {
    %c0_i32 = arith.constant 0 : i32
    %c0_i32_0 = arith.constant 0 : i32
    %c0_i32_1 = arith.constant 0 : i32
    return %c0_i32, %c0_i32_0 : i32, i32
  }
  func.func @transform_2(%arg0: i32) -> (i32, i32) {
    %c0_i32 = arith.constant 0 : i32
    %c0_i32_0 = arith.constant 0 : i32
    %c0_i32_1 = arith.constant 0 : i32
    return %c0_i32, %c0_i32_0 : i32, i32
  }
  func.func @transform_3(%arg0: i32) -> (i32, i32) {
    %c0_i32 = arith.constant 0 : i32
    %c0_i32_0 = arith.constant 0 : i32
    %c0_i32_1 = arith.constant 0 : i32
    return %c0_i32, %c0_i32_0 : i32, i32
  }
  func.func @transform_4(%arg0: i32) -> (i32, i32) {
    %c0_i32 = arith.constant 0 : i32
    %c0_i32_0 = arith.constant 0 : i32
    %c0_i32_1 = arith.constant 0 : i32
    return %c0_i32, %c0_i32_0 : i32, i32
  }
  func.func @transform_5(%arg0: i32) -> (i32, i32) {
    %c0_i32 = arith.constant 0 : i32
    %c0_i32_0 = arith.constant 0 : i32
    %c0_i32_1 = arith.constant 0 : i32
    return %c0_i32, %c0_i32_0 : i32, i32
  }
  func.func @transform_6(%arg0: i32) -> (i32, i32) {
    %c0_i32 = arith.constant 0 : i32
    %c0_i32_0 = arith.constant 0 : i32
    %c0_i32_1 = arith.constant 0 : i32
    return %c0_i32, %c0_i32_0 : i32, i32
  }
  func.func @transform_7(%arg0: i32) -> (i32, i32) {
    %c0_i32 = arith.constant 0 : i32
    %c0_i32_0 = arith.constant 0 : i32
    %c0_i32_1 = arith.constant 0 : i32
    return %c0_i32, %c0_i32_0 : i32, i32
  }
  func.func @transform_8(%arg0: i32) -> (i32, i32) {
    %c0_i32 = arith.constant 0 : i32
    %c0_i32_0 = arith.constant 0 : i32
    %c0_i32_1 = arith.constant 0 : i32
    return %c0_i32, %c0_i32_0 : i32, i32
  }
  func.func @transform_9(%arg0: i32) -> (i32, i32) {
    %c0_i32 = arith.constant 0 : i32
    %c0_i32_0 = arith.constant 0 : i32
    %c0_i32_1 = arith.constant 0 : i32
    return %c0_i32, %c0_i32_0 : i32, i32
  }
  func.func @transform_10(%arg0: i32) -> (i32, i32) {
    %c0_i32 = arith.constant 0 : i32
    %c0_i32_0 = arith.constant 0 : i32
    %c0_i32_1 = arith.constant 0 : i32
    return %c0_i32, %c0_i32_0 : i32, i32
  }
  func.func @transform_11(%arg0: i32) -> (i32, i32) {
    %c0_i32 = arith.constant 0 : i32
    %c0_i32_0 = arith.constant 0 : i32
    return %arg0, %c0_i32 : i32, i32
  }
}

</mosaic_0001>

<bundles_post_ra>
// kernel: tpu_custom_call.1
= control target key start
LH: loop header
LB: loop body
LE: loop exit
PB: predicated region body
PF: predicated region fallthrough
CT: control target
= control target key end

     0   :  { %16 = vsyncpa [#allocation3], 0  ;;  %s3664_s0 = inlined_call_operand.hbm [shape: bf16[16,32], index: 0, kind: input, shape index: {}]   ;;  %s3665_s1 = inlined_call_operand.hbm [shape: bf16[32,512], index: 1, kind: input, shape index: {}]   ;;  %s3666_s2 = inlined_call_operand.hbm [shape: f32[1,512], index: 2, kind: input, shape index: {}]   ;;  %s3667_s3 = inlined_call_operand.hbm [shape: bf16[512,512], index: 3, kind: input, shape index: {}]   ;;  %s3668_s4 = inlined_call_operand.vmem [shape: f32[1,512], index: 4, kind: input, shape index: {}]   ;;  %s3669_s5 = inlined_call_operand.hbm [shape: bf16[512,384], index: 5, kind: input, shape index: {}]   ;;  %s3670_s6 = inlined_call_operand.vmem [shape: f32[1,384], index: 6, kind: input, shape index: {}]   ;;  %s3671_s7 = inlined_call_operand.hbm [shape: bf16[384,128], index: 7, kind: input, shape index: {}]   ;;  %s3672_s8 = inlined_call_operand.vmem [shape: f32[1,128], index: 8, kind: input, shape index: {}]   ;;  %s3673_s9 = inlined_call_operand.hbm [shape: bf16[128,128], index: 9, kind: input, shape index: {}]   ;;  %s3674_s10 = inlined_call_operand.vmem [shape: f32[1,128], index: 10, kind: input, shape index: {}]   ;;  %s3675_s11 = inlined_call_operand.hbm [shape: f32[16,128], index: 11, kind: output, shape index: {}]  }
   0x1   :  { %17 = vsyncpa [#allocation6], 0 }
   0x2   :  { %18 = vsyncpa [#allocation9], 0 }
   0x3   :  { %19 = vsyncpa [#allocation12], 0 }
   0x4   :  { %20 = vsyncpa [#allocation4], 0  ;;  %s3485_s17 = smov [#allocation5]  }
   0x5   :  { %s38_s18 = sshll.u32 %s3485_s17, 4  ;;  %s39_s18 = int_to_ptr.vmem [resolvable:$true] %s38_s18 }
   0x6   :  { %s3323_s19 = scalar_lea.vmem %s39_s18, 1024  ;;  %p3328_p1 = scmp.lt.s32.totalorder %s39_s18, %s39_s18 }
   0x7   :  { %p3324_p0 = scmp.ne.s32.totalorder %s39_s18, %s3323_s19  ;;  %p3329_p2 = scmp.lt.s32.totalorder %s3323_s19, %s3323_s19 }
   0x9   :  { %p3330_p3 = por %p3329_p2, %p3328_p1 }
   0xb   :  { %p3331_p4 = pnand %p3330_p3, %p3324_p0 }
   0xd   :  { %3334 = shalt.err (!%p3331_p4)
}
   0xe   :  { %s3486_s20 = smov 256   ;;  %s3487_s21 = smov 16  }
   0xf   :  { %44 = dma.hbm_to_vmem [thread:$0]  %s3665_s1, 1024, %s39_s18, [#allocation6], %s3486_s20, %s3486_s20, %s3487_s21  }
  0x10   :  { %s3488_s24 = smov [#allocation8]  }
  0x11   :  { %s60_s25 = sshll.u32 %s3488_s24, 4  ;;  %s61_s25 = int_to_ptr.vmem [resolvable:$true] %s60_s25 }
  0x12   :  { %s3343_s26 = scalar_lea.vmem %s61_s25, 16384  ;;  %p3348_p6 = scmp.lt.s32.totalorder %s61_s25, %s61_s25 }
  0x13   :  { %p3344_p5 = scmp.ne.s32.totalorder %s61_s25, %s3343_s26  ;;  %p3349_p7 = scmp.lt.s32.totalorder %s3343_s26, %s3343_s26 }
  0x15   :  { %p3350_p8 = por %p3349_p7, %p3348_p6 }
  0x17   :  { %p3351_p9 = pnand %p3350_p8, %p3344_p5 }
  0x19   :  { %3354 = shalt.err (!%p3351_p9)
}
  0x1a   :  { %66 = dma.hbm_to_vmem [thread:$0]  %s3667_s3, 16384, %s61_s25, [#allocation9], %s3486_s20, %s3486_s20, %s3487_s21  }
  0x1b   :  { %s3489_s29 = smov [#allocation11]   ;;  %s3490_s12 = smov [#allocation2]  }
  0x1c   :  { %s88_s30 = sshll.u32 %s3489_s29, 4  ;;  %s26_s13 = sshll.u32 %s3490_s12, 4  ;;  %s89_s30 = int_to_ptr.vmem [resolvable:$true] %s88_s30  ;;  %s27_s13 = int_to_ptr.vmem [resolvable:$true] %s26_s13 }
  0x1d   :  { %s3363_s1 = scalar_lea.vmem %s89_s30, 3072  ;;  %p3368_p11 = scmp.lt.s32.totalorder %s89_s30, %s89_s30 }
  0x1e   :  { %p3364_p10 = scmp.ne.s32.totalorder %s89_s30, %s3363_s1  ;;  %p3369_p12 = scmp.lt.s32.totalorder %s3363_s1, %s3363_s1 }
  0x20   :  { %p3370_p13 = por %p3369_p12, %p3368_p11 }
  0x22   :  { %p3371_p0 = pnand %p3370_p13, %p3364_p10 }
  0x24   :  { %3374 = shalt.err (!%p3371_p0)
}
  0x25   :  { %s3491_s14 = smov 64   ;;  %s3492_s15 = smov 4  }
  0x26   :  { %94 = dma.hbm_to_vmem [thread:$0]  %s3671_s7, 3072, %s89_s30, [#allocation12], %s3491_s14, %s3491_s14, %s3492_s15  }
  0x27   :  { %s3383_s17 = scalar_lea.vmem %s27_s13, 128  ;;  %p3388_p2 = scmp.lt.s32.totalorder %s27_s13, %s27_s13 }
  0x28   :  { %p3384_p1 = scmp.ne.s32.totalorder %s27_s13, %s3383_s17  ;;  %p3389_p3 = scmp.lt.s32.totalorder %s3383_s17, %s3383_s17 }
  0x2a   :  { %p3390_p4 = por %p3389_p3, %p3388_p2 }
  0x2c   :  { %p3391_p5 = pnand %p3390_p4, %p3384_p1 }
  0x2e   :  { %3394 = shalt.err (!%p3391_p5)
}
  0x2f   :  { %32 = dma.hbm_to_vmem [thread:$0]  %s3664_s0, 128, %s27_s13, [#allocation3], %s3491_s14, %s3491_s14, %s3492_s15  }
  0x30   :  { %s3493_s20 = smov [#allocation7]   ;;  %s3494_s22 = smov [#allocation10]  }
  0x31   :  { %s51_s21 = sshll.u32 %s3493_s20, 4  ;;  %s74_s23 = sshll.u32 %s3494_s22, 4  ;;  %s52_s21 = int_to_ptr.vmem [resolvable:$true] %s51_s21  ;;  %s75_s23 = int_to_ptr.vmem [resolvable:$true] %s74_s23 }
  0x32   :  { %s3403_s7 = scalar_lea.vmem %s52_s21, 64  ;;  %p3408_p7 = scmp.lt.s32.totalorder %s52_s21, %s52_s21 }
  0x33   :  { %p3404_p6 = scmp.ne.s32.totalorder %s52_s21, %s3403_s7  ;;  %p3409_p8 = scmp.lt.s32.totalorder %s3403_s7, %s3403_s7 }
  0x35   :  { %p3410_p9 = por %p3409_p8, %p3408_p7 }
  0x37   :  { %p3411_p10 = pnand %p3410_p9, %p3404_p6 }
  0x39   :  { %3414 = shalt.err (!%p3411_p10)
}
  0x3a   :  { %54 = dma.hbm_to_vmem [thread:$0]  %s3666_s2, 64, %s52_s21, [#allocation6]  }
  0x3b   :  { %s3423_s26 = scalar_lea.vmem %s75_s23, 12288  ;;  %p3428_p12 = scmp.lt.s32.totalorder %s75_s23, %s75_s23 }
  0x3c   :  { %p3424_p11 = scmp.ne.s32.totalorder %s75_s23, %s3423_s26  ;;  %p3429_p13 = scmp.lt.s32.totalorder %s3423_s26, %s3423_s26 }
  0x3e   :  { %p3430_p0 = por %p3429_p13, %p3428_p12 }
  0x40   :  { %p3431_p1 = pnand %p3430_p0, %p3424_p11 }
  0x42   :  { %3434 = shalt.err (!%p3431_p1)
}
  0x43   :  { %s3495_s0 = smov 192   ;;  %s3496_s27 = smov 12  }
  0x44   :  { %80 = dma.hbm_to_vmem [thread:$0]  %s3669_s5, 12288, %s75_s23, [#allocation9], %s3495_s0, %s3495_s0, %s3496_s27  }
  0x45   :  { %s3497_s30 = smov [#allocation13]  }
  0x46   :  { %s102_s12 = sshll.u32 %s3497_s30, 4  ;;  %s103_s12 = int_to_ptr.vmem [resolvable:$true] %s102_s12 }
  0x47   :  { %s3443_s13 = scalar_lea.vmem %s103_s12, 1024  ;;  %p3448_p3 = scmp.lt.s32.totalorder %s103_s12, %s103_s12 }
  0x48   :  { %p3444_p2 = scmp.ne.s32.totalorder %s103_s12, %s3443_s13  ;;  %p3449_p4 = scmp.lt.s32.totalorder %s3443_s13, %s3443_s13 }
  0x4a   :  { %p3450_p5 = por %p3449_p4, %p3448_p3 }
  0x4c   :  { %p3451_p6 = pnand %p3450_p5, %p3444_p2 }
  0x4e   :  { %3454 = shalt.err (!%p3451_p6)
}
  0x4f   :  { %108 = dma.hbm_to_vmem [thread:$0]  %s3673_s9, 1024, %s103_s12, [#allocation12], %s3491_s14, %s3491_s14, %s3492_s15  }
  0x50   :  { %3475 = dma.done.wait [#allocation3], 128  }
  0x51   :  { %3476 = vsyncadd [#allocation3], 4294967168 }
  0x52   :  { %3477 = dma.done.wait [#allocation6], 1088  }
  0x53   :  { %3478 = vsyncadd [#allocation6], 4294966208 }
  0x54   :  { %3479 = dma.done.wait [#allocation9], 28672  }
  0x55   :  { %3480 = vsyncadd [#allocation9], 4294938624 }
  0x56   :  { %3481 = dma.done.wait [#allocation12], 4096  }
  0x57   :  { %3482 = vsyncadd [#allocation12], 4294963200  ;;  %v3498_v0 = vmov 0   ;;  %v2950_v1 = vld [vmem:[#allocation5 + $0x24] ss:$16 sps:$4 sm:$0xff]   ;;  %v2956_v6 = vld [vmem:[#allocation2] sm:$0xff]  }
  0x58   :  { %246 = vmatprep.mubr.bf16.mxu1 %v3498_v0  ;;  %v2952_v2 = vld [vmem:[#allocation5 + $0x20] ss:$16 sps:$4 sm:$0xff]   ;;  %226 = vmatprep.subr.bf16.mxu1 %v2950_v1  ;;  %v2953_v3 = vld [vmem:[#allocation5 + $0x4] ss:$16 sps:$4 sm:$0xff]   ;;  %v2959_v5 = vld [vmem:[#allocation5 + $0x2c] ss:$16 sps:$4 sm:$0xff]  }
  0x59   :  { %227 = vmatpush1.bf16.msra.mxu1 %v2952_v2  ;;  %v2955_v4 = vld [vmem:[#allocation5] ss:$16 sps:$4 sm:$0xff]   ;;  %v2957_v7 = vld [vmem:[#allocation5 + $0x28] ss:$16 sps:$4 sm:$0xff]   ;;  %vm210_vm0 = vcmask 261120   ;;  %vm3500_vm1 = vmmov 0  }
  0x5a   :  { %228 = vmatprep.subr.bf16.mxu1 %v2953_v3  ;;  %v2963_v8 = vld [vmem:[#allocation8 + $0xe4] ss:$16 sps:$4 sm:$0xff]   ;;  %v2965_v9 = vld [vmem:[#allocation8 + $0xe0] ss:$16 sps:$4 sm:$0xff]   ;;  %v2962_v10 = vld [vmem:[#allocation5 + $0xc] ss:$16 sps:$4 sm:$0xff]  }
  0x5b   :  { %v2966_v11 = vld [vmem:[#allocation8 + $0xc4] ss:$16 sps:$4 sm:$0xff]   ;;  %1102 = vmatprep.subr.bf16.mxu0 %v2963_v8  ;;  %v2968_v12 = vld [vmem:[#allocation8 + $0xc0] ss:$16 sps:$4 sm:$0xff]  }
  0x5c   :  { %1103 = vmatpush1.bf16.msra.mxu0 %v2965_v9  ;;  %v2960_v13 = vld [vmem:[#allocation5 + $0x8] ss:$16 sps:$4 sm:$0xff]   ;;  %v2971_v16 = vld [vmem:[#allocation8 + $0x2e0] ss:$16 sps:$4 sm:$0xff]  }
  0x5d   :  { %229 = vmatpush1.bf16.msra.mxu1 %v2955_v4  ;;  %v2969_v14 = vld [vmem:[#allocation8 + $0xa4] ss:$16 sps:$4 sm:$0xff]   ;;  %1104 = vmatprep.subr.bf16.mxu0 %v2966_v11  ;;  %v2974_v17 = vld [vmem:[#allocation8 + $0xa0] ss:$16 sps:$4 sm:$0xff]   ;;  %v3070_v11 = vld [vmem:[#allocation8 + $0x2ec] ss:$16 sps:$4 sm:$0xff]  }
  0x5e   :  { %269 = vmatprep.subr.bf16.mxu1 %v2959_v5  ;;  %v2973_v15 = vld [vmem:[#allocation8 + $0x2e4] ss:$16 sps:$4 sm:$0xff]   ;;  %v2980_v20 = vld [vmem:[#allocation8 + $0x80] ss:$16 sps:$4 sm:$0xff]  }
  0x5f   :  { %v2975_v18 = vld [vmem:[#allocation8 + $0x84] ss:$16 sps:$4 sm:$0xff]   ;;  %v2977_v21 = vld [vmem:[#allocation8 + $0x2c0] ss:$16 sps:$4 sm:$0xff]  }
  0x60   :  { %2547 = vmatmul.mubr.msk.bf16.vlgmr.msra.gmra.mxu1 %vm210_vm0, %v2956_v6  ;;  %1105 = vmatpush1.bf16.msra.mxu0 %v2968_v12  ;;  %v2979_v19 = vld [vmem:[#allocation8 + $0x2c4] ss:$16 sps:$4 sm:$0xff]   ;;  %v2983_v24 = vld [vmem:[#allocation8 + $0x2a0] ss:$16 sps:$4 sm:$0xff]   ;;  %v145_v12 = vlaneseq }
  0x61   :  { %270 = vmatpush1.bf16.msra.mxu1 %v2957_v7  ;;  %289 = vmatprep.mubr.bf16.mxu1 %v3498_v0  ;;  %v2981_v22 = vld [vmem:[#allocation8 + $0x64] ss:$16 sps:$4 sm:$0xff]   ;;  %v2986_v25 = vld [vmem:[#allocation8 + $0x60] ss:$16 sps:$4 sm:$0xff]   ;;  %v3058_v7 = vld [vmem:[#allocation8 + $0xec] ss:$16 sps:$4 sm:$0xff]  }
  0x62   :  { %271 = vmatprep.subr.bf16.mxu1 %v2962_v10  ;;  %1106 = vmatprep.subr.bf16.mxu0 %v2969_v14  ;;  %v2985_v23 = vld [vmem:[#allocation8 + $0x2a4] ss:$16 sps:$4 sm:$0xff]   ;;  %v2992_v28 = vld [vmem:[#allocation8 + $0x40] ss:$16 sps:$4 sm:$0xff]  }
  0x63   :  { %v2987_v26 = vld [vmem:[#allocation8 + $0x44] ss:$16 sps:$4 sm:$0xff]   ;;  %v2989_v29 = vld [vmem:[#allocation8 + $0x280] ss:$16 sps:$4 sm:$0xff]  }
  0x64   :  { %1107 = vmatpush1.bf16.msra.mxu0 %v2974_v17  ;;  %v2991_v27 = vld [vmem:[#allocation8 + $0x284] ss:$16 sps:$4 sm:$0xff]   ;;  %v2995_v32 = vld [vmem:[#allocation8 + $0x260] ss:$16 sps:$4 sm:$0xff]  }
  0x65   :  { %272 = vmatpush1.bf16.msra.mxu1 %v2960_v13  ;;  %1108 = vmatprep.subr.bf16.mxu0 %v2975_v18  ;;  %v2993_v30 = vld [vmem:[#allocation8 + $0x24] ss:$16 sps:$4 sm:$0xff]   ;;  %v2998_v33 = vld [vmem:[#allocation8 + $0x20] ss:$16 sps:$4 sm:$0xff]   ;;  %v3596_v13 = vshrl.u32 %v145_v12, 7 }
  0x66   :  { %1145 = vmatprep.subr.bf16.mxu1 %v2973_v15  ;;  %v2997_v31 = vld [vmem:[#allocation8 + $0x264] ss:$16 sps:$4 sm:$0xff]   ;;  %v3004_v36 = vld [vmem:[#allocation8] ss:$16 sps:$4 sm:$0xff]   ;;  %v3098_v12 = vld [vmem:[#allocation8 + $0x248] ss:$16 sps:$4 sm:$0xff]  }
  0x67   :  { %v2999_v34 = vld [vmem:[#allocation8 + $0x4] ss:$16 sps:$4 sm:$0xff]   ;;  %v3001_v37 = vld [vmem:[#allocation8 + $0x240] ss:$16 sps:$4 sm:$0xff]   ;;  %v3599_v14 = vsub.s32 1, %v3596_v13  ;;  %v3602_v15 = vsub.s32 0, %v3596_v13 }
  0x68   :  { %2548 = vmatmul.mubr.msk.bf16.vlgmr.msra.gmra.mxu1 %vm210_vm0, %v2956_v6  ;;  %1109 = vmatpush1.bf16.msra.mxu0 %v2980_v20  ;;  %v3003_v35 = vld [vmem:[#allocation8 + $0x244] ss:$16 sps:$4 sm:$0xff]   ;;  %v3007_v40 = vld [vmem:[#allocation8 + $0x220] ss:$16 sps:$4 sm:$0xff]  }
  0x69   :  { %1146 = vmatpush1.bf16.msra.mxu1 %v2971_v16  ;;  %1110 = vmatprep.subr.bf16.mxu0 %v2981_v22  ;;  %v3005_v38 = vld [vmem:[#allocation8 + $0x1e4] ss:$16 sps:$4 sm:$0xff]   ;;  %v3010_v41 = vld [vmem:[#allocation8 + $0x1e0] ss:$16 sps:$4 sm:$0xff]   ;;  %v143_v16 = vld [vmem:[#allocation7] sm:$0xf] }
  0x6a   :  { %1147 = vmatprep.subr.bf16.mxu1 %v2979_v19  ;;  %v3009_v39 = vld [vmem:[#allocation8 + $0x224] ss:$16 sps:$4 sm:$0xff]   ;;  %v3016_v44 = vld [vmem:[#allocation8 + $0x1c0] ss:$16 sps:$4 sm:$0xff]   ;;  %v152_v18 = vrot.slane %v143_v16, %v3599_v14  ;;  %v148_v19 = vrot.slane %v143_v16, %v3602_v15 }
  0x6b   :  { %v3011_v42 = vld [vmem:[#allocation8 + $0x1c4] ss:$16 sps:$4 sm:$0xff]   ;;  %v3013_v45 = vld [vmem:[#allocation8 + $0x200] ss:$16 sps:$4 sm:$0xff]  }
  0x6c   :  { %1111 = vmatpush1.bf16.msra.mxu0 %v2986_v25  ;;  %v3015_v43 = vld [vmem:[#allocation8 + $0x204] ss:$16 sps:$4 sm:$0xff]   ;;  %v3022_v48 = vld [vmem:[#allocation8 + $0x1a0] ss:$16 sps:$4 sm:$0xff]  }
  0x6d   :  { %1148 = vmatpush1.bf16.msra.mxu1 %v2977_v21  ;;  %1112 = vmatprep.subr.bf16.mxu0 %v2987_v26  ;;  %v3017_v46 = vld [vmem:[#allocation8 + $0x1a4] ss:$16 sps:$4 sm:$0xff]   ;;  %v3019_v49 = vld [vmem:[#allocation8 + $0x3e0] ss:$16 sps:$4 sm:$0xff]  }
  0x6e   :  { %1149 = vmatprep.subr.bf16.mxu1 %v2985_v23  ;;  %v3021_v47 = vld [vmem:[#allocation8 + $0x3e4] ss:$16 sps:$4 sm:$0xff]   ;;  %v3028_v52 = vld [vmem:[#allocation8 + $0x180] ss:$16 sps:$4 sm:$0xff]  }
  0x6f   :  { %v3023_v50 = vld [vmem:[#allocation8 + $0x184] ss:$16 sps:$4 sm:$0xff]   ;;  %v3025_v53 = vld [vmem:[#allocation8 + $0x3c0] ss:$16 sps:$4 sm:$0xff]  }
  0x70   :  { %1113 = vmatpush1.bf16.msra.mxu0 %v2992_v28  ;;  %v3027_v51 = vld [vmem:[#allocation8 + $0x3c4] ss:$16 sps:$4 sm:$0xff]   ;;  %v3034_v56 = vld [vmem:[#allocation8 + $0x160] ss:$16 sps:$4 sm:$0xff]  }
  0x71   :  { %1150 = vmatpush1.bf16.msra.mxu1 %v2983_v24  ;;  %1114 = vmatprep.subr.bf16.mxu0 %v2993_v30  ;;  %v3029_v54 = vld [vmem:[#allocation8 + $0x164] ss:$16 sps:$4 sm:$0xff]   ;;  %v3031_v57 = vld [vmem:[#allocation8 + $0x3a0] ss:$16 sps:$4 sm:$0xff]   ;;  %v159_v24 = vsub.s32 3, %v3596_v13 }
  0x72   :  { %1151 = vmatprep.subr.bf16.mxu1 %v2991_v27  ;;  %v3033_v55 = vld [vmem:[#allocation8 + $0x3a4] ss:$16 sps:$4 sm:$0xff]   ;;  %v3037_v60 = vld [vmem:[#allocation8 + $0x380] ss:$16 sps:$4 sm:$0xff]   ;;  %v3608_v27 = vsub.s32 2, %v3596_v13 }
  0x73   :  { %v3035_v58 = vld [vmem:[#allocation8 + $0x144] ss:$16 sps:$4 sm:$0xff]   ;;  %v3040_v61 = vld [vmem:[#allocation8 + $0x140] ss:$16 sps:$4 sm:$0xff]  }
  0x74   :  { %1115 = vmatpush1.bf16.msra.mxu0 %v2998_v33  ;;  %v3039_v59 = vld [vmem:[#allocation8 + $0x384] ss:$16 sps:$4 sm:$0xff]   ;;  %v3043_v0 = vld [vmem:[#allocation8 + $0x360] ss:$16 sps:$4 sm:$0xff]   ;;  %v160_v33 = vrot.slane %v143_v16, %v159_v24 }
  0x75   :  { %1152 = vmatpush1.bf16.msra.mxu1 %v2989_v29  ;;  %1116 = vmatprep.subr.bf16.mxu0 %v2999_v34  ;;  %v3041_v62 = vld [vmem:[#allocation8 + $0x124] ss:$16 sps:$4 sm:$0xff]   ;;  %v3046_v1 = vld [vmem:[#allocation8 + $0x120] ss:$16 sps:$4 sm:$0xff]  }
  0x76   :  { %1153 = vmatprep.subr.bf16.mxu1 %v2997_v31  ;;  %v3045_v63 = vld [vmem:[#allocation8 + $0x364] ss:$16 sps:$4 sm:$0xff]   ;;  %v3049_v4 = vld [vmem:[#allocation8 + $0x340] ss:$16 sps:$4 sm:$0xff]  }
  0x77   :  { %v3047_v2 = vld [vmem:[#allocation8 + $0x104] ss:$16 sps:$4 sm:$0xff]   ;;  %v3052_v5 = vld [vmem:[#allocation8 + $0x100] ss:$16 sps:$4 sm:$0xff]  }
  0x78   :  { %1117 = vmatpush1.bf16.msra.mxu0 %v3004_v36  ;;  %v3051_v3 = vld [vmem:[#allocation8 + $0x344] ss:$16 sps:$4 sm:$0xff]   ;;  %v3053_v8 = vld [vmem:[#allocation8 + $0x320] ss:$16 sps:$4 sm:$0xff]  }
  0x79   :  { %1154 = vmatpush1.bf16.msra.mxu1 %v2995_v32  ;;  %1118 = vmatprep.subr.bf16.mxu0 %v3005_v38  ;;  %v3055_v6 = vld [vmem:[#allocation8 + $0x324] ss:$16 sps:$4 sm:$0xff]   ;;  %v3059_v10 = vld [vmem:[#allocation8 + $0x300] ss:$16 sps:$4 sm:$0xff]   ;;  %v3056_v38 = vld [vmem:[#allocation8 + $0xe8] ss:$16 sps:$4 sm:$0xff]  }
  0x7a   :  { %1155 = vmatprep.subr.bf16.mxu1 %v3003_v35  ;;  %v3061_v9 = vld [vmem:[#allocation8 + $0x304] ss:$16 sps:$4 sm:$0xff]   ;;  %v156_v35 = vrot.slane %v143_v16, %v3608_v27  ;;  %v3103_v16 = vld [vmem:[#allocation8 + $0x1ec] ss:$16 sps:$4 sm:$0xff]  }
  0x7c   :  { %1119 = vmatpush2.bf16.msra.mxu0 %v3010_v41  ;;  %v3064_v41 = vld [vmem:[#allocation8 + $0xcc] ss:$16 sps:$4 sm:$0xff]  }
  0x7d   :  { %1156 = vmatpush1.bf16.msra.mxu1 %v3001_v37  ;;  %1120 = vmatprep.subr.bf16.mxu0 %v3011_v42 }
  0x7e   :  { %1157 = vmatprep.subr.bf16.mxu1 %v3009_v39 }
  0x80   :  { %1121 = vmatpush2.bf16.msra.mxu0 %v3016_v44 }
  0x81   :  { %1158 = vmatpush1.bf16.msra.mxu1 %v3007_v40  ;;  %1122 = vmatprep.subr.bf16.mxu0 %v3017_v46 }
  0x82   :  { %1159 = vmatprep.subr.bf16.mxu1 %v3015_v43 }
  0x84   :  { %1123 = vmatpush2.bf16.msra.mxu0 %v3022_v48 }
  0x85   :  { %1160 = vmatpush1.bf16.msra.mxu1 %v3013_v45  ;;  %1124 = vmatprep.subr.bf16.mxu0 %v3023_v50 }
  0x86   :  { %1161 = vmatprep.subr.bf16.mxu1 %v3021_v47  ;;  %v3062_v47 = vld [vmem:[#allocation8 + $0xc8] ss:$16 sps:$4 sm:$0xff]  }
  0x88   :  { %1125 = vmatpush2.bf16.msra.mxu0 %v3028_v52 }
  0x89   :  { %1162 = vmatpush2.bf16.msra.mxu1 %v3019_v49  ;;  %1126 = vmatprep.subr.bf16.mxu0 %v3029_v54  ;;  %v3067_v49 = vld [vmem:[#allocation8 + $0xac] ss:$16 sps:$4 sm:$0xff]   ;;  %v3065_v54 = vld [vmem:[#allocation8 + $0xa8] ss:$16 sps:$4 sm:$0xff]  }
  0x8a   :  { %1163 = vmatprep.subr.bf16.mxu1 %v3027_v51 }
  0x8c   :  { %1127 = vmatpush2.bf16.msra.mxu0 %v3034_v56 }
  0x8d   :  { %1164 = vmatpush2.bf16.msra.mxu1 %v3025_v53  ;;  %1128 = vmatprep.subr.bf16.mxu0 %v3035_v58  ;;  %v3076_v58 = vld [vmem:[#allocation8 + $0x2cc] ss:$16 sps:$4 sm:$0xff]  }
  0x8e   :  { %1165 = vmatprep.subr.bf16.mxu1 %v3033_v55  ;;  %v3068_v55 = vld [vmem:[#allocation8 + $0x2e8] ss:$16 sps:$4 sm:$0xff]  }
  0x90   :  { %1129 = vmatpush2.bf16.msra.mxu0 %v3040_v61  ;;  %v3079_v61 = vld [vmem:[#allocation8 + $0x6c] ss:$16 sps:$4 sm:$0xff]  }
  0x91   :  { %1166 = vmatpush2.bf16.msra.mxu1 %v3031_v57  ;;  %1130 = vmatprep.subr.bf16.mxu0 %v3041_v62  ;;  %v3073_v57 = vld [vmem:[#allocation8 + $0x8c] ss:$16 sps:$4 sm:$0xff]  }
  0x92   :  { %1167 = vmatprep.subr.bf16.mxu1 %v3039_v59  ;;  %v3071_v59 = vld [vmem:[#allocation8 + $0x88] ss:$16 sps:$4 sm:$0xff]   ;;  %v3082_v62 = vld [vmem:[#allocation8 + $0x2ac] ss:$16 sps:$4 sm:$0xff]  }
  0x94   :  { %1131 = vmatpush2.bf16.msra.mxu0 %v3046_v1  ;;  %v3085_v1 = vld [vmem:[#allocation8 + $0x4c] ss:$16 sps:$4 sm:$0xff]  }
  0x95   :  { %1168 = vmatpush2.bf16.msra.mxu1 %v3037_v60  ;;  %1132 = vmatprep.subr.bf16.mxu0 %v3047_v2  ;;  %v3074_v60 = vld [vmem:[#allocation8 + $0x2c8] ss:$16 sps:$4 sm:$0xff]   ;;  %v3088_v2 = vld [vmem:[#allocation8 + $0x28c] ss:$16 sps:$4 sm:$0xff]  }
  0x96   :  { %1169 = vmatprep.subr.bf16.mxu1 %v3045_v63  ;;  %v3077_v63 = vld [vmem:[#allocation8 + $0x68] ss:$16 sps:$4 sm:$0xff]  }
  0x98   :  { %1133 = vmatpush2.bf16.msra.mxu0 %v3052_v5  ;;  %v3091_v5 = vld [vmem:[#allocation8 + $0x2c] ss:$16 sps:$4 sm:$0xff]  }
  0x99   :  { %1170 = vmatpush2.bf16.msra.mxu1 %v3043_v0  ;;  %1188 = vmatprep.subr.bf16.mxu0 %v3058_v7  ;;  %v3080_v0 = vld [vmem:[#allocation8 + $0x2a8] ss:$16 sps:$4 sm:$0xff]  }
  0x9a   :  { %1171 = vmatprep.subr.bf16.mxu1 %v3051_v3  ;;  %v3083_v3 = vld [vmem:[#allocation8 + $0x48] ss:$16 sps:$4 sm:$0xff]  }
  0x9b   :  { %v3089_v7 = vld [vmem:[#allocation8 + $0x28] ss:$16 sps:$4 sm:$0xff]  }
  0x9d   :  { %1172 = vmatpush2.bf16.msra.mxu1 %v3049_v4  ;;  %v3086_v4 = vld [vmem:[#allocation8 + $0x288] ss:$16 sps:$4 sm:$0xff]  }
  0x9e   :  { %1173 = vmatprep.subr.bf16.mxu1 %v3055_v6  ;;  %v3094_v6 = vld [vmem:[#allocation8 + $0x26c] ss:$16 sps:$4 sm:$0xff]  }
  0xa1   :  { %1174 = vmatpush2.bf16.msra.mxu1 %v3053_v8  ;;  %v3092_v8 = vld [vmem:[#allocation8 + $0x268] ss:$16 sps:$4 sm:$0xff]  }
  0xa2   :  { %1175 = vmatprep.subr.bf16.mxu1 %v3061_v9  ;;  %v3097_v9 = vld [vmem:[#allocation8 + $0xc] ss:$16 sps:$4 sm:$0xff]  }
  0xa5   :  { %1176 = vmatpush2.bf16.msra.mxu1 %v3059_v10  ;;  %v3100_v10 = vld [vmem:[#allocation8 + $0x24c] ss:$16 sps:$4 sm:$0xff]  }
  0xa6   :  { %1231 = vmatprep.subr.bf16.mxu1 %v3070_v11  ;;  %v3095_v11 = vld [vmem:[#allocation8 + $0x8] ss:$16 sps:$4 sm:$0xff]  }
 0x120   :  { %v248_v17 = vpop.f32.mrf.mxu1 }
 0x121   :  { %v249_v25 = vadd.f32 %v248_v17, %v148_v19  ;;  %v3106_v17 = vld [vmem:[#allocation8 + $0x22c] ss:$16 sps:$4 sm:$0xff]  }
 0x122   :  { %v250_v20 = vpop.f32.mrf.mxu1 }
 0x123   :  { %v251_v22 = vadd.f32 %v250_v20, %v152_v18  ;;  %v300_v34 = vmax.f32 %v249_v25, 0.0  ;;  %v3109_v20 = vld [vmem:[#allocation8 + $0x1cc] ss:$16 sps:$4 sm:$0xff]  }
 0x124   :  { %v252_v21 = vpop.f32.mrf.mxu1  ;;  %v3115_v25 = vld [vmem:[#allocation8 + $0x1ac] ss:$16 sps:$4 sm:$0xff]  }
 0x125   :  { %v253_v23 = vadd.f32 %v252_v21, %v148_v19  ;;  %v301_v31 = vmax.f32 %v251_v22, 0.0  ;;  %v3104_v19 = vld [vmem:[#allocation8 + $0x228] ss:$16 sps:$4 sm:$0xff]   ;;  %v3112_v21 = vld [vmem:[#allocation8 + $0x20c] ss:$16 sps:$4 sm:$0xff]  }
 0x126   :  { %v254_v26 = vpop.f32.mrf.mxu1  ;;  %v3107_v22 = vld [vmem:[#allocation8 + $0x1c8] ss:$16 sps:$4 sm:$0xff]  }
 0x127   :  { %v255_v28 = vadd.f32 %v254_v26, %v152_v18  ;;  %v304_v29 = vmax.f32 %v253_v23, 0.0  ;;  %v3101_v18 = vld [vmem:[#allocation8 + $0x1e8] ss:$16 sps:$4 sm:$0xff]   ;;  %v3118_v26 = vld [vmem:[#allocation8 + $0x3ec] ss:$16 sps:$4 sm:$0xff]  }
 0x128   :  { %v291_v30 = vpop.f32.mrf.mxu1  ;;  %v3110_v23 = vld [vmem:[#allocation8 + $0x208] ss:$16 sps:$4 sm:$0xff]  }
 0x129   :  { %v305_v32 = vmax.f32 %v255_v28, 0.0  ;;  %v3613_v39 = vpack.c.bf16 %v304_v29, %v300_v34  ;;  %v292_v44 = vadd.f32 %v291_v30, %v156_v35  ;;  %v3113_v28 = vld [vmem:[#allocation8 + $0x1a8] ss:$16 sps:$4 sm:$0xff]   ;;  %v3121_v30 = vld [vmem:[#allocation8 + $0x18c] ss:$16 sps:$4 sm:$0xff]  }
 0x12a   :  { %v293_v36 = vpop.f32.mrf.mxu1  ;;  %v3116_v29 = vld [vmem:[#allocation8 + $0x3e8] ss:$16 sps:$4 sm:$0xff]   ;;  %v3127_v34 = vld [vmem:[#allocation8 + $0x16c] ss:$16 sps:$4 sm:$0xff]  }
 0x12b   :  { %v309_v37 = vpack.c.bf16 %v305_v32, %v301_v31  ;;  %v294_v42 = vadd.f32 %v293_v36, %v160_v33  ;;  %v302_v52 = vmax.f32 %v292_v44, 0.0  ;;  %v3124_v31 = vld [vmem:[#allocation8 + $0x3cc] ss:$16 sps:$4 sm:$0xff]   ;;  %v3119_v32 = vld [vmem:[#allocation8 + $0x188] ss:$16 sps:$4 sm:$0xff]  }
 0x12c   :  { %v295_v40 = vpop.f32.mrf.mxu1  ;;  %v3125_v36 = vld [vmem:[#allocation8 + $0x168] ss:$16 sps:$4 sm:$0xff]   ;;  %v3142_v44 = vld [vmem:[#allocation8 + $0x36c] ss:$16 sps:$4 sm:$0xff]  }
 0x12d   :  { %v296_v43 = vadd.f32 %v295_v40, %v156_v35  ;;  %1134 = vmatprep.mubr.bf16.mxu0 %v309_v37  ;;  %v303_v50 = vmax.f32 %v294_v42, 0.0  ;;  %v3130_v35 = vld [vmem:[#allocation8 + $0x3ac] ss:$16 sps:$4 sm:$0xff]   ;;  %v3134_v42 = vld [vmem:[#allocation8 + $0x388] ss:$16 sps:$4 sm:$0xff]  }
 0x12e   :  { %v297_v45 = vpop.f32.mrf.mxu1  ;;  %1135 = vmatmul.mubr.bf16.vlgmr.msra.gmra.mxu0 %v3613_v39  ;;  %v3136_v40 = vld [vmem:[#allocation8 + $0x38c] ss:$16 sps:$4 sm:$0xff]  }
 0x12f   :  { %v298_v46 = vadd.f32 %v297_v45, %v160_v33  ;;  %1189 = vmatpush1.bf16.msra.mxu0 %v3056_v38  ;;  %1220 = vmatprep.mubr.bf16.mxu0 %v309_v37  ;;  %v306_v48 = vmax.f32 %v296_v43, 0.0  ;;  %v3122_v33 = vld [vmem:[#allocation8 + $0x3c8] ss:$16 sps:$4 sm:$0xff]   ;;  %v3133_v38 = vld [vmem:[#allocation8 + $0x14c] ss:$16 sps:$4 sm:$0xff]  }
 0x130   :  { %1190 = vmatprep.subr.bf16.mxu0 %v3064_v41  ;;  %v3128_v37 = vld [vmem:[#allocation8 + $0x3a8] ss:$16 sps:$4 sm:$0xff]   ;;  %v3139_v43 = vld [vmem:[#allocation8 + $0x12c] ss:$16 sps:$4 sm:$0xff]  }
 0x131   :  { %v307_v51 = vmax.f32 %v298_v46, 0.0  ;;  %v3616_v56 = vpack.c.bf16 %v306_v48, %v302_v52  ;;  %v3131_v41 = vld [vmem:[#allocation8 + $0x148] ss:$16 sps:$4 sm:$0xff]   ;;  %v3148_v48 = vld [vmem:[#allocation8 + $0x34c] ss:$16 sps:$4 sm:$0xff]  }
 0x132   :  { %v3137_v45 = vld [vmem:[#allocation8 + $0x128] ss:$16 sps:$4 sm:$0xff]  }
 0x133   :  { %v311_v53 = vpack.c.bf16 %v307_v51, %v303_v50  ;;  %1191 = vmatpush1.bf16.msra.mxu0 %v3062_v47  ;;  %v3140_v46 = vld [vmem:[#allocation8 + $0x368] ss:$16 sps:$4 sm:$0xff]   ;;  %v3145_v47 = vld [vmem:[#allocation8 + $0x10c] ss:$16 sps:$4 sm:$0xff]  }
 0x134   :  { %1192 = vmatprep.subr.bf16.mxu0 %v3067_v49  ;;  %v3143_v49 = vld [vmem:[#allocation8 + $0x108] ss:$16 sps:$4 sm:$0xff]   ;;  %v3151_v51 = vld [vmem:[#allocation8 + $0x32c] ss:$16 sps:$4 sm:$0xff]  }
 0x135   :  { %1177 = vmatprep.mubr.bf16.mxu1 %v311_v53  ;;  %v3146_v50 = vld [vmem:[#allocation8 + $0x348] ss:$16 sps:$4 sm:$0xff]  }
 0x136   :  { %1178 = vmatmul.mubr.bf16.vlgmr.msra.gmra.mxu1 %v3616_v56  ;;  %v3157_v52 = vld [vmem:[#allocation10 + $0xac] ss:$12 sps:$4 sm:$0xff]  }
 0x137   :  { %1193 = vmatpush1.bf16.msra.mxu0 %v3065_v54  ;;  %1232 = vmatpush1.bf16.msra.mxu1 %v3068_v55  ;;  %v3155_v54 = vld [vmem:[#allocation10 + $0xa8] ss:$12 sps:$4 sm:$0xff]   ;;  %v3154_v55 = vld [vmem:[#allocation8 + $0x30c] ss:$16 sps:$4 sm:$0xff]  }
 0x138   :  { %1263 = vmatprep.mubr.bf16.mxu1 %v311_v53  ;;  %1194 = vmatprep.subr.bf16.mxu0 %v3073_v57  ;;  %v3149_v53 = vld [vmem:[#allocation8 + $0x328] ss:$16 sps:$4 sm:$0xff]   ;;  %v3160_v57 = vld [vmem:[#allocation10 + $0x94] ss:$12 sps:$4 sm:$0xff]  }
 0x139   :  { %1233 = vmatprep.subr.bf16.mxu1 %v3076_v58  ;;  %v3152_v58 = vld [vmem:[#allocation8 + $0x308] ss:$16 sps:$4 sm:$0xff]  }
 0x13b   :  { %1195 = vmatpush1.bf16.msra.mxu0 %v3071_v59  ;;  %1234 = vmatpush1.bf16.msra.mxu1 %v3074_v60  ;;  %v3158_v59 = vld [vmem:[#allocation10 + $0x90] ss:$12 sps:$4 sm:$0xff]  }
 0x13c   :  { %1196 = vmatprep.subr.bf16.mxu0 %v3079_v61  ;;  %1235 = vmatprep.subr.bf16.mxu1 %v3082_v62  ;;  %v3163_v60 = vld [vmem:[#allocation10 + $0x7c] ss:$12 sps:$4 sm:$0xff]   ;;  %v3161_v61 = vld [vmem:[#allocation10 + $0x78] ss:$12 sps:$4 sm:$0xff]  }
 0x13d   :  { %v3166_v62 = vld [vmem:[#allocation10 + $0x64] ss:$12 sps:$4 sm:$0xff]  }
 0x13f   :  { %1197 = vmatpush1.bf16.msra.mxu0 %v3077_v63  ;;  %1236 = vmatpush1.bf16.msra.mxu1 %v3080_v0  ;;  %v3164_v63 = vld [vmem:[#allocation10 + $0x60] ss:$12 sps:$4 sm:$0xff]  }
 0x140   :  { %1198 = vmatprep.subr.bf16.mxu0 %v3085_v1  ;;  %1237 = vmatprep.subr.bf16.mxu1 %v3088_v2  ;;  %v3169_v0 = vld [vmem:[#allocation10 + $0x4c] ss:$12 sps:$4 sm:$0xff]   ;;  %v3172_v1 = vld [vmem:[#allocation10 + $0x34] ss:$12 sps:$4 sm:$0xff]   ;;  %v3170_v2 = vld [vmem:[#allocation10 + $0x30] ss:$12 sps:$4 sm:$0xff]  }
 0x143   :  { %1199 = vmatpush1.bf16.msra.mxu0 %v3083_v3  ;;  %1238 = vmatpush1.bf16.msra.mxu1 %v3086_v4  ;;  %v3175_v3 = vld [vmem:[#allocation10 + $0x1c] ss:$12 sps:$4 sm:$0xff]  }
 0x144   :  { %1200 = vmatprep.subr.bf16.mxu0 %v3091_v5  ;;  %1239 = vmatprep.subr.bf16.mxu1 %v3094_v6  ;;  %v3203_v4 = vld [vmem:[#allocation10 + $0x228] ss:$12 sps:$4 sm:$0xff]   ;;  %v3205_v5 = vld [vmem:[#allocation10 + $0x22c] ss:$12 sps:$4 sm:$0xff]  }
 0x145   :  { %v3173_v6 = vld [vmem:[#allocation10 + $0x18] ss:$12 sps:$4 sm:$0xff]  }
 0x147   :  { %1201 = vmatpush1.bf16.msra.mxu0 %v3089_v7  ;;  %1240 = vmatpush1.bf16.msra.mxu1 %v3092_v8  ;;  %v3178_v7 = vld [vmem:[#allocation10 + $0x4] ss:$12 sps:$4 sm:$0xff]   ;;  %v3210_v8 = vld [vmem:[#allocation10 + $0x214] ss:$12 sps:$4 sm:$0xff]  }
 0x148   :  { %1202 = vmatprep.subr.bf16.mxu0 %v3097_v9  ;;  %1241 = vmatprep.subr.bf16.mxu1 %v3100_v10  ;;  %v3176_v9 = vld [vmem:[#allocation10] ss:$12 sps:$4 sm:$0xff]  }
 0x149   :  { %v3181_v10 = vld [vmem:[#allocation10 + $0x16c] ss:$12 sps:$4 sm:$0xff]  }
 0x14b   :  { %1203 = vmatpush1.bf16.msra.mxu0 %v3095_v11  ;;  %1242 = vmatpush1.bf16.msra.mxu1 %v3098_v12  ;;  %v3213_v11 = vld [vmem:[#allocation10 + $0x1f8] ss:$12 sps:$4 sm:$0xff]   ;;  %v3215_v12 = vld [vmem:[#allocation10 + $0x1fc] ss:$12 sps:$4 sm:$0xff]  }
 0x14c   :  { %1204 = vmatprep.subr.bf16.mxu0 %v3103_v16  ;;  %1243 = vmatprep.subr.bf16.mxu1 %v3106_v17  ;;  %v3179_v16 = vld [vmem:[#allocation10 + $0x168] ss:$12 sps:$4 sm:$0xff]  }
 0x14d   :  { %v3184_v17 = vld [vmem:[#allocation10 + $0x154] ss:$12 sps:$4 sm:$0xff]  }
 0x14f   :  { %1205 = vmatpush2.bf16.msra.mxu0 %v3101_v18  ;;  %1244 = vmatpush1.bf16.msra.mxu1 %v3104_v19  ;;  %v3218_v18 = vld [vmem:[#allocation10 + $0x1e0] ss:$12 sps:$4 sm:$0xff]   ;;  %v3220_v19 = vld [vmem:[#allocation10 + $0x1e4] ss:$12 sps:$4 sm:$0xff]  }
 0x150   :  { %1206 = vmatprep.subr.bf16.mxu0 %v3109_v20  ;;  %1245 = vmatprep.subr.bf16.mxu1 %v3112_v21  ;;  %v3182_v20 = vld [vmem:[#allocation10 + $0x150] ss:$12 sps:$4 sm:$0xff]  }
 0x151   :  { %v3187_v21 = vld [vmem:[#allocation10 + $0x13c] ss:$12 sps:$4 sm:$0xff]  }
 0x153   :  { %1207 = vmatpush2.bf16.msra.mxu0 %v3107_v22  ;;  %1246 = vmatpush1.bf16.msra.mxu1 %v3110_v23  ;;  %v3223_v22 = vld [vmem:[#allocation10 + $0x1c8] ss:$12 sps:$4 sm:$0xff]   ;;  %v3225_v23 = vld [vmem:[#allocation10 + $0x1cc] ss:$12 sps:$4 sm:$0xff]  }
 0x154   :  { %1208 = vmatprep.subr.bf16.mxu0 %v3115_v25  ;;  %1247 = vmatprep.subr.bf16.mxu1 %v3118_v26  ;;  %v3185_v25 = vld [vmem:[#allocation10 + $0x138] ss:$12 sps:$4 sm:$0xff]  }
 0x155   :  { %v3190_v26 = vld [vmem:[#allocation10 + $0x124] ss:$12 sps:$4 sm:$0xff]  }
 0x157   :  { %1209 = vmatpush2.bf16.msra.mxu0 %v3113_v28  ;;  %1248 = vmatpush2.bf16.msra.mxu1 %v3116_v29  ;;  %v3228_v28 = vld [vmem:[#allocation10 + $0x1b0] ss:$12 sps:$4 sm:$0xff]   ;;  %v3230_v29 = vld [vmem:[#allocation10 + $0x1b4] ss:$12 sps:$4 sm:$0xff]  }
 0x158   :  { %1210 = vmatprep.subr.bf16.mxu0 %v3121_v30  ;;  %1249 = vmatprep.subr.bf16.mxu1 %v3124_v31  ;;  %v3188_v30 = vld [vmem:[#allocation10 + $0x120] ss:$12 sps:$4 sm:$0xff]  }
 0x159   :  { %v3193_v31 = vld [vmem:[#allocation10 + $0x10c] ss:$12 sps:$4 sm:$0xff]  }
 0x15b   :  { %1211 = vmatpush2.bf16.msra.mxu0 %v3119_v32  ;;  %1250 = vmatpush2.bf16.msra.mxu1 %v3122_v33  ;;  %v3233_v32 = vld [vmem:[#allocation10 + $0x198] ss:$12 sps:$4 sm:$0xff]   ;;  %v3235_v33 = vld [vmem:[#allocation10 + $0x19c] ss:$12 sps:$4 sm:$0xff]  }
 0x15c   :  { %1212 = vmatprep.subr.bf16.mxu0 %v3127_v34  ;;  %1251 = vmatprep.subr.bf16.mxu1 %v3130_v35  ;;  %v3191_v34 = vld [vmem:[#allocation10 + $0x108] ss:$12 sps:$4 sm:$0xff]  }
 0x15d   :  { %v3196_v35 = vld [vmem:[#allocation10 + $0xf4] ss:$12 sps:$4 sm:$0xff]  }
 0x15f   :  { %1213 = vmatpush2.bf16.msra.mxu0 %v3125_v36  ;;  %1252 = vmatpush2.bf16.msra.mxu1 %v3128_v37  ;;  %v3238_v36 = vld [vmem:[#allocation10 + $0x180] ss:$12 sps:$4 sm:$0xff]   ;;  %v3240_v37 = vld [vmem:[#allocation10 + $0x184] ss:$12 sps:$4 sm:$0xff]  }
 0x160   :  { %1214 = vmatprep.subr.bf16.mxu0 %v3133_v38  ;;  %1253 = vmatprep.subr.bf16.mxu1 %v3136_v40  ;;  %v3194_v38 = vld [vmem:[#allocation10 + $0xf0] ss:$12 sps:$4 sm:$0xff]  }
 0x161   :  { %v3199_v40 = vld [vmem:[#allocation10 + $0xdc] ss:$12 sps:$4 sm:$0xff]  }
 0x163   :  { %1215 = vmatpush2.bf16.msra.mxu0 %v3131_v41  ;;  %1254 = vmatpush2.bf16.msra.mxu1 %v3134_v42  ;;  %v3243_v41 = vld [vmem:[#allocation10 + $0x2e8] ss:$12 sps:$4 sm:$0xff]   ;;  %v3245_v42 = vld [vmem:[#allocation10 + $0x2ec] ss:$12 sps:$4 sm:$0xff]  }
 0x164   :  { %1216 = vmatprep.subr.bf16.mxu0 %v3139_v43  ;;  %1255 = vmatprep.subr.bf16.mxu1 %v3142_v44  ;;  %v3197_v43 = vld [vmem:[#allocation10 + $0xd8] ss:$12 sps:$4 sm:$0xff]  }
 0x165   :  { %v3202_v44 = vld [vmem:[#allocation10 + $0xc4] ss:$12 sps:$4 sm:$0xff]  }
 0x167   :  { %1217 = vmatpush2.bf16.msra.mxu0 %v3137_v45  ;;  %1256 = vmatpush2.bf16.msra.mxu1 %v3140_v46  ;;  %v3246_v45 = vld [vmem:[#allocation10 + $0x2d0] ss:$12 sps:$4 sm:$0xff]   ;;  %v3248_v46 = vld [vmem:[#allocation10 + $0x2d4] ss:$12 sps:$4 sm:$0xff]  }
 0x168   :  { %1218 = vmatprep.subr.bf16.mxu0 %v3145_v47  ;;  %1257 = vmatprep.subr.bf16.mxu1 %v3148_v48  ;;  %v3251_v47 = vld [vmem:[#allocation10 + $0x2bc] ss:$12 sps:$4 sm:$0xff]   ;;  %v3200_v48 = vld [vmem:[#allocation10 + $0xc0] ss:$12 sps:$4 sm:$0xff]  }
 0x16b   :  { %1219 = vmatpush2.bf16.msra.mxu0 %v3143_v49  ;;  %1258 = vmatpush2.bf16.msra.mxu1 %v3146_v50  ;;  %v3206_v49 = vld [vmem:[#allocation10 + $0x170] ss:$12 sps:$4 sm:$0xff]   ;;  %v3249_v50 = vld [vmem:[#allocation10 + $0x2b8] ss:$12 sps:$4 sm:$0xff]  }
 0x16c   :  { %1259 = vmatprep.subr.bf16.mxu1 %v3151_v51  ;;  %1943 = vmatprep.subr.bf16.mxu0 %v3157_v52  ;;  %v3254_v51 = vld [vmem:[#allocation10 + $0x2a4] ss:$12 sps:$4 sm:$0xff]   ;;  %v3252_v52 = vld [vmem:[#allocation10 + $0x2a0] ss:$12 sps:$4 sm:$0xff]  }
 0x16e   :  { %1221 = vmatmul.mubr.bf16.vlgmr.msra.gmra.mxu0 %v3613_v39  ;;  %v3167_v39 = vld [vmem:[#allocation10 + $0x48] ss:$12 sps:$4 sm:$0xff]  }
 0x16f   :  { %1260 = vmatpush2.bf16.msra.mxu1 %v3149_v53  ;;  %1944 = vmatpush1.bf16.msra.mxu0 %v3155_v54  ;;  %v3257_v53 = vld [vmem:[#allocation10 + $0x28c] ss:$12 sps:$4 sm:$0xff]   ;;  %v3255_v54 = vld [vmem:[#allocation10 + $0x288] ss:$12 sps:$4 sm:$0xff]  }
 0x170   :  { %1261 = vmatprep.subr.bf16.mxu1 %v3154_v55  ;;  %1945 = vmatprep.subr.bf16.mxu0 %v3160_v57  ;;  %v3260_v55 = vld [vmem:[#allocation10 + $0x274] ss:$12 sps:$4 sm:$0xff]   ;;  %v3258_v57 = vld [vmem:[#allocation10 + $0x270] ss:$12 sps:$4 sm:$0xff]  }
 0x173   :  { %1262 = vmatpush2.bf16.msra.mxu1 %v3152_v58  ;;  %1946 = vmatpush1.bf16.msra.mxu0 %v3158_v59  ;;  %v3263_v58 = vld [vmem:[#allocation10 + $0x25c] ss:$12 sps:$4 sm:$0xff]   ;;  %v3261_v59 = vld [vmem:[#allocation10 + $0x258] ss:$12 sps:$4 sm:$0xff]  }
 0x174   :  { %1947 = vmatprep.subr.bf16.mxu0 %v3163_v60  ;;  %1986 = vmatprep.subr.bf16.mxu1 %v3205_v5  ;;  %v3266_v60 = vld [vmem:[#allocation10 + $0x244] ss:$12 sps:$4 sm:$0xff]  }
 0x176   :  { %1264 = vmatmul.mubr.bf16.vlgmr.msra.gmra.mxu1 %v3616_v56  ;;  %v3208_v56 = vld [vmem:[#allocation10 + $0x210] ss:$12 sps:$4 sm:$0xff]  }
 0x177   :  { %1948 = vmatpush1.bf16.msra.mxu0 %v3161_v61  ;;  %1987 = vmatpush1.bf16.msra.mxu1 %v3203_v4  ;;  %v3264_v61 = vld [vmem:[#allocation10 + $0x240] ss:$12 sps:$4 sm:$0xff]  }
 0x178   :  { %1949 = vmatprep.subr.bf16.mxu0 %v3166_v62  ;;  %1988 = vmatprep.subr.bf16.mxu1 %v3210_v8  ;;  %v3267_v62 = vld [vmem:[#allocation10 + $0x2f0] ss:$12 sps:$4 sm:$0xff]  }
 0x17b   :  { %1950 = vmatpush1.bf16.msra.mxu0 %v3164_v63  ;;  %1989 = vmatpush1.bf16.msra.mxu1 %v3208_v56 }
 0x17c   :  { %1951 = vmatprep.subr.bf16.mxu0 %v3169_v0  ;;  %1990 = vmatprep.subr.bf16.mxu1 %v3215_v12 }
 0x17f   :  { %1952 = vmatpush1.bf16.msra.mxu0 %v3167_v39  ;;  %1991 = vmatpush1.bf16.msra.mxu1 %v3213_v11  ;;  %v440_v39 = vld [vmem:[%s3668_s4] sm:$0xf] }
 0x180   :  { %1953 = vmatprep.subr.bf16.mxu0 %v3172_v1  ;;  %1992 = vmatprep.subr.bf16.mxu1 %v3220_v19 }
 0x183   :  { %1954 = vmatpush1.bf16.msra.mxu0 %v3170_v2  ;;  %1993 = vmatpush1.bf16.msra.mxu1 %v3218_v18  ;;  %v449_v2 = vrot.slane %v440_v39, %v3599_v14 }
 0x184   :  { %1955 = vmatprep.subr.bf16.mxu0 %v3175_v3  ;;  %1994 = vmatprep.subr.bf16.mxu1 %v3225_v23  ;;  %v445_v3 = vrot.slane %v440_v39, %v3602_v15 }
 0x187   :  { %1956 = vmatpush1.bf16.msra.mxu0 %v3173_v6  ;;  %1995 = vmatpush1.bf16.msra.mxu1 %v3223_v22 }
 0x188   :  { %1957 = vmatprep.subr.bf16.mxu0 %v3178_v7  ;;  %1996 = vmatprep.subr.bf16.mxu1 %v3230_v29  ;;  %v3212_v29 = vld [vmem:[#allocation10 + $0x98] ss:$12 sps:$4 sm:$0xff]  }
 0x18b   :  { %1958 = vmatpush1.bf16.msra.mxu0 %v3176_v9  ;;  %1997 = vmatpush1.bf16.msra.mxu1 %v3228_v28  ;;  %v3211_v28 = vld [vmem:[#allocation10 + $0x158] ss:$12 sps:$4 sm:$0xff]  }
 0x18c   :  { %1959 = vmatprep.subr.bf16.mxu0 %v3181_v10  ;;  %1998 = vmatprep.subr.bf16.mxu1 %v3235_v33  ;;  %v3222_v33 = vld [vmem:[#allocation10 + $0x68] ss:$12 sps:$4 sm:$0xff]  }
 0x18f   :  { %1960 = vmatpush2.bf16.msra.mxu0 %v3179_v16  ;;  %1999 = vmatpush1.bf16.msra.mxu1 %v3233_v32  ;;  %v3221_v32 = vld [vmem:[#allocation10 + $0x128] ss:$12 sps:$4 sm:$0xff]  }
 0x190   :  { %1961 = vmatprep.subr.bf16.mxu0 %v3184_v17  ;;  %2000 = vmatprep.subr.bf16.mxu1 %v3240_v37  ;;  %v3232_v37 = vld [vmem:[#allocation10 + $0x38] ss:$12 sps:$4 sm:$0xff]  }
 0x193   :  { %1962 = vmatpush2.bf16.msra.mxu0 %v3182_v20  ;;  %2001 = vmatpush1.bf16.msra.mxu1 %v3238_v36  ;;  %v3231_v36 = vld [vmem:[#allocation10 + $0xf8] ss:$12 sps:$4 sm:$0xff]  }
 0x194   :  { %1963 = vmatprep.subr.bf16.mxu0 %v3187_v21  ;;  %2002 = vmatprep.subr.bf16.mxu1 %v3245_v42  ;;  %v3242_v42 = vld [vmem:[#allocation10 + $0x8] ss:$12 sps:$4 sm:$0xff]  }
 0x197   :  { %1964 = vmatpush2.bf16.msra.mxu0 %v3185_v25  ;;  %2003 = vmatpush2.bf16.msra.mxu1 %v3243_v41  ;;  %v3207_v25 = vld [vmem:[#allocation10 + $0xb0] ss:$12 sps:$4 sm:$0xff]   ;;  %v3241_v41 = vld [vmem:[#allocation10 + $0xc8] ss:$12 sps:$4 sm:$0xff]  }
 0x198   :  { %1965 = vmatprep.subr.bf16.mxu0 %v3190_v26  ;;  %2004 = vmatprep.subr.bf16.mxu1 %v3248_v46  ;;  %v457_v46 = vrot.slane %v440_v39, %v159_v24 }
 0x19b   :  { %1966 = vmatpush2.bf16.msra.mxu0 %v3188_v30  ;;  %2005 = vmatpush2.bf16.msra.mxu1 %v3246_v45  ;;  %v3216_v30 = vld [vmem:[#allocation10 + $0x140] ss:$12 sps:$4 sm:$0xff]  }
 0x19c   :  { %1967 = vmatprep.subr.bf16.mxu0 %v3193_v31  ;;  %2006 = vmatprep.subr.bf16.mxu1 %v3251_v47  ;;  %v3217_v31 = vld [vmem:[#allocation10 + $0x80] ss:$12 sps:$4 sm:$0xff]   ;;  %v453_v47 = vrot.slane %v440_v39, %v3608_v27 }
 0x19f   :  { %1968 = vmatpush2.bf16.msra.mxu0 %v3191_v34  ;;  %2007 = vmatpush2.bf16.msra.mxu1 %v3249_v50  ;;  %v3226_v34 = vld [vmem:[#allocation10 + $0x110] ss:$12 sps:$4 sm:$0xff]  }
 0x1a0   :  { %1969 = vmatprep.subr.bf16.mxu0 %v3196_v35  ;;  %2008 = vmatprep.subr.bf16.mxu1 %v3254_v51  ;;  %v3227_v35 = vld [vmem:[#allocation10 + $0x50] ss:$12 sps:$4 sm:$0xff]  }
 0x1a3   :  { %1970 = vmatpush2.bf16.msra.mxu0 %v3194_v38  ;;  %2009 = vmatpush2.bf16.msra.mxu1 %v3252_v52  ;;  %v3236_v38 = vld [vmem:[#allocation10 + $0xe0] ss:$12 sps:$4 sm:$0xff]  }
 0x1a4   :  { %1971 = vmatprep.subr.bf16.mxu0 %v3199_v40  ;;  %2010 = vmatprep.subr.bf16.mxu1 %v3257_v53  ;;  %v3237_v40 = vld [vmem:[#allocation10 + $0x20] ss:$12 sps:$4 sm:$0xff]  }
 0x1a7   :  { %1972 = vmatpush2.bf16.msra.mxu0 %v3197_v43  ;;  %2011 = vmatpush2.bf16.msra.mxu1 %v3255_v54 }
 0x1a8   :  { %1973 = vmatprep.subr.bf16.mxu0 %v3202_v44  ;;  %2012 = vmatprep.subr.bf16.mxu1 %v3260_v55 }
 0x1ab   :  { %1974 = vmatpush2.bf16.msra.mxu0 %v3200_v48  ;;  %2013 = vmatpush2.bf16.msra.mxu1 %v3258_v57 }
 0x1ac   :  { %2807 = vmatprep.subr.bf16.mxu0 %v3206_v49  ;;  %2014 = vmatprep.subr.bf16.mxu1 %v3263_v58 }
 0x1af   :  { %2015 = vmatpush2.bf16.msra.mxu1 %v3261_v59 }
 0x1b0   :  { %2016 = vmatprep.subr.bf16.mxu1 %v3266_v60 }
 0x1b3   :  { %2017 = vmatpush2.bf16.msra.mxu1 %v3264_v61 }
 0x1b4   :  { %2829 = vmatprep.subr.bf16.mxu1 %v3267_v62 }
 0x1ee   :  { %v1136_v63 = vpop.f32.mrf.mxu0 }
 0x1ef   :  { %v1137_v8 = vadd.f32 %v1136_v63, %v445_v3 }
 0x1f0   :  { %v1138_v0 = vpop.f32.mrf.mxu0 }
 0x1f1   :  { %v1139_v7 = vadd.f32 %v1138_v0, %v449_v2 }
 0x1f2   :  { %v1140_v1 = vpop.f32.mrf.mxu0 }
 0x1f3   :  { %v1141_v56 = vadd.f32 %v1140_v1, %v445_v3  ;;  %v3268_v1 = vld [vmem:[#allocation10 + $0x230] ss:$12 sps:$4 sm:$0xff]   ;;  %v3270_v3 = vld [vmem:[#allocation10 + $0x218] ss:$12 sps:$4 sm:$0xff]  }
 0x1f4   :  { %v1142_v5 = vpop.f32.mrf.mxu0 }
 0x1f5   :  { %v1143_v10 = vadd.f32 %v1142_v5, %v449_v2  ;;  %v3269_v2 = vld [vmem:[#allocation10 + $0x2d8] ss:$12 sps:$4 sm:$0xff]   ;;  %v3272_v5 = vld [vmem:[#allocation10 + $0x200] ss:$12 sps:$4 sm:$0xff]  }
 0x1f6   :  { %v1179_v4 = vpop.f32.mrf.mxu1 }
 0x1f7   :  { %v1180_v16 = vadd.f32 %v1179_v4, %v1137_v8  ;;  %v3271_v4 = vld [vmem:[#allocation10 + $0x2c0] ss:$12 sps:$4 sm:$0xff]   ;;  %v3276_v8 = vld [vmem:[#allocation10 + $0x1d0] ss:$12 sps:$4 sm:$0xff]  }
 0x1f8   :  { %v1181_v6 = vpop.f32.mrf.mxu1 }
 0x1f9   :  { %v1182_v11 = vadd.f32 %v1181_v6, %v1139_v7  ;;  %v1274_v22 = vmax.f32 %v1180_v16, 0.0  ;;  %v3273_v6 = vld [vmem:[#allocation10 + $0x2a8] ss:$12 sps:$4 sm:$0xff]  }
 0x1fa   :  { %v1183_v9 = vpop.f32.mrf.mxu1  ;;  %v3274_v7 = vld [vmem:[#allocation10 + $0x1e8] ss:$12 sps:$4 sm:$0xff]  }
 0x1fb   :  { %v1184_v12 = vadd.f32 %v1183_v9, %v1141_v56  ;;  %v1275_v20 = vmax.f32 %v1182_v11, 0.0  ;;  %v3275_v56 = vld [vmem:[#allocation10 + $0x290] ss:$12 sps:$4 sm:$0xff]   ;;  %v3277_v9 = vld [vmem:[#allocation10 + $0x278] ss:$12 sps:$4 sm:$0xff]  }
 0x1fc   :  { %v1185_v17 = vpop.f32.mrf.mxu1  ;;  %v3279_v11 = vld [vmem:[#allocation10 + $0x260] ss:$12 sps:$4 sm:$0xff]   ;;  %v3281_v16 = vld [vmem:[#allocation10 + $0x248] ss:$12 sps:$4 sm:$0xff]  }
 0x1fd   :  { %v1186_v18 = vadd.f32 %v1185_v17, %v1143_v10  ;;  %v1278_v19 = vmax.f32 %v1184_v12, 0.0  ;;  %v3278_v10 = vld [vmem:[#allocation10 + $0x1b8] ss:$12 sps:$4 sm:$0xff]   ;;  %v3280_v12 = vld [vmem:[#allocation10 + $0x1a0] ss:$12 sps:$4 sm:$0xff]  }
 0x1fe   :  { %v3282_v17 = vld [vmem:[#allocation10 + $0x188] ss:$12 sps:$4 sm:$0xff]  }
 0x1ff   :  { %v1279_v21 = vmax.f32 %v1186_v18, 0.0  ;;  %v1282_v26 = vpack.c.bf16 %v1278_v19, %v1274_v22  ;;  %v3283_v18 = vld [vmem:[#allocation11 + $0x78] sm:$0xff]   ;;  %v3287_v22 = vld [vmem:[#allocation11 + $0x68] sm:$0xff]  }
 0x200   :  { %v3284_v19 = vld [vmem:[#allocation11 + $0x38] sm:$0xff]  }
 0x201   :  { %v1283_v23 = vpack.c.bf16 %v1279_v21, %v1275_v20  ;;  %v3285_v20 = vld [vmem:[#allocation11 + $0x70] sm:$0xff]  }
 0x202   :  { %v3286_v21 = vld [vmem:[#allocation11 + $0x30] sm:$0xff]  }
 0x203   :  { %1975 = vmatprep.mubr.bf16.mxu0 %v1283_v23 }
 0x204   :  { %1976 = vmatmul.mubr.bf16.vlgmr.msra.gmra.mxu0 %v1282_v26 }
 0x205   :  { %2808 = vmatpush3.bf16.msra.mxu0 %v3207_v25  ;;  %2061 = vmatprep.mubr.bf16.mxu0 %v1283_v23  ;;  %v3288_v23 = vld [vmem:[#allocation11 + $0x28] sm:$0xff]   ;;  %v3289_v25 = vld [vmem:[#allocation11 + $0x60] sm:$0xff]  }
 0x206   :  { %2809 = vmatprep.subr.bf16.mxu0 %v3211_v28  ;;  %v3291_v28 = vld [vmem:[#allocation11 + $0x58] sm:$0xff]  }
 0x209   :  { %2810 = vmatpush3.bf16.msra.mxu0 %v3212_v29  ;;  %v3292_v29 = vld [vmem:[#allocation11 + $0x18] sm:$0xff]  }
 0x20a   :  { %2811 = vmatprep.subr.bf16.mxu0 %v3216_v30  ;;  %v3293_v30 = vld [vmem:[#allocation11 + $0x50] sm:$0xff]  }
 0x20d   :  { %2812 = vmatpush3.bf16.msra.mxu0 %v3217_v31  ;;  %v3294_v31 = vld [vmem:[#allocation11 + $0x10] sm:$0xff]  }
 0x20e   :  { %2813 = vmatprep.subr.bf16.mxu0 %v3221_v32  ;;  %v3295_v32 = vld [vmem:[#allocation11 + $0x48] sm:$0xff]  }
 0x211   :  { %2814 = vmatpush3.bf16.msra.mxu0 %v3222_v33  ;;  %v3296_v33 = vld [vmem:[#allocation11 + $0x8] sm:$0xff]  }
 0x212   :  { %2815 = vmatprep.subr.bf16.mxu0 %v3226_v34  ;;  %v3297_v34 = vld [vmem:[#allocation11 + $0x40] sm:$0xff]  }
 0x215   :  { %2816 = vmatpush3.bf16.msra.mxu0 %v3227_v35  ;;  %v3298_v35 = vld [vmem:[#allocation11] sm:$0xff]  }
 0x216   :  { %2817 = vmatprep.subr.bf16.mxu0 %v3231_v36  ;;  %v3299_v36 = vld [vmem:[#allocation11 + $0xb8] sm:$0xff]  }
 0x219   :  { %2818 = vmatpush3.bf16.msra.mxu0 %v3232_v37  ;;  %v3499_v37 = vmov 0.0  }
 0x21a   :  { %2819 = vmatprep.subr.bf16.mxu0 %v3236_v38  ;;  %v3300_v38 = vld [vmem:[#allocation11 + $0xb0] sm:$0xff]  }
 0x21d   :  { %2820 = vmatpush3.bf16.msra.mxu0 %v3237_v40  ;;  %v3301_v40 = vld [vmem:[#allocation11 + $0xa8] sm:$0xff]  }
 0x21e   :  { %2821 = vmatprep.subr.bf16.mxu0 %v3241_v41  ;;  %v3302_v41 = vld [vmem:[#allocation11 + $0xa0] sm:$0xff]  }
 0x221   :  { %2822 = vmatpush3.bf16.msra.mxu0 %v3242_v42  ;;  %v3303_v42 = vld [vmem:[#allocation11 + $0x98] sm:$0xff]  }
 0x222   :  { %2851 = vmatprep.subr.bf16.mxu0 %v3283_v18 }
 0x224   :  { %2062 = vmatmul.mubr.bf16.vlgmr.msra.gmra.mxu0 %v1282_v26  ;;  %v3290_v26 = vld [vmem:[#allocation11 + $0x20] sm:$0xff]  }
 0x225   :  { %2852 = vmatpush3.bf16.msra.mxu0 %v3284_v19 }
 0x226   :  { %2853 = vmatprep.subr.bf16.mxu0 %v3285_v20 }
 0x229   :  { %2854 = vmatpush3.bf16.msra.mxu0 %v3286_v21 }
 0x22a   :  { %2855 = vmatprep.subr.bf16.mxu0 %v3287_v22 }
 0x22d   :  { %2856 = vmatpush3.bf16.msra.mxu0 %v3288_v23 }
 0x22e   :  { %v1222_v43 = vpop.f32.mrf.mxu0  ;;  %2857 = vmatprep.subr.bf16.mxu0 %v3289_v25 }
 0x22f   :  { %v1223_v53 = vadd.f32 %v1222_v43, %v453_v47  ;;  %v3304_v43 = vld [vmem:[#allocation11 + $0x90] sm:$0xff]  }
 0x230   :  { %v1224_v44 = vpop.f32.mrf.mxu0 }
 0x231   :  { %v1225_v51 = vadd.f32 %v1224_v44, %v457_v46  ;;  %2858 = vmatpush3.bf16.msra.mxu0 %v3290_v26  ;;  %v3305_v44 = vld [vmem:[#allocation11 + $0x88] sm:$0xff]   ;;  %v3307_v26 = vld [vmem:[#allocation13 + $0x38] sm:$0xff]  }
 0x232   :  { %v1226_v45 = vpop.f32.mrf.mxu0  ;;  %2859 = vmatprep.subr.bf16.mxu0 %v3291_v28  ;;  %v3308_v28 = vld [vmem:[#allocation13 + $0x30] sm:$0xff]  }
 0x233   :  { %v1227_v52 = vadd.f32 %v1226_v45, %v453_v47  ;;  %v3306_v45 = vld [vmem:[#allocation11 + $0x80] sm:$0xff]  }
 0x234   :  { %v1228_v49 = vpop.f32.mrf.mxu0 }
 0x235   :  { %v1229_v55 = vadd.f32 %v1228_v49, %v457_v46  ;;  %2860 = vmatpush3.bf16.msra.mxu0 %v3292_v29  ;;  %v3310_v29 = vld [vmem:[#allocation13 + $0x20] sm:$0xff]  }
 0x236   :  { %v1265_v48 = vpop.f32.mrf.mxu1  ;;  %2861 = vmatprep.subr.bf16.mxu0 %v3293_v30  ;;  %v3311_v30 = vld [vmem:[#allocation13 + $0x18] sm:$0xff]  }
 0x237   :  { %v1266_v59 = vadd.f32 %v1265_v48, %v1223_v53  ;;  %v1414_v48 = vld [vmem:[%s3670_s6] sm:$0x7] }
 0x238   :  { %v1267_v50 = vpop.f32.mrf.mxu1 }
 0x239   :  { %v1268_v57 = vadd.f32 %v1267_v50, %v1225_v51  ;;  %v1276_v13 = vmax.f32 %v1266_v59, 0.0  ;;  %2862 = vmatpush3.bf16.msra.mxu0 %v3294_v31  ;;  %v1423_v50 = vrot.slane %v1414_v48, %v3599_v14  ;;  %v1419_v51 = vrot.slane %v1414_v48, %v3602_v15  ;;  %v3312_v31 = vld [vmem:[#allocation13 + $0x10] sm:$0xff]  }
 0x23a   :  { %v1269_v54 = vpop.f32.mrf.mxu1  ;;  %2863 = vmatprep.subr.bf16.mxu0 %v3295_v32  ;;  %v3313_v32 = vld [vmem:[#allocation13 + $0x8] sm:$0xff]  }
 0x23b   :  { %v1270_v58 = vadd.f32 %v1269_v54, %v1227_v52  ;;  %v1277_v63 = vmax.f32 %v1268_v57, 0.0 }
 0x23c   :  { %v1271_v60 = vpop.f32.mrf.mxu1 }
 0x23d   :  { %v1272_v61 = vadd.f32 %v1271_v60, %v1229_v55  ;;  %v1280_v62 = vmax.f32 %v1270_v58, 0.0  ;;  %2864 = vmatpush3.bf16.msra.mxu0 %v3296_v33  ;;  %v3314_v33 = vld [vmem:[#allocation13] sm:$0xff]  }
 0x23e   :  { %2865 = vmatprep.subr.bf16.mxu0 %v3297_v34 }
 0x23f   :  { %v1281_v0 = vmax.f32 %v1272_v61, 0.0  ;;  %v1284_v39 = vpack.c.bf16 %v1280_v62, %v1276_v13 }
 0x241   :  { %v1285_v24 = vpack.c.bf16 %v1281_v0, %v1277_v63  ;;  %2866 = vmatpush3.bf16.msra.mxu0 %v3298_v35 }
 0x242   :  { %2911 = vmatprep.subr.bf16.mxu0 %v3499_v37 }
 0x243   :  { %2018 = vmatprep.mubr.bf16.mxu1 %v1285_v24 }
 0x244   :  { %2019 = vmatmul.mubr.bf16.vlgmr.msra.gmra.mxu1 %v1284_v39 }
 0x245   :  { %2830 = vmatpush3.bf16.msra.mxu1 %v3268_v1  ;;  %2102 = vmatprep.mubr.bf16.mxu1 %v1285_v24 }
 0x246   :  { %2831 = vmatprep.subr.bf16.mxu1 %v3269_v2 }
 0x249   :  { %2832 = vmatpush3.bf16.msra.mxu1 %v3270_v3 }
 0x24a   :  { %2833 = vmatprep.subr.bf16.mxu1 %v3271_v4 }
 0x24d   :  { %2834 = vmatpush3.bf16.msra.mxu1 %v3272_v5 }
 0x24e   :  { %2835 = vmatprep.subr.bf16.mxu1 %v3273_v6 }
 0x251   :  { %2836 = vmatpush3.bf16.msra.mxu1 %v3274_v7 }
 0x252   :  { %2837 = vmatprep.subr.bf16.mxu1 %v3275_v56  ;;  %v1427_v56 = vrot.slane %v1414_v48, %v3608_v27  ;;  %v3309_v27 = vld [vmem:[#allocation13 + $0x28] sm:$0xff]  }
 0x255   :  { %2838 = vmatpush3.bf16.msra.mxu1 %v3276_v8 }
 0x256   :  { %2839 = vmatprep.subr.bf16.mxu1 %v3277_v9 }
 0x259   :  { %2840 = vmatpush3.bf16.msra.mxu1 %v3278_v10 }
 0x25a   :  { %2841 = vmatprep.subr.bf16.mxu1 %v3279_v11 }
 0x25d   :  { %2842 = vmatpush3.bf16.msra.mxu1 %v3280_v12 }
 0x25e   :  { %2843 = vmatprep.subr.bf16.mxu1 %v3281_v16 }
 0x261   :  { %2844 = vmatpush3.bf16.msra.mxu1 %v3282_v17 }
 0x262   :  { %2891 = vmatprep.subr.bf16.mxu1 %v3499_v37 }
 0x264   :  { %2103 = vmatmul.mubr.bf16.vlgmr.msra.gmra.mxu1 %v1284_v39 }
 0x265   :  { %2892 = vmatpush3.bf16.msra.mxu1 %v3299_v36  ;;  %2907 = vmatprep.mubr.msk.bf16.mxu1 %vm3500_vm1, %v3499_v37 }
 0x266   :  { %2893 = vmatprep.subr.bf16.mxu1 %v3499_v37 }
 0x269   :  { %2894 = vmatpush3.bf16.msra.mxu1 %v3300_v38 }
 0x26a   :  { %2895 = vmatprep.subr.bf16.mxu1 %v3499_v37 }
 0x26d   :  { %2896 = vmatpush3.bf16.msra.mxu1 %v3301_v40 }
 0x26e   :  { %2897 = vmatprep.subr.bf16.mxu1 %v3499_v37 }
 0x271   :  { %2898 = vmatpush3.bf16.msra.mxu1 %v3302_v41  ;;  %v2773_v41 = vld [vmem:[%s3672_s8] ss:$0 sm:$0xff]  ;;  %s3501_s8 = smov [#allocation14]  }
 0x272   :  { %2899 = vmatprep.subr.bf16.mxu1 %v3499_v37  ;;  %s2523_s17 = sshll.u32 %s3501_s8, 4  ;;  %s2524_s17 = int_to_ptr.vmem [resolvable:$true] %s2523_s17 }
 0x273   :  { %s3455_s18 = scalar_lea.vmem %s2524_s17, 256  ;;  %p3460_p8 = scmp.lt.s32.totalorder %s2524_s17, %s2524_s17 }
 0x274   :  { %p3456_p7 = scmp.ne.s32.totalorder %s2524_s17, %s3455_s18  ;;  %p3461_p9 = scmp.lt.s32.totalorder %s3455_s18, %s3455_s18 }
 0x275   :  { %2900 = vmatpush3.bf16.msra.mxu1 %v3303_v42 }
 0x276   :  { %2901 = vmatprep.subr.bf16.mxu1 %v3499_v37  ;;  %p3462_p10 = por %p3461_p9, %p3460_p8 }
 0x278   :  { %p3463_p11 = pnand %p3462_p10, %p3456_p7 }
 0x279   :  { %2902 = vmatpush3.bf16.msra.mxu1 %v3304_v43 }
 0x27a   :  { %2903 = vmatprep.subr.bf16.mxu1 %v3499_v37 }
 0x27d   :  { %2904 = vmatpush3.bf16.msra.mxu1 %v3305_v44 }
 0x27e   :  { %2905 = vmatprep.subr.bf16.mxu1 %v3499_v37 }
 0x281   :  { %2906 = vmatpush3.bf16.msra.mxu1 %v3306_v45 }
 0x2c4   :  { %v1977_v46 = vpop.f32.mrf.mxu0 }
 0x2c5   :  { %v1978_v58 = vadd.f32 %v1977_v46, %v1419_v51 }
 0x2c6   :  { %v1979_v47 = vpop.f32.mrf.mxu0 }
 0x2c7   :  { %v1980_v55 = vadd.f32 %v1979_v47, %v1423_v50 }
 0x2c8   :  { %v1981_v49 = vpop.f32.mrf.mxu0 }
 0x2c9   :  { %v1982_v57 = vadd.f32 %v1981_v49, %v1419_v51 }
 0x2ca   :  { %v1983_v53 = vpop.f32.mrf.mxu0 }
 0x2cb   :  { %v1984_v60 = vadd.f32 %v1983_v53, %v1423_v50  ;;  %v2798_v53 = vld [vmem:[%s3674_s10] ss:$0 sm:$0xff] }
 0x2e4   :  { %v2823_v15 = vpop.f32.mrf.mxu0 }
 0x2e6   :  { %v2824_v4 = vpop.f32.mrf.mxu0 }
 0x2e7   :  { %v2825_v8 = vadd.f32 %v2824_v4, %v2823_v15 }
 0x2e8   :  { %v2826_v5 = vpop.f32.mrf.mxu0 }
 0x2e9   :  { %v2064_v16 = vadd.f32 %v2825_v8, %v1427_v56 }
 0x2ea   :  { %v2827_v6 = vpop.f32.mrf.mxu0 }
 0x2eb   :  { %v2828_v10 = vadd.f32 %v2827_v6, %v2826_v5 }
 0x2ed   :  { %v2067_v18 = vadd.f32 %v2828_v10, %v1427_v56 }
 0x304   :  { %v2020_v52 = vpop.f32.mrf.mxu1 }
 0x305   :  { %v2021_v63 = vadd.f32 %v2020_v52, %v1978_v58 }
 0x306   :  { %v2022_v54 = vpop.f32.mrf.mxu1 }
 0x307   :  { %v2023_v61 = vadd.f32 %v2022_v54, %v1980_v55  ;;  %v2111_v2 = vmax.f32 %v2021_v63, 0.0 }
 0x308   :  { %v2024_v59 = vpop.f32.mrf.mxu1 }
 0x309   :  { %v2025_v62 = vadd.f32 %v2024_v59, %v1982_v57  ;;  %v2112_v1 = vmax.f32 %v2023_v61, 0.0 }
 0x30a   :  { %v2026_v0 = vpop.f32.mrf.mxu1 }
 0x30b   :  { %v2027_v13 = vadd.f32 %v2026_v0, %v1984_v60  ;;  %v2114_v24 = vmax.f32 %v2025_v62, 0.0 }
 0x30d   :  { %v2115_v39 = vmax.f32 %v2027_v13, 0.0  ;;  %v2117_v3 = vpack.c.bf16 %v2114_v24, %v2111_v2 }
 0x30f   :  { %v2118_v14 = vpack.c.bf16 %v2115_v39, %v2112_v1 }
 0x311   :  { %2351 = vmatprep.mubr.bf16.mxu0 %v2118_v14 }
 0x312   :  { %2352 = vmatmul.mubr.bf16.vlgmr.msra.gmra.mxu0 %v2117_v3 }
 0x313   :  { %2927 = vmatprep.mubr.msk.bf16.mxu0 %vm3500_vm1, %v3499_v37  ;;  %2912 = vmatpush3.bf16.msra.mxu0 %v3307_v26 }
 0x314   :  { %2913 = vmatprep.subr.bf16.mxu0 %v3499_v37 }
 0x317   :  { %2914 = vmatpush3.bf16.msra.mxu0 %v3308_v28 }
 0x318   :  { %2915 = vmatprep.subr.bf16.mxu0 %v3499_v37 }
 0x31b   :  { %2916 = vmatpush3.bf16.msra.mxu0 %v3309_v27 }
 0x31c   :  { %2917 = vmatprep.subr.bf16.mxu0 %v3499_v37 }
 0x31f   :  { %2918 = vmatpush3.bf16.msra.mxu0 %v3310_v29 }
 0x320   :  { %2919 = vmatprep.subr.bf16.mxu0 %v3499_v37 }
 0x323   :  { %2920 = vmatpush3.bf16.msra.mxu0 %v3311_v30 }
 0x324   :  { %v2845_v7 = vpop.f32.mrf.mxu1  ;;  %2921 = vmatprep.subr.bf16.mxu0 %v3499_v37 }
 0x326   :  { %v2846_v9 = vpop.f32.mrf.mxu1 }
 0x327   :  { %v2847_v11 = vadd.f32 %v2846_v9, %v2845_v7  ;;  %2922 = vmatpush3.bf16.msra.mxu0 %v3312_v31 }
 0x328   :  { %v2848_v12 = vpop.f32.mrf.mxu1  ;;  %2923 = vmatprep.subr.bf16.mxu0 %v3499_v37 }
 0x329   :  { %v2105_v19 = vadd.f32 %v2847_v11, %v2064_v16 }
 0x32a   :  { %v2849_v17 = vpop.f32.mrf.mxu1 }
 0x32b   :  { %v2850_v20 = vadd.f32 %v2849_v17, %v2848_v12  ;;  %v2113_v22 = vmax.f32 %v2105_v19, 0.0  ;;  %2924 = vmatpush3.bf16.msra.mxu0 %v3313_v32 }
 0x32c   :  { %2925 = vmatprep.subr.bf16.mxu0 %v3499_v37 }
 0x32d   :  { %v2108_v21 = vadd.f32 %v2850_v20, %v2067_v18 }
 0x32f   :  { %v2116_v23 = vmax.f32 %v2108_v21, 0.0  ;;  %2926 = vmatpush3.bf16.msra.mxu0 %v3314_v33 }
 0x331   :  { %v2119_v25 = vpack.c.bf16 %v2116_v23, %v2113_v22 }
 0x333   :  { %2908 = vmatmul.mubr.bf16.vlgmr.msra.gmra.mxu1 %v2119_v25 }
 0x3d2   :  { %v2867_v34 = vpop.f32.mrf.mxu0 }
 0x3d4   :  { %v2868_v35 = vpop.f32.mrf.mxu0 }
 0x3d5   :  { %v2869_v40 = vadd.f32 %v2868_v35, %v2867_v34 }
 0x3d6   :  { %v2870_v36 = vpop.f32.mrf.mxu0 }
 0x3d7   :  { %v2354_v44 = vadd.f32 %v2869_v40, %v2773_v41 }
 0x3d8   :  { %v2871_v38 = vpop.f32.mrf.mxu0 }
 0x3d9   :  { %v2872_v42 = vadd.f32 %v2871_v38, %v2870_v36 }
 0x3db   :  { %v2357_v47 = vadd.f32 %v2872_v42, %v2773_v41 }
 0x3f3   :  { %v2394_v43 = vpop.f32.mrf.mxu1 }
 0x3f4   :  { %v2395_v46 = vadd.f32 %v2394_v43, %v2354_v44 }
 0x3f5   :  { %v2909_v45 = vpop.f32.mrf.mxu1 }
 0x3f6   :  { %v2401_v50 = vmax.f32 %v2395_v46, 0.0 }
 0x3f7   :  { %v2397_v48 = vpop.f32.mrf.mxu1 }
 0x3f8   :  { %v2398_v49 = vadd.f32 %v2397_v48, %v2357_v47 }
 0x3f9   :  { %v2910_v37 = vpop.f32.mrf.mxu1 }
 0x3fa   :  { %v2402_v51 = vmax.f32 %v2398_v49, 0.0 }
 0x3fc   :  { %v2403_v52 = vpack.c.bf16 %v2402_v51, %v2401_v50 }
 0x3fe   :  { %2928 = vmatmul.mubr.bf16.vlgmr.msra.gmra.mxu0 %v2403_v52 }
 0x4be   :  { %v2509_v54 = vpop.f32.mrf.mxu0 }
 0x4bf   :  { %v2510_v55 = vadd.f32 %v2798_v53, %v2509_v54 }
 0x4c0   :  { %v2929_v57 = vpop.f32.mrf.mxu0 }
 0x4c1   :  { %2516 = vst [vmem:[#allocation14] sm:$0xff] %v2510_v55 }
 0x4c2   :  { %v2512_v58 = vpop.f32.mrf.mxu0 }
 0x4c3   :  { %v2513_v59 = vadd.f32 %v2798_v53, %v2512_v58 }
 0x4c4   :  { %v2930_v60 = vpop.f32.mrf.mxu0 }
 0x4c5   :  { %2517 = vst [vmem:[#allocation14 + $0x8] sm:$0xff] %v2513_v59 }
 0x4c6   :  { %3466 = shalt.err (!%p3463_p11)
}
 0x4c7   :  { %s3502_s19 = smov 128   ;;  %s3503_s10 = smov 8  }
 0x4c8   :  { %2529 = dma.vmem_to_hbm [thread:$0]  %s2524_s17, 256, %s3675_s11, [#allocation4], %s3502_s19, %s3502_s19, %s3503_s10  }
 0x4c9   :  { %3483 = dma.done.wait [#allocation4], 256  }
 0x4ca   :  { %3484 = vsyncadd [#allocation4], 4294967040 }
 0x4cb   :  { %2533 = vsyncpa [#allocation3], 1 }
 0x4cc   :  { %2534 = vsyncpa [#allocation6], 1 }
 0x4cd   :  { %2535 = vsyncpa [#allocation9], 1 }
 0x4ce   :  { %2536 = vsyncpa [#allocation12], 1 }
 0x4cf   :  { %2537 = vsyncpa [#allocation4], 1 }

// kernel: tpu_custom_call.1
= control target key start
LH: loop header
LB: loop body
LE: loop exit
PB: predicated region body
PF: predicated region fallthrough
CT: control target
= control target key end

     0   :  { %16 = vsyncpa [#allocation3], 0  ;;  %s3664_s0 = inlined_call_operand.hbm [shape: bf16[16,32], index: 0, kind: input, shape index: {}]   ;;  %s3665_s1 = inlined_call_operand.hbm [shape: bf16[32,512], index: 1, kind: input, shape index: {}]   ;;  %s3666_s2 = inlined_call_operand.hbm [shape: f32[1,512], index: 2, kind: input, shape index: {}]   ;;  %s3667_s3 = inlined_call_operand.hbm [shape: bf16[512,512], index: 3, kind: input, shape index: {}]   ;;  %s3668_s4 = inlined_call_operand.vmem [shape: f32[1,512], index: 4, kind: input, shape index: {}]   ;;  %s3669_s5 = inlined_call_operand.hbm [shape: bf16[512,384], index: 5, kind: input, shape index: {}]   ;;  %s3670_s6 = inlined_call_operand.vmem [shape: f32[1,384], index: 6, kind: input, shape index: {}]   ;;  %s3671_s7 = inlined_call_operand.hbm [shape: bf16[384,128], index: 7, kind: input, shape index: {}]   ;;  %s3672_s8 = inlined_call_operand.vmem [shape: f32[1,128], index: 8, kind: input, shape index: {}]   ;;  %s3673_s9 = inlined_call_operand.hbm [shape: bf16[128,128], index: 9, kind: input, shape index: {}]   ;;  %s3674_s10 = inlined_call_operand.vmem [shape: f32[1,128], index: 10, kind: input, shape index: {}]   ;;  %s3675_s11 = inlined_call_operand.hbm [shape: f32[16,128], index: 11, kind: output, shape index: {}]  }
   0x1   :  { %17 = vsyncpa [#allocation6], 0 }
   0x2   :  { %18 = vsyncpa [#allocation9], 0 }
   0x3   :  { %19 = vsyncpa [#allocation12], 0 }
   0x4   :  { %20 = vsyncpa [#allocation4], 0  ;;  %s3485_s17 = smov [#allocation5]  }
   0x5   :  { %s38_s18 = sshll.u32 %s3485_s17, 4  ;;  %s39_s18 = int_to_ptr.vmem [resolvable:$true] %s38_s18 }
   0x6   :  { %s3323_s19 = scalar_lea.vmem %s39_s18, 1024  ;;  %p3328_p1 = scmp.lt.s32.totalorder %s39_s18, %s39_s18 }
   0x7   :  { %p3324_p0 = scmp.ne.s32.totalorder %s39_s18, %s3323_s19  ;;  %p3329_p2 = scmp.lt.s32.totalorder %s3323_s19, %s3323_s19 }
   0x9   :  { %p3330_p3 = por %p3329_p2, %p3328_p1 }
   0xb   :  { %p3331_p4 = pnand %p3330_p3, %p3324_p0 }
   0xd   :  { %3334 = shalt.err (!%p3331_p4)
}
   0xe   :  { %s3486_s20 = smov 256   ;;  %s3487_s21 = smov 16  }
   0xf   :  { %44 = dma.hbm_to_vmem [thread:$0]  %s3665_s1, 1024, %s39_s18, [#allocation6], %s3486_s20, %s3486_s20, %s3487_s21  }
  0x10   :  { %s3488_s24 = smov [#allocation8]  }
  0x11   :  { %s60_s25 = sshll.u32 %s3488_s24, 4  ;;  %s61_s25 = int_to_ptr.vmem [resolvable:$true] %s60_s25 }
  0x12   :  { %s3343_s26 = scalar_lea.vmem %s61_s25, 16384  ;;  %p3348_p6 = scmp.lt.s32.totalorder %s61_s25, %s61_s25 }
  0x13   :  { %p3344_p5 = scmp.ne.s32.totalorder %s61_s25, %s3343_s26  ;;  %p3349_p7 = scmp.lt.s32.totalorder %s3343_s26, %s3343_s26 }
  0x15   :  { %p3350_p8 = por %p3349_p7, %p3348_p6 }
  0x17   :  { %p3351_p9 = pnand %p3350_p8, %p3344_p5 }
  0x19   :  { %3354 = shalt.err (!%p3351_p9)
}
  0x1a   :  { %66 = dma.hbm_to_vmem [thread:$0]  %s3667_s3, 16384, %s61_s25, [#allocation9], %s3486_s20, %s3486_s20, %s3487_s21  }
  0x1b   :  { %s3489_s29 = smov [#allocation11]   ;;  %s3490_s12 = smov [#allocation2]  }
  0x1c   :  { %s88_s30 = sshll.u32 %s3489_s29, 4  ;;  %s26_s13 = sshll.u32 %s3490_s12, 4  ;;  %s89_s30 = int_to_ptr.vmem [resolvable:$true] %s88_s30  ;;  %s27_s13 = int_to_ptr.vmem [resolvable:$true] %s26_s13 }
  0x1d   :  { %s3363_s1 = scalar_lea.vmem %s89_s30, 3072  ;;  %p3368_p11 = scmp.lt.s32.totalorder %s89_s30, %s89_s30 }
  0x1e   :  { %p3364_p10 = scmp.ne.s32.totalorder %s89_s30, %s3363_s1  ;;  %p3369_p12 = scmp.lt.s32.totalorder %s3363_s1, %s3363_s1 }
  0x20   :  { %p3370_p13 = por %p3369_p12, %p3368_p11 }
  0x22   :  { %p3371_p0 = pnand %p3370_p13, %p3364_p10 }
  0x24   :  { %3374 = shalt.err (!%p3371_p0)
}
  0x25   :  { %s3491_s14 = smov 64   ;;  %s3492_s15 = smov 4  }
  0x26   :  { %94 = dma.hbm_to_vmem [thread:$0]  %s3671_s7, 3072, %s89_s30, [#allocation12], %s3491_s14, %s3491_s14, %s3492_s15  }
  0x27   :  { %s3383_s17 = scalar_lea.vmem %s27_s13, 128  ;;  %p3388_p2 = scmp.lt.s32.totalorder %s27_s13, %s27_s13 }
  0x28   :  { %p3384_p1 = scmp.ne.s32.totalorder %s27_s13, %s3383_s17  ;;  %p3389_p3 = scmp.lt.s32.totalorder %s3383_s17, %s3383_s17 }
  0x2a   :  { %p3390_p4 = por %p3389_p3, %p3388_p2 }
  0x2c   :  { %p3391_p5 = pnand %p3390_p4, %p3384_p1 }
  0x2e   :  { %3394 = shalt.err (!%p3391_p5)
}
  0x2f   :  { %32 = dma.hbm_to_vmem [thread:$0]  %s3664_s0, 128, %s27_s13, [#allocation3], %s3491_s14, %s3491_s14, %s3492_s15  }
  0x30   :  { %s3493_s20 = smov [#allocation7]   ;;  %s3494_s22 = smov [#allocation10]  }
  0x31   :  { %s51_s21 = sshll.u32 %s3493_s20, 4  ;;  %s74_s23 = sshll.u32 %s3494_s22, 4  ;;  %s52_s21 = int_to_ptr.vmem [resolvable:$true] %s51_s21  ;;  %s75_s23 = int_to_ptr.vmem [resolvable:$true] %s74_s23 }
  0x32   :  { %s3403_s7 = scalar_lea.vmem %s52_s21, 64  ;;  %p3408_p7 = scmp.lt.s32.totalorder %s52_s21, %s52_s21 }
  0x33   :  { %p3404_p6 = scmp.ne.s32.totalorder %s52_s21, %s3403_s7  ;;  %p3409_p8 = scmp.lt.s32.totalorder %s3403_s7, %s3403_s7 }
  0x35   :  { %p3410_p9 = por %p3409_p8, %p3408_p7 }
  0x37   :  { %p3411_p10 = pnand %p3410_p9, %p3404_p6 }
  0x39   :  { %3414 = shalt.err (!%p3411_p10)
}
  0x3a   :  { %54 = dma.hbm_to_vmem [thread:$0]  %s3666_s2, 64, %s52_s21, [#allocation6]  }
  0x3b   :  { %s3423_s26 = scalar_lea.vmem %s75_s23, 12288  ;;  %p3428_p12 = scmp.lt.s32.totalorder %s75_s23, %s75_s23 }
  0x3c   :  { %p3424_p11 = scmp.ne.s32.totalorder %s75_s23, %s3423_s26  ;;  %p3429_p13 = scmp.lt.s32.totalorder %s3423_s26, %s3423_s26 }
  0x3e   :  { %p3430_p0 = por %p3429_p13, %p3428_p12 }
  0x40   :  { %p3431_p1 = pnand %p3430_p0, %p3424_p11 }
  0x42   :  { %3434 = shalt.err (!%p3431_p1)
}
  0x43   :  { %s3495_s0 = smov 192   ;;  %s3496_s27 = smov 12  }
  0x44   :  { %80 = dma.hbm_to_vmem [thread:$0]  %s3669_s5, 12288, %s75_s23, [#allocation9], %s3495_s0, %s3495_s0, %s3496_s27  }
  0x45   :  { %s3497_s30 = smov [#allocation13]  }
  0x46   :  { %s102_s12 = sshll.u32 %s3497_s30, 4  ;;  %s103_s12 = int_to_ptr.vmem [resolvable:$true] %s102_s12 }
  0x47   :  { %s3443_s13 = scalar_lea.vmem %s103_s12, 1024  ;;  %p3448_p3 = scmp.lt.s32.totalorder %s103_s12, %s103_s12 }
  0x48   :  { %p3444_p2 = scmp.ne.s32.totalorder %s103_s12, %s3443_s13  ;;  %p3449_p4 = scmp.lt.s32.totalorder %s3443_s13, %s3443_s13 }
  0x4a   :  { %p3450_p5 = por %p3449_p4, %p3448_p3 }
  0x4c   :  { %p3451_p6 = pnand %p3450_p5, %p3444_p2 }
  0x4e   :  { %3454 = shalt.err (!%p3451_p6)
}
  0x4f   :  { %108 = dma.hbm_to_vmem [thread:$0]  %s3673_s9, 1024, %s103_s12, [#allocation12], %s3491_s14, %s3491_s14, %s3492_s15  }
  0x50   :  { %3475 = dma.done.wait [#allocation3], 128  }
  0x51   :  { %3476 = vsyncadd [#allocation3], 4294967168 }
  0x52   :  { %3477 = dma.done.wait [#allocation6], 1088  }
  0x53   :  { %3478 = vsyncadd [#allocation6], 4294966208 }
  0x54   :  { %3479 = dma.done.wait [#allocation9], 28672  }
  0x55   :  { %3480 = vsyncadd [#allocation9], 4294938624 }
  0x56   :  { %3481 = dma.done.wait [#allocation12], 4096  }
  0x57   :  { %3482 = vsyncadd [#allocation12], 4294963200  ;;  %v3498_v0 = vmov 0   ;;  %v2950_v1 = vld [vmem:[#allocation5 + $0x24] ss:$16 sps:$4 sm:$0xff]   ;;  %v2956_v6 = vld [vmem:[#allocation2] sm:$0xff]  }
  0x58   :  { %246 = vmatprep.mubr.bf16.mxu1 %v3498_v0  ;;  %v2952_v2 = vld [vmem:[#allocation5 + $0x20] ss:$16 sps:$4 sm:$0xff]   ;;  %226 = vmatprep.subr.bf16.mxu1 %v2950_v1  ;;  %v2953_v3 = vld [vmem:[#allocation5 + $0x4] ss:$16 sps:$4 sm:$0xff]   ;;  %v2959_v5 = vld [vmem:[#allocation5 + $0x2c] ss:$16 sps:$4 sm:$0xff]  }
  0x59   :  { %227 = vmatpush1.bf16.msra.mxu1 %v2952_v2  ;;  %v2955_v4 = vld [vmem:[#allocation5] ss:$16 sps:$4 sm:$0xff]   ;;  %v2957_v7 = vld [vmem:[#allocation5 + $0x28] ss:$16 sps:$4 sm:$0xff]   ;;  %vm210_vm0 = vcmask 261120   ;;  %vm3500_vm1 = vmmov 0  }
  0x5a   :  { %228 = vmatprep.subr.bf16.mxu1 %v2953_v3  ;;  %v2963_v8 = vld [vmem:[#allocation8 + $0xe4] ss:$16 sps:$4 sm:$0xff]   ;;  %v2965_v9 = vld [vmem:[#allocation8 + $0xe0] ss:$16 sps:$4 sm:$0xff]   ;;  %v2962_v10 = vld [vmem:[#allocation5 + $0xc] ss:$16 sps:$4 sm:$0xff]  }
  0x5b   :  { %v2966_v11 = vld [vmem:[#allocation8 + $0xc4] ss:$16 sps:$4 sm:$0xff]   ;;  %1102 = vmatprep.subr.bf16.mxu0 %v2963_v8  ;;  %v2968_v12 = vld [vmem:[#allocation8 + $0xc0] ss:$16 sps:$4 sm:$0xff]  }
  0x5c   :  { %1103 = vmatpush1.bf16.msra.mxu0 %v2965_v9  ;;  %v2960_v13 = vld [vmem:[#allocation5 + $0x8] ss:$16 sps:$4 sm:$0xff]   ;;  %v2971_v16 = vld [vmem:[#allocation8 + $0x2e0] ss:$16 sps:$4 sm:$0xff]  }
  0x5d   :  { %229 = vmatpush1.bf16.msra.mxu1 %v2955_v4  ;;  %v2969_v14 = vld [vmem:[#allocation8 + $0xa4] ss:$16 sps:$4 sm:$0xff]   ;;  %1104 = vmatprep.subr.bf16.mxu0 %v2966_v11  ;;  %v2974_v17 = vld [vmem:[#allocation8 + $0xa0] ss:$16 sps:$4 sm:$0xff]   ;;  %v3070_v11 = vld [vmem:[#allocation8 + $0x2ec] ss:$16 sps:$4 sm:$0xff]  }
  0x5e   :  { %269 = vmatprep.subr.bf16.mxu1 %v2959_v5  ;;  %v2973_v15 = vld [vmem:[#allocation8 + $0x2e4] ss:$16 sps:$4 sm:$0xff]   ;;  %v2980_v20 = vld [vmem:[#allocation8 + $0x80] ss:$16 sps:$4 sm:$0xff]  }
  0x5f   :  { %v2975_v18 = vld [vmem:[#allocation8 + $0x84] ss:$16 sps:$4 sm:$0xff]   ;;  %v2977_v21 = vld [vmem:[#allocation8 + $0x2c0] ss:$16 sps:$4 sm:$0xff]  }
  0x60   :  { %2547 = vmatmul.mubr.msk.bf16.vlgmr.msra.gmra.mxu1 %vm210_vm0, %v2956_v6  ;;  %1105 = vmatpush1.bf16.msra.mxu0 %v2968_v12  ;;  %v2979_v19 = vld [vmem:[#allocation8 + $0x2c4] ss:$16 sps:$4 sm:$0xff]   ;;  %v2983_v24 = vld [vmem:[#allocation8 + $0x2a0] ss:$16 sps:$4 sm:$0xff]   ;;  %v145_v12 = vlaneseq }
  0x61   :  { %270 = vmatpush1.bf16.msra.mxu1 %v2957_v7  ;;  %289 = vmatprep.mubr.bf16.mxu1 %v3498_v0  ;;  %v2981_v22 = vld [vmem:[#allocation8 + $0x64] ss:$16 sps:$4 sm:$0xff]   ;;  %v2986_v25 = vld [vmem:[#allocation8 + $0x60] ss:$16 sps:$4 sm:$0xff]   ;;  %v3058_v7 = vld [vmem:[#allocation8 + $0xec] ss:$16 sps:$4 sm:$0xff]  }
  0x62   :  { %271 = vmatprep.subr.bf16.mxu1 %v2962_v10  ;;  %1106 = vmatprep.subr.bf16.mxu0 %v2969_v14  ;;  %v2985_v23 = vld [vmem:[#allocation8 + $0x2a4] ss:$16 sps:$4 sm:$0xff]   ;;  %v2992_v28 = vld [vmem:[#allocation8 + $0x40] ss:$16 sps:$4 sm:$0xff]  }
  0x63   :  { %v2987_v26 = vld [vmem:[#allocation8 + $0x44] ss:$16 sps:$4 sm:$0xff]   ;;  %v2989_v29 = vld [vmem:[#allocation8 + $0x280] ss:$16 sps:$4 sm:$0xff]  }
  0x64   :  { %1107 = vmatpush1.bf16.msra.mxu0 %v2974_v17  ;;  %v2991_v27 = vld [vmem:[#allocation8 + $0x284] ss:$16 sps:$4 sm:$0xff]   ;;  %v2995_v32 = vld [vmem:[#allocation8 + $0x260] ss:$16 sps:$4 sm:$0xff]  }
  0x65   :  { %272 = vmatpush1.bf16.msra.mxu1 %v2960_v13  ;;  %1108 = vmatprep.subr.bf16.mxu0 %v2975_v18  ;;  %v2993_v30 = vld [vmem:[#allocation8 + $0x24] ss:$16 sps:$4 sm:$0xff]   ;;  %v2998_v33 = vld [vmem:[#allocation8 + $0x20] ss:$16 sps:$4 sm:$0xff]   ;;  %v3596_v13 = vshrl.u32 %v145_v12, 7 }
  0x66   :  { %1145 = vmatprep.subr.bf16.mxu1 %v2973_v15  ;;  %v2997_v31 = vld [vmem:[#allocation8 + $0x264] ss:$16 sps:$4 sm:$0xff]   ;;  %v3004_v36 = vld [vmem:[#allocation8] ss:$16 sps:$4 sm:$0xff]   ;;  %v3098_v12 = vld [vmem:[#allocation8 + $0x248] ss:$16 sps:$4 sm:$0xff]  }
  0x67   :  { %v2999_v34 = vld [vmem:[#allocation8 + $0x4] ss:$16 sps:$4 sm:$0xff]   ;;  %v3001_v37 = vld [vmem:[#allocation8 + $0x240] ss:$16 sps:$4 sm:$0xff]   ;;  %v3599_v14 = vsub.s32 1, %v3596_v13  ;;  %v3602_v15 = vsub.s32 0, %v3596_v13 }
  0x68   :  { %2548 = vmatmul.mubr.msk.bf16.vlgmr.msra.gmra.mxu1 %vm210_vm0, %v2956_v6  ;;  %1109 = vmatpush1.bf16.msra.mxu0 %v2980_v20  ;;  %v3003_v35 = vld [vmem:[#allocation8 + $0x244] ss:$16 sps:$4 sm:$0xff]   ;;  %v3007_v40 = vld [vmem:[#allocation8 + $0x220] ss:$16 sps:$4 sm:$0xff]  }
  0x69   :  { %1146 = vmatpush1.bf16.msra.mxu1 %v2971_v16  ;;  %1110 = vmatprep.subr.bf16.mxu0 %v2981_v22  ;;  %v3005_v38 = vld [vmem:[#allocation8 + $0x1e4] ss:$16 sps:$4 sm:$0xff]   ;;  %v3010_v41 = vld [vmem:[#allocation8 + $0x1e0] ss:$16 sps:$4 sm:$0xff]   ;;  %v143_v16 = vld [vmem:[#allocation7] sm:$0xf] }
  0x6a   :  { %1147 = vmatprep.subr.bf16.mxu1 %v2979_v19  ;;  %v3009_v39 = vld [vmem:[#allocation8 + $0x224] ss:$16 sps:$4 sm:$0xff]   ;;  %v3016_v44 = vld [vmem:[#allocation8 + $0x1c0] ss:$16 sps:$4 sm:$0xff]   ;;  %v152_v18 = vrot.slane %v143_v16, %v3599_v14  ;;  %v148_v19 = vrot.slane %v143_v16, %v3602_v15 }
  0x6b   :  { %v3011_v42 = vld [vmem:[#allocation8 + $0x1c4] ss:$16 sps:$4 sm:$0xff]   ;;  %v3013_v45 = vld [vmem:[#allocation8 + $0x200] ss:$16 sps:$4 sm:$0xff]  }
  0x6c   :  { %1111 = vmatpush1.bf16.msra.mxu0 %v2986_v25  ;;  %v3015_v43 = vld [vmem:[#allocation8 + $0x204] ss:$16 sps:$4 sm:$0xff]   ;;  %v3022_v48 = vld [vmem:[#allocation8 + $0x1a0] ss:$16 sps:$4 sm:$0xff]  }
  0x6d   :  { %1148 = vmatpush1.bf16.msra.mxu1 %v2977_v21  ;;  %1112 = vmatprep.subr.bf16.mxu0 %v2987_v26  ;;  %v3017_v46 = vld [vmem:[#allocation8 + $0x1a4] ss:$16 sps:$4 sm:$0xff]   ;;  %v3019_v49 = vld [vmem:[#allocation8 + $0x3e0] ss:$16 sps:$4 sm:$0xff]  }
  0x6e   :  { %1149 = vmatprep.subr.bf16.mxu1 %v2985_v23  ;;  %v3021_v47 = vld [vmem:[#allocation8 + $0x3e4] ss:$16 sps:$4 sm:$0xff]   ;;  %v3028_v52 = vld [vmem:[#allocation8 + $0x180] ss:$16 sps:$4 sm:$0xff]  }
  0x6f   :  { %v3023_v50 = vld [vmem:[#allocation8 + $0x184] ss:$16 sps:$4 sm:$0xff]   ;;  %v3025_v53 = vld [vmem:[#allocation8 + $0x3c0] ss:$16 sps:$4 sm:$0xff]  }
  0x70   :  { %1113 = vmatpush1.bf16.msra.mxu0 %v2992_v28  ;;  %v3027_v51 = vld [vmem:[#allocation8 + $0x3c4] ss:$16 sps:$4 sm:$0xff]   ;;  %v3034_v56 = vld [vmem:[#allocation8 + $0x160] ss:$16 sps:$4 sm:$0xff]  }
  0x71   :  { %1150 = vmatpush1.bf16.msra.mxu1 %v2983_v24  ;;  %1114 = vmatprep.subr.bf16.mxu0 %v2993_v30  ;;  %v3029_v54 = vld [vmem:[#allocation8 + $0x164] ss:$16 sps:$4 sm:$0xff]   ;;  %v3031_v57 = vld [vmem:[#allocation8 + $0x3a0] ss:$16 sps:$4 sm:$0xff]   ;;  %v159_v24 = vsub.s32 3, %v3596_v13 }
  0x72   :  { %1151 = vmatprep.subr.bf16.mxu1 %v2991_v27  ;;  %v3033_v55 = vld [vmem:[#allocation8 + $0x3a4] ss:$16 sps:$4 sm:$0xff]   ;;  %v3037_v60 = vld [vmem:[#allocation8 + $0x380] ss:$16 sps:$4 sm:$0xff]   ;;  %v3608_v27 = vsub.s32 2, %v3596_v13 }
  0x73   :  { %v3035_v58 = vld [vmem:[#allocation8 + $0x144] ss:$16 sps:$4 sm:$0xff]   ;;  %v3040_v61 = vld [vmem:[#allocation8 + $0x140] ss:$16 sps:$4 sm:$0xff]  }
  0x74   :  { %1115 = vmatpush1.bf16.msra.mxu0 %v2998_v33  ;;  %v3039_v59 = vld [vmem:[#allocation8 + $0x384] ss:$16 sps:$4 sm:$0xff]   ;;  %v3043_v0 = vld [vmem:[#allocation8 + $0x360] ss:$16 sps:$4 sm:$0xff]   ;;  %v160_v33 = vrot.slane %v143_v16, %v159_v24 }
  0x75   :  { %1152 = vmatpush1.bf16.msra.mxu1 %v2989_v29  ;;  %1116 = vmatprep.subr.bf16.mxu0 %v2999_v34  ;;  %v3041_v62 = vld [vmem:[#allocation8 + $0x124] ss:$16 sps:$4 sm:$0xff]   ;;  %v3046_v1 = vld [vmem:[#allocation8 + $0x120] ss:$16 sps:$4 sm:$0xff]  }
  0x76   :  { %1153 = vmatprep.subr.bf16.mxu1 %v2997_v31  ;;  %v3045_v63 = vld [vmem:[#allocation8 + $0x364] ss:$16 sps:$4 sm:$0xff]   ;;  %v3049_v4 = vld [vmem:[#allocation8 + $0x340] ss:$16 sps:$4 sm:$0xff]  }
  0x77   :  { %v3047_v2 = vld [vmem:[#allocation8 + $0x104] ss:$16 sps:$4 sm:$0xff]   ;;  %v3052_v5 = vld [vmem:[#allocation8 + $0x100] ss:$16 sps:$4 sm:$0xff]  }
  0x78   :  { %1117 = vmatpush1.bf16.msra.mxu0 %v3004_v36  ;;  %v3051_v3 = vld [vmem:[#allocation8 + $0x344] ss:$16 sps:$4 sm:$0xff]   ;;  %v3053_v8 = vld [vmem:[#allocation8 + $0x320] ss:$16 sps:$4 sm:$0xff]  }
  0x79   :  { %1154 = vmatpush1.bf16.msra.mxu1 %v2995_v32  ;;  %1118 = vmatprep.subr.bf16.mxu0 %v3005_v38  ;;  %v3055_v6 = vld [vmem:[#allocation8 + $0x324] ss:$16 sps:$4 sm:$0xff]   ;;  %v3059_v10 = vld [vmem:[#allocation8 + $0x300] ss:$16 sps:$4 sm:$0xff]   ;;  %v3056_v38 = vld [vmem:[#allocation8 + $0xe8] ss:$16 sps:$4 sm:$0xff]  }
  0x7a   :  { %1155 = vmatprep.subr.bf16.mxu1 %v3003_v35  ;;  %v3061_v9 = vld [vmem:[#allocation8 + $0x304] ss:$16 sps:$4 sm:$0xff]   ;;  %v156_v35 = vrot.slane %v143_v16, %v3608_v27  ;;  %v3103_v16 = vld [vmem:[#allocation8 + $0x1ec] ss:$16 sps:$4 sm:$0xff]  }
  0x7c   :  { %1119 = vmatpush2.bf16.msra.mxu0 %v3010_v41  ;;  %v3064_v41 = vld [vmem:[#allocation8 + $0xcc] ss:$16 sps:$4 sm:$0xff]  }
  0x7d   :  { %1156 = vmatpush1.bf16.msra.mxu1 %v3001_v37  ;;  %1120 = vmatprep.subr.bf16.mxu0 %v3011_v42 }
  0x7e   :  { %1157 = vmatprep.subr.bf16.mxu1 %v3009_v39 }
  0x80   :  { %1121 = vmatpush2.bf16.msra.mxu0 %v3016_v44 }
  0x81   :  { %1158 = vmatpush1.bf16.msra.mxu1 %v3007_v40  ;;  %1122 = vmatprep.subr.bf16.mxu0 %v3017_v46 }
  0x82   :  { %1159 = vmatprep.subr.bf16.mxu1 %v3015_v43 }
  0x84   :  { %1123 = vmatpush2.bf16.msra.mxu0 %v3022_v48 }
  0x85   :  { %1160 = vmatpush1.bf16.msra.mxu1 %v3013_v45  ;;  %1124 = vmatprep.subr.bf16.mxu0 %v3023_v50 }
  0x86   :  { %1161 = vmatprep.subr.bf16.mxu1 %v3021_v47  ;;  %v3062_v47 = vld [vmem:[#allocation8 + $0xc8] ss:$16 sps:$4 sm:$0xff]  }
  0x88   :  { %1125 = vmatpush2.bf16.msra.mxu0 %v3028_v52 }
  0x89   :  { %1162 = vmatpush2.bf16.msra.mxu1 %v3019_v49  ;;  %1126 = vmatprep.subr.bf16.mxu0 %v3029_v54  ;;  %v3067_v49 = vld [vmem:[#allocation8 + $0xac] ss:$16 sps:$4 sm:$0xff]   ;;  %v3065_v54 = vld [vmem:[#allocation8 + $0xa8] ss:$16 sps:$4 sm:$0xff]  }
  0x8a   :  { %1163 = vmatprep.subr.bf16.mxu1 %v3027_v51 }
  0x8c   :  { %1127 = vmatpush2.bf16.msra.mxu0 %v3034_v56 }
  0x8d   :  { %1164 = vmatpush2.bf16.msra.mxu1 %v3025_v53  ;;  %1128 = vmatprep.subr.bf16.mxu0 %v3035_v58  ;;  %v3076_v58 = vld [vmem:[#allocation8 + $0x2cc] ss:$16 sps:$4 sm:$0xff]  }
  0x8e   :  { %1165 = vmatprep.subr.bf16.mxu1 %v3033_v55  ;;  %v3068_v55 = vld [vmem:[#allocation8 + $0x2e8] ss:$16 sps:$4 sm:$0xff]  }
  0x90   :  { %1129 = vmatpush2.bf16.msra.mxu0 %v3040_v61  ;;  %v3079_v61 = vld [vmem:[#allocation8 + $0x6c] ss:$16 sps:$4 sm:$0xff]  }
  0x91   :  { %1166 = vmatpush2.bf16.msra.mxu1 %v3031_v57  ;;  %1130 = vmatprep.subr.bf16.mxu0 %v3041_v62  ;;  %v3073_v57 = vld [vmem:[#allocation8 + $0x8c] ss:$16 sps:$4 sm:$0xff]  }
  0x92   :  { %1167 = vmatprep.subr.bf16.mxu1 %v3039_v59  ;;  %v3071_v59 = vld [vmem:[#allocation8 + $0x88] ss:$16 sps:$4 sm:$0xff]   ;;  %v3082_v62 = vld [vmem:[#allocation8 + $0x2ac] ss:$16 sps:$4 sm:$0xff]  }
  0x94   :  { %1131 = vmatpush2.bf16.msra.mxu0 %v3046_v1  ;;  %v3085_v1 = vld [vmem:[#allocation8 + $0x4c] ss:$16 sps:$4 sm:$0xff]  }
  0x95   :  { %1168 = vmatpush2.bf16.msra.mxu1 %v3037_v60  ;;  %1132 = vmatprep.subr.bf16.mxu0 %v3047_v2  ;;  %v3074_v60 = vld [vmem:[#allocation8 + $0x2c8] ss:$16 sps:$4 sm:$0xff]   ;;  %v3088_v2 = vld [vmem:[#allocation8 + $0x28c] ss:$16 sps:$4 sm:$0xff]  }
  0x96   :  { %1169 = vmatprep.subr.bf16.mxu1 %v3045_v63  ;;  %v3077_v63 = vld [vmem:[#allocation8 + $0x68] ss:$16 sps:$4 sm:$0xff]  }
  0x98   :  { %1133 = vmatpush2.bf16.msra.mxu0 %v3052_v5  ;;  %v3091_v5 = vld [vmem:[#allocation8 + $0x2c] ss:$16 sps:$4 sm:$0xff]  }
  0x99   :  { %1170 = vmatpush2.bf16.msra.mxu1 %v3043_v0  ;;  %1188 = vmatprep.subr.bf16.mxu0 %v3058_v7  ;;  %v3080_v0 = vld [vmem:[#allocation8 + $0x2a8] ss:$16 sps:$4 sm:$0xff]  }
  0x9a   :  { %1171 = vmatprep.subr.bf16.mxu1 %v3051_v3  ;;  %v3083_v3 = vld [vmem:[#allocation8 + $0x48] ss:$16 sps:$4 sm:$0xff]  }
  0x9b   :  { %v3089_v7 = vld [vmem:[#allocation8 + $0x28] ss:$16 sps:$4 sm:$0xff]  }
  0x9d   :  { %1172 = vmatpush2.bf16.msra.mxu1 %v3049_v4  ;;  %v3086_v4 = vld [vmem:[#allocation8 + $0x288] ss:$16 sps:$4 sm:$0xff]  }
  0x9e   :  { %1173 = vmatprep.subr.bf16.mxu1 %v3055_v6  ;;  %v3094_v6 = vld [vmem:[#allocation8 + $0x26c] ss:$16 sps:$4 sm:$0xff]  }
  0xa1   :  { %1174 = vmatpush2.bf16.msra.mxu1 %v3053_v8  ;;  %v3092_v8 = vld [vmem:[#allocation8 + $0x268] ss:$16 sps:$4 sm:$0xff]  }
  0xa2   :  { %1175 = vmatprep.subr.bf16.mxu1 %v3061_v9  ;;  %v3097_v9 = vld [vmem:[#allocation8 + $0xc] ss:$16 sps:$4 sm:$0xff]  }
  0xa5   :  { %1176 = vmatpush2.bf16.msra.mxu1 %v3059_v10  ;;  %v3100_v10 = vld [vmem:[#allocation8 + $0x24c] ss:$16 sps:$4 sm:$0xff]  }
  0xa6   :  { %1231 = vmatprep.subr.bf16.mxu1 %v3070_v11  ;;  %v3095_v11 = vld [vmem:[#allocation8 + $0x8] ss:$16 sps:$4 sm:$0xff]  }
 0x120   :  { %v248_v17 = vpop.f32.mrf.mxu1 }
 0x121   :  { %v249_v25 = vadd.f32 %v248_v17, %v148_v19  ;;  %v3106_v17 = vld [vmem:[#allocation8 + $0x22c] ss:$16 sps:$4 sm:$0xff]  }
 0x122   :  { %v250_v20 = vpop.f32.mrf.mxu1 }
 0x123   :  { %v251_v22 = vadd.f32 %v250_v20, %v152_v18  ;;  %v300_v34 = vmax.f32 %v249_v25, 0.0  ;;  %v3109_v20 = vld [vmem:[#allocation8 + $0x1cc] ss:$16 sps:$4 sm:$0xff]  }
 0x124   :  { %v252_v21 = vpop.f32.mrf.mxu1  ;;  %v3115_v25 = vld [vmem:[#allocation8 + $0x1ac] ss:$16 sps:$4 sm:$0xff]  }
 0x125   :  { %v253_v23 = vadd.f32 %v252_v21, %v148_v19  ;;  %v301_v31 = vmax.f32 %v251_v22, 0.0  ;;  %v3104_v19 = vld [vmem:[#allocation8 + $0x228] ss:$16 sps:$4 sm:$0xff]   ;;  %v3112_v21 = vld [vmem:[#allocation8 + $0x20c] ss:$16 sps:$4 sm:$0xff]  }
 0x126   :  { %v254_v26 = vpop.f32.mrf.mxu1  ;;  %v3107_v22 = vld [vmem:[#allocation8 + $0x1c8] ss:$16 sps:$4 sm:$0xff]  }
 0x127   :  { %v255_v28 = vadd.f32 %v254_v26, %v152_v18  ;;  %v304_v29 = vmax.f32 %v253_v23, 0.0  ;;  %v3101_v18 = vld [vmem:[#allocation8 + $0x1e8] ss:$16 sps:$4 sm:$0xff]   ;;  %v3118_v26 = vld [vmem:[#allocation8 + $0x3ec] ss:$16 sps:$4 sm:$0xff]  }
 0x128   :  { %v291_v30 = vpop.f32.mrf.mxu1  ;;  %v3110_v23 = vld [vmem:[#allocation8 + $0x208] ss:$16 sps:$4 sm:$0xff]  }
 0x129   :  { %v305_v32 = vmax.f32 %v255_v28, 0.0  ;;  %v3613_v39 = vpack.c.bf16 %v304_v29, %v300_v34  ;;  %v292_v44 = vadd.f32 %v291_v30, %v156_v35  ;;  %v3113_v28 = vld [vmem:[#allocation8 + $0x1a8] ss:$16 sps:$4 sm:$0xff]   ;;  %v3121_v30 = vld [vmem:[#allocation8 + $0x18c] ss:$16 sps:$4 sm:$0xff]  }
 0x12a   :  { %v293_v36 = vpop.f32.mrf.mxu1  ;;  %v3116_v29 = vld [vmem:[#allocation8 + $0x3e8] ss:$16 sps:$4 sm:$0xff]   ;;  %v3127_v34 = vld [vmem:[#allocation8 + $0x16c] ss:$16 sps:$4 sm:$0xff]  }
 0x12b   :  { %v309_v37 = vpack.c.bf16 %v305_v32, %v301_v31  ;;  %v294_v42 = vadd.f32 %v293_v36, %v160_v33  ;;  %v302_v52 = vmax.f32 %v292_v44, 0.0  ;;  %v3124_v31 = vld [vmem:[#allocation8 + $0x3cc] ss:$16 sps:$4 sm:$0xff]   ;;  %v3119_v32 = vld [vmem:[#allocation8 + $0x188] ss:$16 sps:$4 sm:$0xff]  }
 0x12c   :  { %v295_v40 = vpop.f32.mrf.mxu1  ;;  %v3125_v36 = vld [vmem:[#allocation8 + $0x168] ss:$16 sps:$4 sm:$0xff]   ;;  %v3142_v44 = vld [vmem:[#allocation8 + $0x36c] ss:$16 sps:$4 sm:$0xff]  }
 0x12d   :  { %v296_v43 = vadd.f32 %v295_v40, %v156_v35  ;;  %1134 = vmatprep.mubr.bf16.mxu0 %v309_v37  ;;  %v303_v50 = vmax.f32 %v294_v42, 0.0  ;;  %v3130_v35 = vld [vmem:[#allocation8 + $0x3ac] ss:$16 sps:$4 sm:$0xff]   ;;  %v3134_v42 = vld [vmem:[#allocation8 + $0x388] ss:$16 sps:$4 sm:$0xff]  }
 0x12e   :  { %v297_v45 = vpop.f32.mrf.mxu1  ;;  %1135 = vmatmul.mubr.bf16.vlgmr.msra.gmra.mxu0 %v3613_v39  ;;  %v3136_v40 = vld [vmem:[#allocation8 + $0x38c] ss:$16 sps:$4 sm:$0xff]  }
 0x12f   :  { %v298_v46 = vadd.f32 %v297_v45, %v160_v33  ;;  %1189 = vmatpush1.bf16.msra.mxu0 %v3056_v38  ;;  %1220 = vmatprep.mubr.bf16.mxu0 %v309_v37  ;;  %v306_v48 = vmax.f32 %v296_v43, 0.0  ;;  %v3122_v33 = vld [vmem:[#allocation8 + $0x3c8] ss:$16 sps:$4 sm:$0xff]   ;;  %v3133_v38 = vld [vmem:[#allocation8 + $0x14c] ss:$16 sps:$4 sm:$0xff]  }
 0x130   :  { %1190 = vmatprep.subr.bf16.mxu0 %v3064_v41  ;;  %v3128_v37 = vld [vmem:[#allocation8 + $0x3a8] ss:$16 sps:$4 sm:$0xff]   ;;  %v3139_v43 = vld [vmem:[#allocation8 + $0x12c] ss:$16 sps:$4 sm:$0xff]  }
 0x131   :  { %v307_v51 = vmax.f32 %v298_v46, 0.0  ;;  %v3616_v56 = vpack.c.bf16 %v306_v48, %v302_v52  ;;  %v3131_v41 = vld [vmem:[#allocation8 + $0x148] ss:$16 sps:$4 sm:$0xff]   ;;  %v3148_v48 = vld [vmem:[#allocation8 + $0x34c] ss:$16 sps:$4 sm:$0xff]  }
 0x132   :  { %v3137_v45 = vld [vmem:[#allocation8 + $0x128] ss:$16 sps:$4 sm:$0xff]  }
 0x133   :  { %v311_v53 = vpack.c.bf16 %v307_v51, %v303_v50  ;;  %1191 = vmatpush1.bf16.msra.mxu0 %v3062_v47  ;;  %v3140_v46 = vld [vmem:[#allocation8 + $0x368] ss:$16 sps:$4 sm:$0xff]   ;;  %v3145_v47 = vld [vmem:[#allocation8 + $0x10c] ss:$16 sps:$4 sm:$0xff]  }
 0x134   :  { %1192 = vmatprep.subr.bf16.mxu0 %v3067_v49  ;;  %v3143_v49 = vld [vmem:[#allocation8 + $0x108] ss:$16 sps:$4 sm:$0xff]   ;;  %v3151_v51 = vld [vmem:[#allocation8 + $0x32c] ss:$16 sps:$4 sm:$0xff]  }
 0x135   :  { %1177 = vmatprep.mubr.bf16.mxu1 %v311_v53  ;;  %v3146_v50 = vld [vmem:[#allocation8 + $0x348] ss:$16 sps:$4 sm:$0xff]  }
 0x136   :  { %1178 = vmatmul.mubr.bf16.vlgmr.msra.gmra.mxu1 %v3616_v56  ;;  %v3157_v52 = vld [vmem:[#allocation10 + $0xac] ss:$12 sps:$4 sm:$0xff]  }
 0x137   :  { %1193 = vmatpush1.bf16.msra.mxu0 %v3065_v54  ;;  %1232 = vmatpush1.bf16.msra.mxu1 %v3068_v55  ;;  %v3155_v54 = vld [vmem:[#allocation10 + $0xa8] ss:$12 sps:$4 sm:$0xff]   ;;  %v3154_v55 = vld [vmem:[#allocation8 + $0x30c] ss:$16 sps:$4 sm:$0xff]  }
 0x138   :  { %1263 = vmatprep.mubr.bf16.mxu1 %v311_v53  ;;  %1194 = vmatprep.subr.bf16.mxu0 %v3073_v57  ;;  %v3149_v53 = vld [vmem:[#allocation8 + $0x328] ss:$16 sps:$4 sm:$0xff]   ;;  %v3160_v57 = vld [vmem:[#allocation10 + $0x94] ss:$12 sps:$4 sm:$0xff]  }
 0x139   :  { %1233 = vmatprep.subr.bf16.mxu1 %v3076_v58  ;;  %v3152_v58 = vld [vmem:[#allocation8 + $0x308] ss:$16 sps:$4 sm:$0xff]  }
 0x13b   :  { %1195 = vmatpush1.bf16.msra.mxu0 %v3071_v59  ;;  %1234 = vmatpush1.bf16.msra.mxu1 %v3074_v60  ;;  %v3158_v59 = vld [vmem:[#allocation10 + $0x90] ss:$12 sps:$4 sm:$0xff]  }
 0x13c   :  { %1196 = vmatprep.subr.bf16.mxu0 %v3079_v61  ;;  %1235 = vmatprep.subr.bf16.mxu1 %v3082_v62  ;;  %v3163_v60 = vld [vmem:[#allocation10 + $0x7c] ss:$12 sps:$4 sm:$0xff]   ;;  %v3161_v61 = vld [vmem:[#allocation10 + $0x78] ss:$12 sps:$4 sm:$0xff]  }
 0x13d   :  { %v3166_v62 = vld [vmem:[#allocation10 + $0x64] ss:$12 sps:$4 sm:$0xff]  }
 0x13f   :  { %1197 = vmatpush1.bf16.msra.mxu0 %v3077_v63  ;;  %1236 = vmatpush1.bf16.msra.mxu1 %v3080_v0  ;;  %v3164_v63 = vld [vmem:[#allocation10 + $0x60] ss:$12 sps:$4 sm:$0xff]  }
 0x140   :  { %1198 = vmatprep.subr.bf16.mxu0 %v3085_v1  ;;  %1237 = vmatprep.subr.bf16.mxu1 %v3088_v2  ;;  %v3169_v0 = vld [vmem:[#allocation10 + $0x4c] ss:$12 sps:$4 sm:$0xff]   ;;  %v3172_v1 = vld [vmem:[#allocation10 + $0x34] ss:$12 sps:$4 sm:$0xff]   ;;  %v3170_v2 = vld [vmem:[#allocation10 + $0x30] ss:$12 sps:$4 sm:$0xff]  }
 0x143   :  { %1199 = vmatpush1.bf16.msra.mxu0 %v3083_v3  ;;  %1238 = vmatpush1.bf16.msra.mxu1 %v3086_v4  ;;  %v3175_v3 = vld [vmem:[#allocation10 + $0x1c] ss:$12 sps:$4 sm:$0xff]  }
 0x144   :  { %1200 = vmatprep.subr.bf16.mxu0 %v3091_v5  ;;  %1239 = vmatprep.subr.bf16.mxu1 %v3094_v6  ;;  %v3203_v4 = vld [vmem:[#allocation10 + $0x228] ss:$12 sps:$4 sm:$0xff]   ;;  %v3205_v5 = vld [vmem:[#allocation10 + $0x22c] ss:$12 sps:$4 sm:$0xff]  }
 0x145   :  { %v3173_v6 = vld [vmem:[#allocation10 + $0x18] ss:$12 sps:$4 sm:$0xff]  }
 0x147   :  { %1201 = vmatpush1.bf16.msra.mxu0 %v3089_v7  ;;  %1240 = vmatpush1.bf16.msra.mxu1 %v3092_v8  ;;  %v3178_v7 = vld [vmem:[#allocation10 + $0x4] ss:$12 sps:$4 sm:$0xff]   ;;  %v3210_v8 = vld [vmem:[#allocation10 + $0x214] ss:$12 sps:$4 sm:$0xff]  }
 0x148   :  { %1202 = vmatprep.subr.bf16.mxu0 %v3097_v9  ;;  %1241 = vmatprep.subr.bf16.mxu1 %v3100_v10  ;;  %v3176_v9 = vld [vmem:[#allocation10] ss:$12 sps:$4 sm:$0xff]  }
 0x149   :  { %v3181_v10 = vld [vmem:[#allocation10 + $0x16c] ss:$12 sps:$4 sm:$0xff]  }
 0x14b   :  { %1203 = vmatpush1.bf16.msra.mxu0 %v3095_v11  ;;  %1242 = vmatpush1.bf16.msra.mxu1 %v3098_v12  ;;  %v3213_v11 = vld [vmem:[#allocation10 + $0x1f8] ss:$12 sps:$4 sm:$0xff]   ;;  %v3215_v12 = vld [vmem:[#allocation10 + $0x1fc] ss:$12 sps:$4 sm:$0xff]  }
 0x14c   :  { %1204 = vmatprep.subr.bf16.mxu0 %v3103_v16  ;;  %1243 = vmatprep.subr.bf16.mxu1 %v3106_v17  ;;  %v3179_v16 = vld [vmem:[#allocation10 + $0x168] ss:$12 sps:$4 sm:$0xff]  }
 0x14d   :  { %v3184_v17 = vld [vmem:[#allocation10 + $0x154] ss:$12 sps:$4 sm:$0xff]  }
 0x14f   :  { %1205 = vmatpush2.bf16.msra.mxu0 %v3101_v18  ;;  %1244 = vmatpush1.bf16.msra.mxu1 %v3104_v19  ;;  %v3218_v18 = vld [vmem:[#allocation10 + $0x1e0] ss:$12 sps:$4 sm:$0xff]   ;;  %v3220_v19 = vld [vmem:[#allocation10 + $0x1e4] ss:$12 sps:$4 sm:$0xff]  }
 0x150   :  { %1206 = vmatprep.subr.bf16.mxu0 %v3109_v20  ;;  %1245 = vmatprep.subr.bf16.mxu1 %v3112_v21  ;;  %v3182_v20 = vld [vmem:[#allocation10 + $0x150] ss:$12 sps:$4 sm:$0xff]  }
 0x151   :  { %v3187_v21 = vld [vmem:[#allocation10 + $0x13c] ss:$12 sps:$4 sm:$0xff]  }
 0x153   :  { %1207 = vmatpush2.bf16.msra.mxu0 %v3107_v22  ;;  %1246 = vmatpush1.bf16.msra.mxu1 %v3110_v23  ;;  %v3223_v22 = vld [vmem:[#allocation10 + $0x1c8] ss:$12 sps:$4 sm:$0xff]   ;;  %v3225_v23 = vld [vmem:[#allocation10 + $0x1cc] ss:$12 sps:$4 sm:$0xff]  }
 0x154   :  { %1208 = vmatprep.subr.bf16.mxu0 %v3115_v25  ;;  %1247 = vmatprep.subr.bf16.mxu1 %v3118_v26  ;;  %v3185_v25 = vld [vmem:[#allocation10 + $0x138] ss:$12 sps:$4 sm:$0xff]  }
 0x155   :  { %v3190_v26 = vld [vmem:[#allocation10 + $0x124] ss:$12 sps:$4 sm:$0xff]  }
 0x157   :  { %1209 = vmatpush2.bf16.msra.mxu0 %v3113_v28  ;;  %1248 = vmatpush2.bf16.msra.mxu1 %v3116_v29  ;;  %v3228_v28 = vld [vmem:[#allocation10 + $0x1b0] ss:$12 sps:$4 sm:$0xff]   ;;  %v3230_v29 = vld [vmem:[#allocation10 + $0x1b4] ss:$12 sps:$4 sm:$0xff]  }
 0x158   :  { %1210 = vmatprep.subr.bf16.mxu0 %v3121_v30  ;;  %1249 = vmatprep.subr.bf16.mxu1 %v3124_v31  ;;  %v3188_v30 = vld [vmem:[#allocation10 + $0x120] ss:$12 sps:$4 sm:$0xff]  }
 0x159   :  { %v3193_v31 = vld [vmem:[#allocation10 + $0x10c] ss:$12 sps:$4 sm:$0xff]  }
 0x15b   :  { %1211 = vmatpush2.bf16.msra.mxu0 %v3119_v32  ;;  %1250 = vmatpush2.bf16.msra.mxu1 %v3122_v33  ;;  %v3233_v32 = vld [vmem:[#allocation10 + $0x198] ss:$12 sps:$4 sm:$0xff]   ;;  %v3235_v33 = vld [vmem:[#allocation10 + $0x19c] ss:$12 sps:$4 sm:$0xff]  }
 0x15c   :  { %1212 = vmatprep.subr.bf16.mxu0 %v3127_v34  ;;  %1251 = vmatprep.subr.bf16.mxu1 %v3130_v35  ;;  %v3191_v34 = vld [vmem:[#allocation10 + $0x108] ss:$12 sps:$4 sm:$0xff]  }
 0x15d   :  { %v3196_v35 = vld [vmem:[#allocation10 + $0xf4] ss:$12 sps:$4 sm:$0xff]  }
 0x15f   :  { %1213 = vmatpush2.bf16.msra.mxu0 %v3125_v36  ;;  %1252 = vmatpush2.bf16.msra.mxu1 %v3128_v37  ;;  %v3238_v36 = vld [vmem:[#allocation10 + $0x180] ss:$12 sps:$4 sm:$0xff]   ;;  %v3240_v37 = vld [vmem:[#allocation10 + $0x184] ss:$12 sps:$4 sm:$0xff]  }
 0x160   :  { %1214 = vmatprep.subr.bf16.mxu0 %v3133_v38  ;;  %1253 = vmatprep.subr.bf16.mxu1 %v3136_v40  ;;  %v3194_v38 = vld [vmem:[#allocation10 + $0xf0] ss:$12 sps:$4 sm:$0xff]  }
 0x161   :  { %v3199_v40 = vld [vmem:[#allocation10 + $0xdc] ss:$12 sps:$4 sm:$0xff]  }
 0x163   :  { %1215 = vmatpush2.bf16.msra.mxu0 %v3131_v41  ;;  %1254 = vmatpush2.bf16.msra.mxu1 %v3134_v42  ;;  %v3243_v41 = vld [vmem:[#allocation10 + $0x2e8] ss:$12 sps:$4 sm:$0xff]   ;;  %v3245_v42 = vld [vmem:[#allocation10 + $0x2ec] ss:$12 sps:$4 sm:$0xff]  }
 0x164   :  { %1216 = vmatprep.subr.bf16.mxu0 %v3139_v43  ;;  %1255 = vmatprep.subr.bf16.mxu1 %v3142_v44  ;;  %v3197_v43 = vld [vmem:[#allocation10 + $0xd8] ss:$12 sps:$4 sm:$0xff]  }
 0x165   :  { %v3202_v44 = vld [vmem:[#allocation10 + $0xc4] ss:$12 sps:$4 sm:$0xff]  }
 0x167   :  { %1217 = vmatpush2.bf16.msra.mxu0 %v3137_v45  ;;  %1256 = vmatpush2.bf16.msra.mxu1 %v3140_v46  ;;  %v3246_v45 = vld [vmem:[#allocation10 + $0x2d0] ss:$12 sps:$4 sm:$0xff]   ;;  %v3248_v46 = vld [vmem:[#allocation10 + $0x2d4] ss:$12 sps:$4 sm:$0xff]  }
 0x168   :  { %1218 = vmatprep.subr.bf16.mxu0 %v3145_v47  ;;  %1257 = vmatprep.subr.bf16.mxu1 %v3148_v48  ;;  %v3251_v47 = vld [vmem:[#allocation10 + $0x2bc] ss:$12 sps:$4 sm:$0xff]   ;;  %v3200_v48 = vld [vmem:[#allocation10 + $0xc0] ss:$12 sps:$4 sm:$0xff]  }
 0x16b   :  { %1219 = vmatpush2.bf16.msra.mxu0 %v3143_v49  ;;  %1258 = vmatpush2.bf16.msra.mxu1 %v3146_v50  ;;  %v3206_v49 = vld [vmem:[#allocation10 + $0x170] ss:$12 sps:$4 sm:$0xff]   ;;  %v3249_v50 = vld [vmem:[#allocation10 + $0x2b8] ss:$12 sps:$4 sm:$0xff]  }
 0x16c   :  { %1259 = vmatprep.subr.bf16.mxu1 %v3151_v51  ;;  %1943 = vmatprep.subr.bf16.mxu0 %v3157_v52  ;;  %v3254_v51 = vld [vmem:[#allocation10 + $0x2a4] ss:$12 sps:$4 sm:$0xff]   ;;  %v3252_v52 = vld [vmem:[#allocation10 + $0x2a0] ss:$12 sps:$4 sm:$0xff]  }
 0x16e   :  { %1221 = vmatmul.mubr.bf16.vlgmr.msra.gmra.mxu0 %v3613_v39  ;;  %v3167_v39 = vld [vmem:[#allocation10 + $0x48] ss:$12 sps:$4 sm:$0xff]  }
 0x16f   :  { %1260 = vmatpush2.bf16.msra.mxu1 %v3149_v53  ;;  %1944 = vmatpush1.bf16.msra.mxu0 %v3155_v54  ;;  %v3257_v53 = vld [vmem:[#allocation10 + $0x28c] ss:$12 sps:$4 sm:$0xff]   ;;  %v3255_v54 = vld [vmem:[#allocation10 + $0x288] ss:$12 sps:$4 sm:$0xff]  }
 0x170   :  { %1261 = vmatprep.subr.bf16.mxu1 %v3154_v55  ;;  %1945 = vmatprep.subr.bf16.mxu0 %v3160_v57  ;;  %v3260_v55 = vld [vmem:[#allocation10 + $0x274] ss:$12 sps:$4 sm:$0xff]   ;;  %v3258_v57 = vld [vmem:[#allocation10 + $0x270] ss:$12 sps:$4 sm:$0xff]  }
 0x173   :  { %1262 = vmatpush2.bf16.msra.mxu1 %v3152_v58  ;;  %1946 = vmatpush1.bf16.msra.mxu0 %v3158_v59  ;;  %v3263_v58 = vld [vmem:[#allocation10 + $0x25c] ss:$12 sps:$4 sm:$0xff]   ;;  %v3261_v59 = vld [vmem:[#allocation10 + $0x258] ss:$12 sps:$4 sm:$0xff]  }
 0x174   :  { %1947 = vmatprep.subr.bf16.mxu0 %v3163_v60  ;;  %1986 = vmatprep.subr.bf16.mxu1 %v3205_v5  ;;  %v3266_v60 = vld [vmem:[#allocation10 + $0x244] ss:$12 sps:$4 sm:$0xff]  }
 0x176   :  { %1264 = vmatmul.mubr.bf16.vlgmr.msra.gmra.mxu1 %v3616_v56  ;;  %v3208_v56 = vld [vmem:[#allocation10 + $0x210] ss:$12 sps:$4 sm:$0xff]  }
 0x177   :  { %1948 = vmatpush1.bf16.msra.mxu0 %v3161_v61  ;;  %1987 = vmatpush1.bf16.msra.mxu1 %v3203_v4  ;;  %v3264_v61 = vld [vmem:[#allocation10 + $0x240] ss:$12 sps:$4 sm:$0xff]  }
 0x178   :  { %1949 = vmatprep.subr.bf16.mxu0 %v3166_v62  ;;  %1988 = vmatprep.subr.bf16.mxu1 %v3210_v8  ;;  %v3267_v62 = vld [vmem:[#allocation10 + $0x2f0] ss:$12 sps:$4 sm:$0xff]  }
 0x17b   :  { %1950 = vmatpush1.bf16.msra.mxu0 %v3164_v63  ;;  %1989 = vmatpush1.bf16.msra.mxu1 %v3208_v56 }
 0x17c   :  { %1951 = vmatprep.subr.bf16.mxu0 %v3169_v0  ;;  %1990 = vmatprep.subr.bf16.mxu1 %v3215_v12 }
 0x17f   :  { %1952 = vmatpush1.bf16.msra.mxu0 %v3167_v39  ;;  %1991 = vmatpush1.bf16.msra.mxu1 %v3213_v11  ;;  %v440_v39 = vld [vmem:[%s3668_s4] sm:$0xf] }
 0x180   :  { %1953 = vmatprep.subr.bf16.mxu0 %v3172_v1  ;;  %1992 = vmatprep.subr.bf16.mxu1 %v3220_v19 }
 0x183   :  { %1954 = vmatpush1.bf16.msra.mxu0 %v3170_v2  ;;  %1993 = vmatpush1.bf16.msra.mxu1 %v3218_v18  ;;  %v449_v2 = vrot.slane %v440_v39, %v3599_v14 }
 0x184   :  { %1955 = vmatprep.subr.bf16.mxu0 %v3175_v3  ;;  %1994 = vmatprep.subr.bf16.mxu1 %v3225_v23  ;;  %v445_v3 = vrot.slane %v440_v39, %v3602_v15 }
 0x187   :  { %1956 = vmatpush1.bf16.msra.mxu0 %v3173_v6  ;;  %1995 = vmatpush1.bf16.msra.mxu1 %v3223_v22 }
 0x188   :  { %1957 = vmatprep.subr.bf16.mxu0 %v3178_v7  ;;  %1996 = vmatprep.subr.bf16.mxu1 %v3230_v29  ;;  %v3212_v29 = vld [vmem:[#allocation10 + $0x98] ss:$12 sps:$4 sm:$0xff]  }
 0x18b   :  { %1958 = vmatpush1.bf16.msra.mxu0 %v3176_v9  ;;  %1997 = vmatpush1.bf16.msra.mxu1 %v3228_v28  ;;  %v3211_v28 = vld [vmem:[#allocation10 + $0x158] ss:$12 sps:$4 sm:$0xff]  }
 0x18c   :  { %1959 = vmatprep.subr.bf16.mxu0 %v3181_v10  ;;  %1998 = vmatprep.subr.bf16.mxu1 %v3235_v33  ;;  %v3222_v33 = vld [vmem:[#allocation10 + $0x68] ss:$12 sps:$4 sm:$0xff]  }
 0x18f   :  { %1960 = vmatpush2.bf16.msra.mxu0 %v3179_v16  ;;  %1999 = vmatpush1.bf16.msra.mxu1 %v3233_v32  ;;  %v3221_v32 = vld [vmem:[#allocation10 + $0x128] ss:$12 sps:$4 sm:$0xff]  }
 0x190   :  { %1961 = vmatprep.subr.bf16.mxu0 %v3184_v17  ;;  %2000 = vmatprep.subr.bf16.mxu1 %v3240_v37  ;;  %v3232_v37 = vld [vmem:[#allocation10 + $0x38] ss:$12 sps:$4 sm:$0xff]  }
 0x193   :  { %1962 = vmatpush2.bf16.msra.mxu0 %v3182_v20  ;;  %2001 = vmatpush1.bf16.msra.mxu1 %v3238_v36  ;;  %v3231_v36 = vld [vmem:[#allocation10 + $0xf8] ss:$12 sps:$4 sm:$0xff]  }
 0x194   :  { %1963 = vmatprep.subr.bf16.mxu0 %v3187_v21  ;;  %2002 = vmatprep.subr.bf16.mxu1 %v3245_v42  ;;  %v3242_v42 = vld [vmem:[#allocation10 + $0x8] ss:$12 sps:$4 sm:$0xff]  }
 0x197   :  { %1964 = vmatpush2.bf16.msra.mxu0 %v3185_v25  ;;  %2003 = vmatpush2.bf16.msra.mxu1 %v3243_v41  ;;  %v3207_v25 = vld [vmem:[#allocation10 + $0xb0] ss:$12 sps:$4 sm:$0xff]   ;;  %v3241_v41 = vld [vmem:[#allocation10 + $0xc8] ss:$12 sps:$4 sm:$0xff]  }
 0x198   :  { %1965 = vmatprep.subr.bf16.mxu0 %v3190_v26  ;;  %2004 = vmatprep.subr.bf16.mxu1 %v3248_v46  ;;  %v457_v46 = vrot.slane %v440_v39, %v159_v24 }
 0x19b   :  { %1966 = vmatpush2.bf16.msra.mxu0 %v3188_v30  ;;  %2005 = vmatpush2.bf16.msra.mxu1 %v3246_v45  ;;  %v3216_v30 = vld [vmem:[#allocation10 + $0x140] ss:$12 sps:$4 sm:$0xff]  }
 0x19c   :  { %1967 = vmatprep.subr.bf16.mxu0 %v3193_v31  ;;  %2006 = vmatprep.subr.bf16.mxu1 %v3251_v47  ;;  %v3217_v31 = vld [vmem:[#allocation10 + $0x80] ss:$12 sps:$4 sm:$0xff]   ;;  %v453_v47 = vrot.slane %v440_v39, %v3608_v27 }
 0x19f   :  { %1968 = vmatpush2.bf16.msra.mxu0 %v3191_v34  ;;  %2007 = vmatpush2.bf16.msra.mxu1 %v3249_v50  ;;  %v3226_v34 = vld [vmem:[#allocation10 + $0x110] ss:$12 sps:$4 sm:$0xff]  }
 0x1a0   :  { %1969 = vmatprep.subr.bf16.mxu0 %v3196_v35  ;;  %2008 = vmatprep.subr.bf16.mxu1 %v3254_v51  ;;  %v3227_v35 = vld [vmem:[#allocation10 + $0x50] ss:$12 sps:$4 sm:$0xff]  }
 0x1a3   :  { %1970 = vmatpush2.bf16.msra.mxu0 %v3194_v38  ;;  %2009 = vmatpush2.bf16.msra.mxu1 %v3252_v52  ;;  %v3236_v38 = vld [vmem:[#allocation10 + $0xe0] ss:$12 sps:$4 sm:$0xff]  }
 0x1a4   :  { %1971 = vmatprep.subr.bf16.mxu0 %v3199_v40  ;;  %2010 = vmatprep.subr.bf16.mxu1 %v3257_v53  ;;  %v3237_v40 = vld [vmem:[#allocation10 + $0x20] ss:$12 sps:$4 sm:$0xff]  }
 0x1a7   :  { %1972 = vmatpush2.bf16.msra.mxu0 %v3197_v43  ;;  %2011 = vmatpush2.bf16.msra.mxu1 %v3255_v54 }
 0x1a8   :  { %1973 = vmatprep.subr.bf16.mxu0 %v3202_v44  ;;  %2012 = vmatprep.subr.bf16.mxu1 %v3260_v55 }
 0x1ab   :  { %1974 = vmatpush2.bf16.msra.mxu0 %v3200_v48  ;;  %2013 = vmatpush2.bf16.msra.mxu1 %v3258_v57 }
 0x1ac   :  { %2807 = vmatprep.subr.bf16.mxu0 %v3206_v49  ;;  %2014 = vmatprep.subr.bf16.mxu1 %v3263_v58 }
 0x1af   :  { %2015 = vmatpush2.bf16.msra.mxu1 %v3261_v59 }
 0x1b0   :  { %2016 = vmatprep.subr.bf16.mxu1 %v3266_v60 }
 0x1b3   :  { %2017 = vmatpush2.bf16.msra.mxu1 %v3264_v61 }
 0x1b4   :  { %2829 = vmatprep.subr.bf16.mxu1 %v3267_v62 }
 0x1ee   :  { %v1136_v63 = vpop.f32.mrf.mxu0 }
 0x1ef   :  { %v1137_v8 = vadd.f32 %v1136_v63, %v445_v3 }
 0x1f0   :  { %v1138_v0 = vpop.f32.mrf.mxu0 }
 0x1f1   :  { %v1139_v7 = vadd.f32 %v1138_v0, %v449_v2 }
 0x1f2   :  { %v1140_v1 = vpop.f32.mrf.mxu0 }
 0x1f3   :  { %v1141_v56 = vadd.f32 %v1140_v1, %v445_v3  ;;  %v3268_v1 = vld [vmem:[#allocation10 + $0x230] ss:$12 sps:$4 sm:$0xff]   ;;  %v3270_v3 = vld [vmem:[#allocation10 + $0x218] ss:$12 sps:$4 sm:$0xff]  }
 0x1f4   :  { %v1142_v5 = vpop.f32.mrf.mxu0 }
 0x1f5   :  { %v1143_v10 = vadd.f32 %v1142_v5, %v449_v2  ;;  %v3269_v2 = vld [vmem:[#allocation10 + $0x2d8] ss:$12 sps:$4 sm:$0xff]   ;;  %v3272_v5 = vld [vmem:[#allocation10 + $0x200] ss:$12 sps:$4 sm:$0xff]  }
 0x1f6   :  { %v1179_v4 = vpop.f32.mrf.mxu1 }
 0x1f7   :  { %v1180_v16 = vadd.f32 %v1179_v4, %v1137_v8  ;;  %v3271_v4 = vld [vmem:[#allocation10 + $0x2c0] ss:$12 sps:$4 sm:$0xff]   ;;  %v3276_v8 = vld [vmem:[#allocation10 + $0x1d0] ss:$12 sps:$4 sm:$0xff]  }
 0x1f8   :  { %v1181_v6 = vpop.f32.mrf.mxu1 }
 0x1f9   :  { %v1182_v11 = vadd.f32 %v1181_v6, %v1139_v7  ;;  %v1274_v22 = vmax.f32 %v1180_v16, 0.0  ;;  %v3273_v6 = vld [vmem:[#allocation10 + $0x2a8] ss:$12 sps:$4 sm:$0xff]  }
 0x1fa   :  { %v1183_v9 = vpop.f32.mrf.mxu1  ;;  %v3274_v7 = vld [vmem:[#allocation10 + $0x1e8] ss:$12 sps:$4 sm:$0xff]  }
 0x1fb   :  { %v1184_v12 = vadd.f32 %v1183_v9, %v1141_v56  ;;  %v1275_v20 = vmax.f32 %v1182_v11, 0.0  ;;  %v3275_v56 = vld [vmem:[#allocation10 + $0x290] ss:$12 sps:$4 sm:$0xff]   ;;  %v3277_v9 = vld [vmem:[#allocation10 + $0x278] ss:$12 sps:$4 sm:$0xff]  }
 0x1fc   :  { %v1185_v17 = vpop.f32.mrf.mxu1  ;;  %v3279_v11 = vld [vmem:[#allocation10 + $0x260] ss:$12 sps:$4 sm:$0xff]   ;;  %v3281_v16 = vld [vmem:[#allocation10 + $0x248] ss:$12 sps:$4 sm:$0xff]  }
 0x1fd   :  { %v1186_v18 = vadd.f32 %v1185_v17, %v1143_v10  ;;  %v1278_v19 = vmax.f32 %v1184_v12, 0.0  ;;  %v3278_v10 = vld [vmem:[#allocation10 + $0x1b8] ss:$12 sps:$4 sm:$0xff]   ;;  %v3280_v12 = vld [vmem:[#allocation10 + $0x1a0] ss:$12 sps:$4 sm:$0xff]  }
 0x1fe   :  { %v3282_v17 = vld [vmem:[#allocation10 + $0x188] ss:$12 sps:$4 sm:$0xff]  }
 0x1ff   :  { %v1279_v21 = vmax.f32 %v1186_v18, 0.0  ;;  %v1282_v26 = vpack.c.bf16 %v1278_v19, %v1274_v22  ;;  %v3283_v18 = vld [vmem:[#allocation11 + $0x78] sm:$0xff]   ;;  %v3287_v22 = vld [vmem:[#allocation11 + $0x68] sm:$0xff]  }
 0x200   :  { %v3284_v19 = vld [vmem:[#allocation11 + $0x38] sm:$0xff]  }
 0x201   :  { %v1283_v23 = vpack.c.bf16 %v1279_v21, %v1275_v20  ;;  %v3285_v20 = vld [vmem:[#allocation11 + $0x70] sm:$0xff]  }
 0x202   :  { %v3286_v21 = vld [vmem:[#allocation11 + $0x30] sm:$0xff]  }
 0x203   :  { %1975 = vmatprep.mubr.bf16.mxu0 %v1283_v23 }
 0x204   :  { %1976 = vmatmul.mubr.bf16.vlgmr.msra.gmra.mxu0 %v1282_v26 }
 0x205   :  { %2808 = vmatpush3.bf16.msra.mxu0 %v3207_v25  ;;  %2061 = vmatprep.mubr.bf16.mxu0 %v1283_v23  ;;  %v3288_v23 = vld [vmem:[#allocation11 + $0x28] sm:$0xff]   ;;  %v3289_v25 = vld [vmem:[#allocation11 + $0x60] sm:$0xff]  }
 0x206   :  { %2809 = vmatprep.subr.bf16.mxu0 %v3211_v28  ;;  %v3291_v28 = vld [vmem:[#allocation11 + $0x58] sm:$0xff]  }
 0x209   :  { %2810 = vmatpush3.bf16.msra.mxu0 %v3212_v29  ;;  %v3292_v29 = vld [vmem:[#allocation11 + $0x18] sm:$0xff]  }
 0x20a   :  { %2811 = vmatprep.subr.bf16.mxu0 %v3216_v30  ;;  %v3293_v30 = vld [vmem:[#allocation11 + $0x50] sm:$0xff]  }
 0x20d   :  { %2812 = vmatpush3.bf16.msra.mxu0 %v3217_v31  ;;  %v3294_v31 = vld [vmem:[#allocation11 + $0x10] sm:$0xff]  }
 0x20e   :  { %2813 = vmatprep.subr.bf16.mxu0 %v3221_v32  ;;  %v3295_v32 = vld [vmem:[#allocation11 + $0x48] sm:$0xff]  }
 0x211   :  { %2814 = vmatpush3.bf16.msra.mxu0 %v3222_v33  ;;  %v3296_v33 = vld [vmem:[#allocation11 + $0x8] sm:$0xff]  }
 0x212   :  { %2815 = vmatprep.subr.bf16.mxu0 %v3226_v34  ;;  %v3297_v34 = vld [vmem:[#allocation11 + $0x40] sm:$0xff]  }
 0x215   :  { %2816 = vmatpush3.bf16.msra.mxu0 %v3227_v35  ;;  %v3298_v35 = vld [vmem:[#allocation11] sm:$0xff]  }
 0x216   :  { %2817 = vmatprep.subr.bf16.mxu0 %v3231_v36  ;;  %v3299_v36 = vld [vmem:[#allocation11 + $0xb8] sm:$0xff]  }
 0x219   :  { %2818 = vmatpush3.bf16.msra.mxu0 %v3232_v37  ;;  %v3499_v37 = vmov 0.0  }
 0x21a   :  { %2819 = vmatprep.subr.bf16.mxu0 %v3236_v38  ;;  %v3300_v38 = vld [vmem:[#allocation11 + $0xb0] sm:$0xff]  }
 0x21d   :  { %2820 = vmatpush3.bf16.msra.mxu0 %v3237_v40  ;;  %v3301_v40 = vld [vmem:[#allocation11 + $0xa8] sm:$0xff]  }
 0x21e   :  { %2821 = vmatprep.subr.bf16.mxu0 %v3241_v41  ;;  %v3302_v41 = vld [vmem:[#allocation11 + $0xa0] sm:$0xff]  }
 0x221   :  { %2822 = vmatpush3.bf16.msra.mxu0 %v3242_v42  ;;  %v3303_v42 = vld [vmem:[#allocation11 + $0x98] sm:$0xff]  }
 0x222   :  { %2851 = vmatprep.subr.bf16.mxu0 %v3283_v18 }
 0x224   :  { %2062 = vmatmul.mubr.bf16.vlgmr.msra.gmra.mxu0 %v1282_v26  ;;  %v3290_v26 = vld [vmem:[#allocation11 + $0x20] sm:$0xff]  }
 0x225   :  { %2852 = vmatpush3.bf16.msra.mxu0 %v3284_v19 }
 0x226   :  { %2853 = vmatprep.subr.bf16.mxu0 %v3285_v20 }
 0x229   :  { %2854 = vmatpush3.bf16.msra.mxu0 %v3286_v21 }
 0x22a   :  { %2855 = vmatprep.subr.bf16.mxu0 %v3287_v22 }
 0x22d   :  { %2856 = vmatpush3.bf16.msra.mxu0 %v3288_v23 }
 0x22e   :  { %v1222_v43 = vpop.f32.mrf.mxu0  ;;  %2857 = vmatprep.subr.bf16.mxu0 %v3289_v25 }
 0x22f   :  { %v1223_v53 = vadd.f32 %v1222_v43, %v453_v47  ;;  %v3304_v43 = vld [vmem:[#allocation11 + $0x90] sm:$0xff]  }
 0x230   :  { %v1224_v44 = vpop.f32.mrf.mxu0 }
 0x231   :  { %v1225_v51 = vadd.f32 %v1224_v44, %v457_v46  ;;  %2858 = vmatpush3.bf16.msra.mxu0 %v3290_v26  ;;  %v3305_v44 = vld [vmem:[#allocation11 + $0x88] sm:$0xff]   ;;  %v3307_v26 = vld [vmem:[#allocation13 + $0x38] sm:$0xff]  }
 0x232   :  { %v1226_v45 = vpop.f32.mrf.mxu0  ;;  %2859 = vmatprep.subr.bf16.mxu0 %v3291_v28  ;;  %v3308_v28 = vld [vmem:[#allocation13 + $0x30] sm:$0xff]  }
 0x233   :  { %v1227_v52 = vadd.f32 %v1226_v45, %v453_v47  ;;  %v3306_v45 = vld [vmem:[#allocation11 + $0x80] sm:$0xff]  }
 0x234   :  { %v1228_v49 = vpop.f32.mrf.mxu0 }
 0x235   :  { %v1229_v55 = vadd.f32 %v1228_v49, %v457_v46  ;;  %2860 = vmatpush3.bf16.msra.mxu0 %v3292_v29  ;;  %v3310_v29 = vld [vmem:[#allocation13 + $0x20] sm:$0xff]  }
 0x236   :  { %v1265_v48 = vpop.f32.mrf.mxu1  ;;  %2861 = vmatprep.subr.bf16.mxu0 %v3293_v30  ;;  %v3311_v30 = vld [vmem:[#allocation13 + $0x18] sm:$0xff]  }
 0x237   :  { %v1266_v59 = vadd.f32 %v1265_v48, %v1223_v53  ;;  %v1414_v48 = vld [vmem:[%s3670_s6] sm:$0x7] }
 0x238   :  { %v1267_v50 = vpop.f32.mrf.mxu1 }
 0x239   :  { %v1268_v57 = vadd.f32 %v1267_v50, %v1225_v51  ;;  %v1276_v13 = vmax.f32 %v1266_v59, 0.0  ;;  %2862 = vmatpush3.bf16.msra.mxu0 %v3294_v31  ;;  %v1423_v50 = vrot.slane %v1414_v48, %v3599_v14  ;;  %v1419_v51 = vrot.slane %v1414_v48, %v3602_v15  ;;  %v3312_v31 = vld [vmem:[#allocation13 + $0x10] sm:$0xff]  }
 0x23a   :  { %v1269_v54 = vpop.f32.mrf.mxu1  ;;  %2863 = vmatprep.subr.bf16.mxu0 %v3295_v32  ;;  %v3313_v32 = vld [vmem:[#allocation13 + $0x8] sm:$0xff]  }
 0x23b   :  { %v1270_v58 = vadd.f32 %v1269_v54, %v1227_v52  ;;  %v1277_v63 = vmax.f32 %v1268_v57, 0.0 }
 0x23c   :  { %v1271_v60 = vpop.f32.mrf.mxu1 }
 0x23d   :  { %v1272_v61 = vadd.f32 %v1271_v60, %v1229_v55  ;;  %v1280_v62 = vmax.f32 %v1270_v58, 0.0  ;;  %2864 = vmatpush3.bf16.msra.mxu0 %v3296_v33  ;;  %v3314_v33 = vld [vmem:[#allocation13] sm:$0xff]  }
 0x23e   :  { %2865 = vmatprep.subr.bf16.mxu0 %v3297_v34 }
 0x23f   :  { %v1281_v0 = vmax.f32 %v1272_v61, 0.0  ;;  %v1284_v39 = vpack.c.bf16 %v1280_v62, %v1276_v13 }
 0x241   :  { %v1285_v24 = vpack.c.bf16 %v1281_v0, %v1277_v63  ;;  %2866 = vmatpush3.bf16.msra.mxu0 %v3298_v35 }
 0x242   :  { %2911 = vmatprep.subr.bf16.mxu0 %v3499_v37 }
 0x243   :  { %2018 = vmatprep.mubr.bf16.mxu1 %v1285_v24 }
 0x244   :  { %2019 = vmatmul.mubr.bf16.vlgmr.msra.gmra.mxu1 %v1284_v39 }
 0x245   :  { %2830 = vmatpush3.bf16.msra.mxu1 %v3268_v1  ;;  %2102 = vmatprep.mubr.bf16.mxu1 %v1285_v24 }
 0x246   :  { %2831 = vmatprep.subr.bf16.mxu1 %v3269_v2 }
 0x249   :  { %2832 = vmatpush3.bf16.msra.mxu1 %v3270_v3 }
 0x24a   :  { %2833 = vmatprep.subr.bf16.mxu1 %v3271_v4 }
 0x24d   :  { %2834 = vmatpush3.bf16.msra.mxu1 %v3272_v5 }
 0x24e   :  { %2835 = vmatprep.subr.bf16.mxu1 %v3273_v6 }
 0x251   :  { %2836 = vmatpush3.bf16.msra.mxu1 %v3274_v7 }
 0x252   :  { %2837 = vmatprep.subr.bf16.mxu1 %v3275_v56  ;;  %v1427_v56 = vrot.slane %v1414_v48, %v3608_v27  ;;  %v3309_v27 = vld [vmem:[#allocation13 + $0x28] sm:$0xff]  }
 0x255   :  { %2838 = vmatpush3.bf16.msra.mxu1 %v3276_v8 }
 0x256   :  { %2839 = vmatprep.subr.bf16.mxu1 %v3277_v9 }
 0x259   :  { %2840 = vmatpush3.bf16.msra.mxu1 %v3278_v10 }
 0x25a   :  { %2841 = vmatprep.subr.bf16.mxu1 %v3279_v11 }
 0x25d   :  { %2842 = vmatpush3.bf16.msra.mxu1 %v3280_v12 }
 0x25e   :  { %2843 = vmatprep.subr.bf16.mxu1 %v3281_v16 }
 0x261   :  { %2844 = vmatpush3.bf16.msra.mxu1 %v3282_v17 }
 0x262   :  { %2891 = vmatprep.subr.bf16.mxu1 %v3499_v37 }
 0x264   :  { %2103 = vmatmul.mubr.bf16.vlgmr.msra.gmra.mxu1 %v1284_v39 }
 0x265   :  { %2892 = vmatpush3.bf16.msra.mxu1 %v3299_v36  ;;  %2907 = vmatprep.mubr.msk.bf16.mxu1 %vm3500_vm1, %v3499_v37 }
 0x266   :  { %2893 = vmatprep.subr.bf16.mxu1 %v3499_v37 }
 0x269   :  { %2894 = vmatpush3.bf16.msra.mxu1 %v3300_v38 }
 0x26a   :  { %2895 = vmatprep.subr.bf16.mxu1 %v3499_v37 }
 0x26d   :  { %2896 = vmatpush3.bf16.msra.mxu1 %v3301_v40 }
 0x26e   :  { %2897 = vmatprep.subr.bf16.mxu1 %v3499_v37 }
 0x271   :  { %2898 = vmatpush3.bf16.msra.mxu1 %v3302_v41  ;;  %v2773_v41 = vld [vmem:[%s3672_s8] ss:$0 sm:$0xff]  ;;  %s3501_s8 = smov [#allocation14]  }
 0x272   :  { %2899 = vmatprep.subr.bf16.mxu1 %v3499_v37  ;;  %s2523_s17 = sshll.u32 %s3501_s8, 4  ;;  %s2524_s17 = int_to_ptr.vmem [resolvable:$true] %s2523_s17 }
 0x273   :  { %s3455_s18 = scalar_lea.vmem %s2524_s17, 256  ;;  %p3460_p8 = scmp.lt.s32.totalorder %s2524_s17, %s2524_s17 }
 0x274   :  { %p3456_p7 = scmp.ne.s32.totalorder %s2524_s17, %s3455_s18  ;;  %p3461_p9 = scmp.lt.s32.totalorder %s3455_s18, %s3455_s18 }
 0x275   :  { %2900 = vmatpush3.bf16.msra.mxu1 %v3303_v42 }
 0x276   :  { %2901 = vmatprep.subr.bf16.mxu1 %v3499_v37  ;;  %p3462_p10 = por %p3461_p9, %p3460_p8 }
 0x278   :  { %p3463_p11 = pnand %p3462_p10, %p3456_p7 }
 0x279   :  { %2902 = vmatpush3.bf16.msra.mxu1 %v3304_v43 }
 0x27a   :  { %2903 = vmatprep.subr.bf16.mxu1 %v3499_v37 }
 0x27d   :  { %2904 = vmatpush3.bf16.msra.mxu1 %v3305_v44 }
 0x27e   :  { %2905 = vmatprep.subr.bf16.mxu1 %v3499_v37 }
 0x281   :  { %2906 = vmatpush3.bf16.msra.mxu1 %v3306_v45 }
 0x2c4   :  { %v1977_v46 = vpop.f32.mrf.mxu0 }
 0x2c5   :  { %v1978_v58 = vadd.f32 %v1977_v46, %v1419_v51 }
 0x2c6   :  { %v1979_v47 = vpop.f32.mrf.mxu0 }
 0x2c7   :  { %v1980_v55 = vadd.f32 %v1979_v47, %v1423_v50 }
 0x2c8   :  { %v1981_v49 = vpop.f32.mrf.mxu0 }
 0x2c9   :  { %v1982_v57 = vadd.f32 %v1981_v49, %v1419_v51 }
 0x2ca   :  { %v1983_v53 = vpop.f32.mrf.mxu0 }
 0x2cb   :  { %v1984_v60 = vadd.f32 %v1983_v53, %v1423_v50  ;;  %v2798_v53 = vld [vmem:[%s3674_s10] ss:$0 sm:$0xff] }
 0x2e4   :  { %v2823_v15 = vpop.f32.mrf.mxu0 }
 0x2e6   :  { %v2824_v4 = vpop.f32.mrf.mxu0 }
 0x2e7   :  { %v2825_v8 = vadd.f32 %v2824_v4, %v2823_v15 }
 0x2e8   :  { %v2826_v5 = vpop.f32.mrf.mxu0 }
 0x2e9   :  { %v2064_v16 = vadd.f32 %v2825_v8, %v1427_v56 }
 0x2ea   :  { %v2827_v6 = vpop.f32.mrf.mxu0 }
 0x2eb   :  { %v2828_v10 = vadd.f32 %v2827_v6, %v2826_v5 }
 0x2ed   :  { %v2067_v18 = vadd.f32 %v2828_v10, %v1427_v56 }
 0x304   :  { %v2020_v52 = vpop.f32.mrf.mxu1 }
 0x305   :  { %v2021_v63 = vadd.f32 %v2020_v52, %v1978_v58 }
 0x306   :  { %v2022_v54 = vpop.f32.mrf.mxu1 }
 0x307   :  { %v2023_v61 = vadd.f32 %v2022_v54, %v1980_v55  ;;  %v2111_v2 = vmax.f32 %v2021_v63, 0.0 }
 0x308   :  { %v2024_v59 = vpop.f32.mrf.mxu1 }
 0x309   :  { %v2025_v62 = vadd.f32 %v2024_v59, %v1982_v57  ;;  %v2112_v1 = vmax.f32 %v2023_v61, 0.0 }
 0x30a   :  { %v2026_v0 = vpop.f32.mrf.mxu1 }
 0x30b   :  { %v2027_v13 = vadd.f32 %v2026_v0, %v1984_v60  ;;  %v2114_v24 = vmax.f32 %v2025_v62, 0.0 }
 0x30d   :  { %v2115_v39 = vmax.f32 %v2027_v13, 0.0  ;;  %v2117_v3 = vpack.c.bf16 %v2114_v24, %v2111_v2 }
 0x30f   :  { %v2118_v14 = vpack.c.bf16 %v2115_v39, %v2112_v1 }
 0x311   :  { %2351 = vmatprep.mubr.bf16.mxu0 %v2118_v14 }
 0x312   :  { %2352 = vmatmul.mubr.bf16.vlgmr.msra.gmra.mxu0 %v2117_v3 }
 0x313   :  { %2927 = vmatprep.mubr.msk.bf16.mxu0 %vm3500_vm1, %v3499_v37  ;;  %2912 = vmatpush3.bf16.msra.mxu0 %v3307_v26 }
 0x314   :  { %2913 = vmatprep.subr.bf16.mxu0 %v3499_v37 }
 0x317   :  { %2914 = vmatpush3.bf16.msra.mxu0 %v3308_v28 }
 0x318   :  { %2915 = vmatprep.subr.bf16.mxu0 %v3499_v37 }
 0x31b   :  { %2916 = vmatpush3.bf16.msra.mxu0 %v3309_v27 }
 0x31c   :  { %2917 = vmatprep.subr.bf16.mxu0 %v3499_v37 }
 0x31f   :  { %2918 = vmatpush3.bf16.msra.mxu0 %v3310_v29 }
 0x320   :  { %2919 = vmatprep.subr.bf16.mxu0 %v3499_v37 }
 0x323   :  { %2920 = vmatpush3.bf16.msra.mxu0 %v3311_v30 }
 0x324   :  { %v2845_v7 = vpop.f32.mrf.mxu1  ;;  %2921 = vmatprep.subr.bf16.mxu0 %v3499_v37 }
 0x326   :  { %v2846_v9 = vpop.f32.mrf.mxu1 }
 0x327   :  { %v2847_v11 = vadd.f32 %v2846_v9, %v2845_v7  ;;  %2922 = vmatpush3.bf16.msra.mxu0 %v3312_v31 }
 0x328   :  { %v2848_v12 = vpop.f32.mrf.mxu1  ;;  %2923 = vmatprep.subr.bf16.mxu0 %v3499_v37 }
 0x329   :  { %v2105_v19 = vadd.f32 %v2847_v11, %v2064_v16 }
 0x32a   :  { %v2849_v17 = vpop.f32.mrf.mxu1 }
 0x32b   :  { %v2850_v20 = vadd.f32 %v2849_v17, %v2848_v12  ;;  %v2113_v22 = vmax.f32 %v2105_v19, 0.0  ;;  %2924 = vmatpush3.bf16.msra.mxu0 %v3313_v32 }
 0x32c   :  { %2925 = vmatprep.subr.bf16.mxu0 %v3499_v37 }
 0x32d   :  { %v2108_v21 = vadd.f32 %v2850_v20, %v2067_v18 }
 0x32f   :  { %v2116_v23 = vmax.f32 %v2108_v21, 0.0  ;;  %2926 = vmatpush3.bf16.msra.mxu0 %v3314_v33 }
 0x331   :  { %v2119_v25 = vpack.c.bf16 %v2116_v23, %v2113_v22 }
 0x333   :  { %2908 = vmatmul.mubr.bf16.vlgmr.msra.gmra.mxu1 %v2119_v25 }
 0x3d2   :  { %v2867_v34 = vpop.f32.mrf.mxu0 }
 0x3d4   :  { %v2868_v35 = vpop.f32.mrf.mxu0 }
 0x3d5   :  { %v2869_v40 = vadd.f32 %v2868_v35, %v2867_v34 }
 0x3d6   :  { %v2870_v36 = vpop.f32.mrf.mxu0 }
 0x3d7   :  { %v2354_v44 = vadd.f32 %v2869_v40, %v2773_v41 }
 0x3d8   :  { %v2871_v38 = vpop.f32.mrf.mxu0 }
 0x3d9   :  { %v2872_v42 = vadd.f32 %v2871_v38, %v2870_v36 }
 0x3db   :  { %v2357_v47 = vadd.f32 %v2872_v42, %v2773_v41 }
 0x3f3   :  { %v2394_v43 = vpop.f32.mrf.mxu1 }
 0x3f4   :  { %v2395_v46 = vadd.f32 %v2394_v43, %v2354_v44 }
 0x3f5   :  { %v2909_v45 = vpop.f32.mrf.mxu1 }
 0x3f6   :  { %v2401_v50 = vmax.f32 %v2395_v46, 0.0 }
 0x3f7   :  { %v2397_v48 = vpop.f32.mrf.mxu1 }
 0x3f8   :  { %v2398_v49 = vadd.f32 %v2397_v48, %v2357_v47 }
 0x3f9   :  { %v2910_v37 = vpop.f32.mrf.mxu1 }
 0x3fa   :  { %v2402_v51 = vmax.f32 %v2398_v49, 0.0 }
 0x3fc   :  { %v2403_v52 = vpack.c.bf16 %v2402_v51, %v2401_v50 }
 0x3fe   :  { %2928 = vmatmul.mubr.bf16.vlgmr.msra.gmra.mxu0 %v2403_v52 }
 0x4be   :  { %v2509_v54 = vpop.f32.mrf.mxu0 }
 0x4bf   :  { %v2510_v55 = vadd.f32 %v2798_v53, %v2509_v54 }
 0x4c0   :  { %v2929_v57 = vpop.f32.mrf.mxu0 }
 0x4c1   :  { %2516 = vst [vmem:[#allocation14] sm:$0xff] %v2510_v55 }
 0x4c2   :  { %v2512_v58 = vpop.f32.mrf.mxu0 }
 0x4c3   :  { %v2513_v59 = vadd.f32 %v2798_v53, %v2512_v58 }
 0x4c4   :  { %v2930_v60 = vpop.f32.mrf.mxu0 }
 0x4c5   :  { %2517 = vst [vmem:[#allocation14 + $0x8] sm:$0xff] %v2513_v59 }
 0x4c6   :  { %3466 = shalt.err (!%p3463_p11)
}
 0x4c7   :  { %s3502_s19 = smov 128   ;;  %s3503_s10 = smov 8  }
 0x4c8   :  { %2529 = dma.vmem_to_hbm [thread:$0]  %s2524_s17, 256, %s3675_s11, [#allocation4], %s3502_s19, %s3502_s19, %s3503_s10  }
 0x4c9   :  { %3483 = dma.done.wait [#allocation4], 256  }
 0x4ca   :  { %3484 = vsyncadd [#allocation4], 4294967040 }
 0x4cb   :  { %2533 = vsyncpa [#allocation3], 1 }
 0x4cc   :  { %2534 = vsyncpa [#allocation6], 1 }
 0x4cd   :  { %2535 = vsyncpa [#allocation9], 1 }
 0x4ce   :  { %2536 = vsyncpa [#allocation12], 1 }
 0x4cf   :  { %2537 = vsyncpa [#allocation4], 1 }

</bundles_post_ra>
